<compile_context>
chip_gen: v7x
topology: tpu7x:2x2x1
jax: 0.10.0
libtpu: 0.0.40
codegen_flags: <defaults>
</compile_context>

<pallas_src>
import functools

import jax
import jax.numpy as jnp
from jax.experimental import pallas as pl
from jax.experimental.pallas import tpu as pltpu

# ---- synthetic, scaled-down DINOv2-ViT config (structure identical, sizes small)
PATCH = 14               # same patch size as dinov2_vitl14
MIN_PATCHES = 8          # adaptive_resize(min_patches=8)
EMBED_DIM = 128          # (real vitl14: 1024) -- synthetic small dim
NUM_HEADS = 4            # (real: 16)
HEAD_DIM = EMBED_DIM // NUM_HEADS
MLP_DIM = 4 * EMBED_DIM
DEPTH = 6                # (real: 24) -- synthetic small depth
LAYER_INDEX = -4         # hook on blocks[-4], same as the PyTorch module
LN_EPS = 1e-6            # DINOv2 LayerNorm eps
LANE = 128


def _layernorm(v, w, b):
    mu = jnp.mean(v, axis=-1, keepdims=True)
    var = jnp.mean(jnp.square(v - mu), axis=-1, keepdims=True)
    return (v - mu) * jax.lax.rsqrt(var + LN_EPS) * w + b


# ----------------------------------------------------------------------------
# Single fused Pallas kernel (per batch element):
#   tokens = im2col_patches @ W_patch + (patch_bias, cls, pos)   [layer fused in]
#   for l in 0..L-1:  x = x + ls1*Attn(LN1(x));  x = x + ls2*MLP(LN2(x))
# grid = (B,): batch parallel (megacore); layers looped in-kernel with the
# activations carried through lax.fori_loop; stacked weights DMA'd once.
# ----------------------------------------------------------------------------
def _vit_kernel(p_ref, pw_ref, bp_ref, qkvw_ref, qkvb_ref, projw_ref,
                fc1w_ref, fc1b_ref, fc2w_ref, vecs_ref, o_ref,
                *, t_real, t_pad):
    n_layers = qkvw_ref.shape[0]
    scale = HEAD_DIM ** -0.5

    # patch embed (row 0 of p is the CLS gap, rows >= t_real are zero padding)
    emb = jnp.dot(p_ref[0], pw_ref[...], preferred_element_type=jnp.float32)
    x0 = emb + bp_ref[...]                                  # (Tp, D) f32

    # key padding mask: one lane row, broadcast over all queries/heads/layers
    col = jax.lax.broadcasted_iota(jnp.int32, (1, t_pad), 1)
    key_bias = jnp.where(col < t_real, 0.0, -1e30).astype(jnp.float32)

    def layer_body(l, x):
        vecs = vecs_ref[l]                                  # (8, D) f32, packed vectors
        ln1w, ln1b = vecs[0:1, :], vecs[1:2, :]
        projb, ls1 = vecs[2:3, :], vecs[3:4, :]
        ln2w, ln2b = vecs[4:5, :], vecs[5:6, :]
        fc2b, ls2 = vecs[6:7, :], vecs[7:8, :]

        # ---- attention branch:  x + ls1 * proj(attn(LN1(x))) ----
        h = _layernorm(x, ln1w, ln1b).astype(jnp.bfloat16)
        qkv = jnp.dot(h, qkvw_ref[l],
                      preferred_element_type=jnp.float32) + qkvb_ref[l]   # (Tp, 3D) f32

        # one (128,128) transpose per layer; per-head score matmuls are NN-form
        kT = jnp.transpose(qkv[:, EMBED_DIM:2 * EMBED_DIM])               # (D, Tp) f32
        projw = projw_ref[l]                                              # (D, D) bf16

        attn = jnp.zeros((t_pad, EMBED_DIM), jnp.float32)
        for hd in range(NUM_HEADS):
            lo = hd * HEAD_DIM
            hi = lo + HEAD_DIM
            q = (qkv[:, lo:hi] * scale).astype(jnp.bfloat16)              # (Tp, 32)
            kh = kT[lo:hi, :].astype(jnp.bfloat16)                        # (32, Tp)
            v = qkv[:, 2 * EMBED_DIM + lo:2 * EMBED_DIM + hi].astype(jnp.bfloat16)
            s = jnp.dot(q, kh, preferred_element_type=jnp.float32) + key_bias
            m = jnp.max(s, axis=-1, keepdims=True)
            e = jnp.exp(s - m)
            p = e * pl.reciprocal(jnp.sum(e, axis=-1, keepdims=True), approx=True)
            hv = jnp.dot(p.astype(jnp.bfloat16), v,
                         preferred_element_type=jnp.float32)              # (Tp, 32)
            # fused per-head output projection (f32 accumulation, no concat buffer)
            attn = attn + jnp.dot(hv.astype(jnp.bfloat16), projw[lo:hi, :],
                                  preferred_element_type=jnp.float32)     # (Tp, D)
        x = x + (attn + projb) * ls1                        # LayerScale + residual

        # ---- MLP branch:  x + ls2 * fc2(GELU(fc1(LN2(x)))) ----
        h2 = _layernorm(x, ln2w, ln2b).astype(jnp.bfloat16)
        h2 = jnp.dot(h2, fc1w_ref[l],
                     preferred_element_type=jnp.float32) + fc1b_ref[l]
        # TODO(synk): PyTorch nn.GELU() is exact erf GELU; tanh approximation used here.
        h2 = jax.nn.gelu(h2, approximate=True)
        h2 = jnp.dot(h2.astype(jnp.bfloat16), fc2w_ref[l],
                     preferred_element_type=jnp.float32) + fc2b
        return x + h2 * ls2                                 # LayerScale + residual

    x = jax.lax.fori_loop(0, n_layers, layer_body, x0)
    o_ref[0] = x.astype(o_ref.dtype)


def pallas_vit_features(patches, biaspos, prep, t_real):
    B, Tp, Kp = patches.shape
    D = EMBED_DIM
    blk = prep["blocks"]
    L = blk["qkvw"].shape[0]
    kernel = functools.partial(_vit_kernel, t_real=t_real, t_pad=Tp)
    return pl.pallas_call(
        kernel,
        out_shape=jax.ShapeDtypeStruct((B, Tp, D), jnp.float32),
        grid=(B,),
        in_specs=[
            pl.BlockSpec((1, Tp, Kp), lambda b: (b, 0, 0)),        # im2col patches (bf16)
            pl.BlockSpec((Kp, D), lambda b: (0, 0)),               # patch-embed weight (bf16)
            pl.BlockSpec((Tp, D), lambda b: (0, 0)),               # patch_b + cls + pos (f32)
            pl.BlockSpec((L, D, 3 * D), lambda b: (0, 0, 0)),      # qkv weights (bf16)
            pl.BlockSpec((L, 1, 3 * D), lambda b: (0, 0, 0)),      # qkv biases (f32)
            pl.BlockSpec((L, D, D), lambda b: (0, 0, 0)),          # proj weights (bf16)
            pl.BlockSpec((L, D, MLP_DIM), lambda b: (0, 0, 0)),    # fc1 weights (bf16)
            pl.BlockSpec((L, 1, MLP_DIM), lambda b: (0, 0, 0)),    # fc1 biases (f32)
            pl.BlockSpec((L, MLP_DIM, D), lambda b: (0, 0, 0)),    # fc2 weights (bf16)
            pl.BlockSpec((L, 8, D), lambda b: (0, 0, 0)),          # packed (8,D) vectors (f32)
        ],
        out_specs=pl.BlockSpec((1, Tp, D), lambda b: (b, 0, 0)),
        compiler_params=pltpu.CompilerParams(
            dimension_semantics=("parallel",)),
    )(patches, prep["patch_w"], biaspos, blk["qkvw"], blk["qkvb"],
      blk["projw"], blk["fc1w"], blk["fc1b"], blk["fc2w"], blk["vecs"])


# ----------------------------------------------------------------------------
# Glue: adaptive resize (matches the PyTorch size math), im2col patchify,
# per-token bias/cls/pos slab, hook/slice/permute.
# ----------------------------------------------------------------------------
def adaptive_resize(img):
    B, C, H, W = img.shape
    min_size = PATCH * MIN_PATCHES
    scale = max(min_size / min(H, W), 1.0)
    new_H = max(round(H * scale), min_size)
    new_W = max(round(W * scale), min_size)
    new_H = (new_H + PATCH - 1) // PATCH * PATCH
    new_W = (new_W + PATCH - 1) // PATCH * PATCH
    # TODO(synk): torchvision TF.resize(antialias=True) bilinear; jax.image.resize
    # used in glue (identical half-pixel convention; antialias moot for upscaling).
    return jax.image.resize(img, (B, C, new_H, new_W), method="linear", antialias=True)


def frozen_dinov2_forward(x, prep):
    x = adaptive_resize(x)
    B, C, H, W = x.shape
    Hp, Wp = H // PATCH, W // PATCH
    n_tok = Hp * Wp
    t_real = 1 + n_tok
    t_pad = ((t_real + LANE - 1) // LANE) * LANE

    # im2col patchify (Conv2d(C, D, kernel=14, stride=14) == matmul), row 0 is the
    # CLS gap and rows >= t_real are zero padding; K padded 588 -> 640.
    k_pad = prep["patch_w"].shape[0]
    p = x.reshape(B, C, Hp, PATCH, Wp, PATCH)
    p = p.transpose(0, 2, 4, 1, 3, 5).reshape(B, n_tok, C * PATCH * PATCH)
    p = jnp.pad(p, ((0, 0), (1, t_pad - t_real), (0, k_pad - p.shape[-1])))
    p = p.astype(jnp.bfloat16)

    # one (Tp, D) additive slab: row 0 = cls + pos[0], rows 1..n_tok = patch_b + pos[1:]
    row0 = prep["cls_token"][0] + prep["pos_embed"][0, :1]
    rows = prep["patch_b"] + prep["pos_embed"][0, 1:t_real]
    biaspos = jnp.concatenate([row0, rows], axis=0)
    biaspos = jnp.pad(biaspos, ((0, t_pad - t_real), (0, 0)))

    # Blocks after the hooked one (and final norm/head) do not affect the hooked
    # intermediate output, so only blocks[0 .. DEPTH+LAYER_INDEX] are executed
    # (patch embed + all of them fused into a single pallas_call).
    out = pallas_vit_features(p, biaspos, prep, t_real)                # (B, Tp, D)

    feats = out[:, 1:t_real, :]                                        # drop CLS + pad
    feats = feats.transpose(0, 2, 1).reshape(B, EMBED_DIM, Hp, Wp)
    return feats


# ----------------------------------------------------------------------------
# Deterministic synthetic parameter init (no checkpoint load) + packing into
# the stacked / bf16 layout the fused kernel consumes.
# ----------------------------------------------------------------------------
def init_params(key):
    def nrm(k, shape, s=0.02):
        return s * jax.random.normal(k, shape, jnp.float32)

    keys = jax.random.split(key, 4 + DEPTH)
    params = {
        "patch_w": nrm(keys[0], (3 * PATCH * PATCH, EMBED_DIM)),
        "patch_b": nrm(keys[1], (1, EMBED_DIM)),
        "cls_token": nrm(keys[2], (1, 1, EMBED_DIM)),
        "pos_embed": nrm(keys[3], (1, 1 + MIN_PATCHES * MIN_PATCHES, EMBED_DIM)),
        "blocks": [],
    }
    for i in range(DEPTH):
        bk = jax.random.split(keys[4 + i], 8)
        blk = (
            jnp.ones((1, EMBED_DIM), jnp.float32),            # ln1 weight
            jnp.zeros((1, EMBED_DIM), jnp.float32),           # ln1 bias
            nrm(bk[0], (EMBED_DIM, 3 * EMBED_DIM)),           # qkv weight
            nrm(bk[1], (1, 3 * EMBED_DIM)),                   # qkv bias
            nrm(bk[2], (EMBED_DIM, EMBED_DIM)),               # proj weight
            nrm(bk[3], (1, EMBED_DIM)),                       # proj bias
            jnp.full((1, EMBED_DIM), 1e-5, jnp.float32),      # LayerScale ls1
            jnp.ones((1, EMBED_DIM), jnp.float32),            # ln2 weight
            jnp.zeros((1, EMBED_DIM), jnp.float32),           # ln2 bias
            nrm(bk[4], (EMBED_DIM, MLP_DIM)),                 # fc1 weight
            nrm(bk[5], (1, MLP_DIM)),                         # fc1 bias
            nrm(bk[6], (MLP_DIM, EMBED_DIM)),                 # fc2 weight
            nrm(bk[7], (1, EMBED_DIM)),                       # fc2 bias
            jnp.full((1, EMBED_DIM), 1e-5, jnp.float32),      # LayerScale ls2
        )
        params["blocks"].append(blk)
    return params


def prepare_params(params):
    """Stack the executed blocks along a leading layer axis, cast matmul
    weights to bf16, pack the (1,128) vectors, and pad patch-embed K to 640."""
    l_run = DEPTH + LAYER_INDEX + 1                       # blocks[0 .. -4] inclusive
    k_raw = 3 * PATCH * PATCH
    k_pad = ((k_raw + LANE - 1) // LANE) * LANE           # 588 -> 640
    patch_w = jnp.pad(params["patch_w"], ((0, k_pad - k_raw), (0, 0)))

    prep = {
        "patch_w": patch_w.astype(jnp.bfloat16),
        "patch_b": params["patch_b"],
        "cls_token": params["cls_token"],
        "pos_embed": params["pos_embed"],
    }

    qkvw, qkvb, projw, fc1w, fc1b, fc2w, vecs = [], [], [], [], [], [], []
    for blk in params["blocks"][:l_run]:
        (ln1w, ln1b, qw, qb, pw, pb, l1,
         ln2w, ln2b, f1w, f1b, f2w, f2b, l2) = blk
        qkvw.append(qw.astype(jnp.bfloat16))
        qkvb.append(qb)
        projw.append(pw.astype(jnp.bfloat16))
        fc1w.append(f1w.astype(jnp.bfloat16))
        fc1b.append(f1b)
        fc2w.append(f2w.astype(jnp.bfloat16))
        vecs.append(jnp.concatenate(
            [ln1w, ln1b, pb, l1, ln2w, ln2b, f2b, l2], axis=0))  # (8, D) f32

    prep["blocks"] = {
        "qkvw": jnp.stack(qkvw),       # (L, D, 3D)  bf16
        "qkvb": jnp.stack(qkvb),       # (L, 1, 3D)  f32
        "projw": jnp.stack(projw),     # (L, D, D)   bf16
        "fc1w": jnp.stack(fc1w),       # (L, D, MLP) bf16
        "fc1b": jnp.stack(fc1b),       # (L, 1, MLP) f32
        "fc2w": jnp.stack(fc2w),       # (L, MLP, D) bf16
        "vecs": jnp.stack(vecs),       # (L, 8, D)   f32
    }
    return prep


if __name__ == "__main__":
    key = jax.random.PRNGKey(0)
    k_param, k_x = jax.random.split(key)
    params = init_params(k_param)
    prep = prepare_params(params)

    # small NCHW input; adaptive_resize brings it to (2, 3, 112, 112) -> 8x8 patches
    x = jax.random.normal(k_x, (2, 3, 16, 16), jnp.float32)

    fwd = jax.jit(lambda inp: frozen_dinov2_forward(inp, prep))
    out = fwd(x)
    jax.block_until_ready(out)

    assert out.shape == (2, EMBED_DIM, MIN_PATCHES, MIN_PATCHES), out.shape
    assert out.dtype == jnp.float32
    print("KERNEL_OK")
</pallas_src>

<mosaic_0001>
module attributes {stable_mosaic.version = 11 : i64} {
  func.func @_vit_kernel(%arg0: i32, %arg1: memref<1x128x640xbf16, #tpu.memory_space<vmem>>, %arg2: memref<640x128xbf16, #tpu.memory_space<vmem>>, %arg3: memref<128x128xf32, #tpu.memory_space<vmem>>, %arg4: memref<3x128x384xbf16, #tpu.memory_space<vmem>>, %arg5: memref<3x1x384xf32, #tpu.memory_space<vmem>>, %arg6: memref<3x128x128xbf16, #tpu.memory_space<vmem>>, %arg7: memref<3x128x512xbf16, #tpu.memory_space<vmem>>, %arg8: memref<3x1x512xf32, #tpu.memory_space<vmem>>, %arg9: memref<3x512x128xbf16, #tpu.memory_space<vmem>>, %arg10: memref<3x8x128xf32, #tpu.memory_space<vmem>>, %arg11: memref<1x128x128xf32, #tpu.memory_space<vmem>>) attributes {dimension_semantics = [#tpu.dimension_semantics<parallel>], iteration_bounds = array<i64: 2>, scalar_prefetch = 0 : i64, scratch_operands = 0 : i64, tpu.core_type = #tpu.core_type<tc>, window_params = [{transform_indices = @transform_0, window_bounds = array<i64: 1, 128, 640>}, {pipeline_mode = #tpu.pipeline_mode<synchronous>, transform_indices = @transform_1, window_bounds = array<i64: 640, 128>}, {pipeline_mode = #tpu.pipeline_mode<synchronous>, transform_indices = @transform_2, window_bounds = array<i64: 128, 128>}, {pipeline_mode = #tpu.pipeline_mode<synchronous>, transform_indices = @transform_3, window_bounds = array<i64: 3, 128, 384>}, {pipeline_mode = #tpu.pipeline_mode<synchronous>, transform_indices = @transform_4, window_bounds = array<i64: 3, 1, 384>}, {pipeline_mode = #tpu.pipeline_mode<synchronous>, transform_indices = @transform_5, window_bounds = array<i64: 3, 128, 128>}, {pipeline_mode = #tpu.pipeline_mode<synchronous>, transform_indices = @transform_6, window_bounds = array<i64: 3, 128, 512>}, {pipeline_mode = #tpu.pipeline_mode<synchronous>, transform_indices = @transform_7, window_bounds = array<i64: 3, 1, 512>}, {pipeline_mode = #tpu.pipeline_mode<synchronous>, transform_indices = @transform_8, window_bounds = array<i64: 3, 512, 128>}, {pipeline_mode = #tpu.pipeline_mode<synchronous>, transform_indices = @transform_9, window_bounds = array<i64: 3, 8, 128>}, {transform_indices = @transform_10, window_bounds = array<i64: 1, 128, 128>}]} {
    %c0 = arith.constant 0 : index
    %c0_0 = arith.constant 0 : index
    %c0_1 = arith.constant 0 : index
    %0 = vector.load %arg1[%c0, %c0_0, %c0_1] : memref<1x128x640xbf16, #tpu.memory_space<vmem>>, vector<1x128x640xbf16>
    %1 = vector.shape_cast %0 : vector<1x128x640xbf16> to vector<128x640xbf16>
    %c0_2 = arith.constant 0 : index
    %c0_3 = arith.constant 0 : index
    %2 = vector.load %arg2[%c0_2, %c0_3] : memref<640x128xbf16, #tpu.memory_space<vmem>>, vector<640x128xbf16>
    %cst = arith.constant dense<0.000000e+00> : vector<128x128xf32>
    %3 = tpu.matmul %1, %2, %cst {dimension_numbers = #tpu.dot_dimension_numbers<[1], [0], [0], [1], [0, 0, 1, 1], [], []>} : vector<128x640xbf16>, vector<640x128xbf16>, vector<128x128xf32> -> vector<128x128xf32>
    %c0_4 = arith.constant 0 : index
    %c0_5 = arith.constant 0 : index
    %4 = vector.load %arg3[%c0_4, %c0_5] : memref<128x128xf32, #tpu.memory_space<vmem>>, vector<128x128xf32>
    %5 = arith.addf %3, %4 : vector<128x128xf32>
    %6 = tpu.iota {dimensions = array<i32: 1>} : vector<1x128xi32>
    %c65_i32 = arith.constant 65 : i32
    %7 = vector.broadcast %c65_i32 : i32 to vector<1x128xi32>
    %8 = arith.cmpi slt, %6, %7 : vector<1x128xi32>
    %cst_6 = arith.constant 0.000000e+00 : f32
    %cst_7 = arith.constant -1.000000e+30 : f32
    %9 = vector.broadcast %cst_6 : f32 to vector<1x128xf32>
    %10 = vector.broadcast %cst_7 : f32 to vector<1x128xf32>
    %11 = arith.select %8, %9, %10 : vector<1x128xi1>, vector<1x128xf32>
    %c0_i32 = arith.constant 0 : i32
    %c3_i32 = arith.constant 3 : i32
    %12 = arith.addi %c0_i32, %c3_i32 : i32
    %c1_i32 = arith.constant 1 : i32
    %13 = scf.for %arg12 = %c0_i32 to %12 step %c1_i32 iter_args(%arg13 = %5) -> (vector<128x128xf32>)  : i32 {
      %17 = arith.index_cast %arg12 : i32 to index
      %c0_12 = arith.constant 0 : index
      %c0_13 = arith.constant 0 : index
      %18 = vector.load %arg10[%17, %c0_12, %c0_13] : memref<3x8x128xf32, #tpu.memory_space<vmem>>, vector<1x8x128xf32>
      %19 = vector.shape_cast %18 : vector<1x8x128xf32> to vector<8x128xf32>
      %20 = vector.extract_strided_slice %19 {offsets = [0, 0], sizes = [1, 128], strides = [1, 1]} : vector<8x128xf32> to vector<1x128xf32>
      %21 = vector.extract_strided_slice %19 {offsets = [1, 0], sizes = [1, 128], strides = [1, 1]} : vector<8x128xf32> to vector<1x128xf32>
      %22 = vector.extract_strided_slice %19 {offsets = [2, 0], sizes = [1, 128], strides = [1, 1]} : vector<8x128xf32> to vector<1x128xf32>
      %23 = vector.extract_strided_slice %19 {offsets = [3, 0], sizes = [1, 128], strides = [1, 1]} : vector<8x128xf32> to vector<1x128xf32>
      %24 = vector.extract_strided_slice %19 {offsets = [4, 0], sizes = [1, 128], strides = [1, 1]} : vector<8x128xf32> to vector<1x128xf32>
      %25 = vector.extract_strided_slice %19 {offsets = [5, 0], sizes = [1, 128], strides = [1, 1]} : vector<8x128xf32> to vector<1x128xf32>
      %26 = vector.extract_strided_slice %19 {offsets = [6, 0], sizes = [1, 128], strides = [1, 1]} : vector<8x128xf32> to vector<1x128xf32>
      %27 = vector.extract_strided_slice %19 {offsets = [7, 0], sizes = [1, 128], strides = [1, 1]} : vector<8x128xf32> to vector<1x128xf32>
      %cst_14 = arith.constant dense<0.000000e+00> : vector<128xf32>
      %28 = vector.multi_reduction <add>, %arg13, %cst_14 [1] : vector<128x128xf32> to vector<128xf32>
      %29 = vector.shape_cast %28 : vector<128xf32> to vector<128x1xf32>
      %cst_15 = arith.constant 1.280000e+02 : f32
      %30 = vector.broadcast %cst_15 : f32 to vector<128x1xf32>
      %31 = arith.divf %29, %30 : vector<128x1xf32>
      %32 = vector.broadcast %31 : vector<128x1xf32> to vector<128x128xf32>
      %33 = arith.subf %arg13, %32 : vector<128x128xf32>
      %34 = arith.mulf %33, %33 : vector<128x128xf32>
      %cst_16 = arith.constant dense<0.000000e+00> : vector<128xf32>
      %35 = vector.multi_reduction <add>, %34, %cst_16 [1] : vector<128x128xf32> to vector<128xf32>
      %36 = vector.shape_cast %35 : vector<128xf32> to vector<128x1xf32>
      %cst_17 = arith.constant 1.280000e+02 : f32
      %37 = vector.broadcast %cst_17 : f32 to vector<128x1xf32>
      %38 = arith.divf %36, %37 : vector<128x1xf32>
      %39 = vector.broadcast %31 : vector<128x1xf32> to vector<128x128xf32>
      %40 = arith.subf %arg13, %39 : vector<128x128xf32>
      %cst_18 = arith.constant 9.99999997E-7 : f32
      %41 = vector.broadcast %cst_18 : f32 to vector<128x1xf32>
      %42 = arith.addf %38, %41 : vector<128x1xf32>
      %43 = math.rsqrt %42 : vector<128x1xf32>
      %44 = vector.broadcast %43 : vector<128x1xf32> to vector<128x128xf32>
      %45 = arith.mulf %40, %44 : vector<128x128xf32>
      %46 = vector.broadcast %20 : vector<1x128xf32> to vector<128x128xf32>
      %47 = arith.mulf %45, %46 : vector<128x128xf32>
      %48 = vector.broadcast %21 : vector<1x128xf32> to vector<128x128xf32>
      %49 = arith.addf %47, %48 : vector<128x128xf32>
      %50 = arith.truncf %49 : vector<128x128xf32> to vector<128x128xbf16>
      %51 = arith.index_cast %arg12 : i32 to index
      %c0_19 = arith.constant 0 : index
      %c0_20 = arith.constant 0 : index
      %52 = vector.load %arg4[%51, %c0_19, %c0_20] : memref<3x128x384xbf16, #tpu.memory_space<vmem>>, vector<1x128x384xbf16>
      %53 = vector.shape_cast %52 : vector<1x128x384xbf16> to vector<128x384xbf16>
      %cst_21 = arith.constant dense<0.000000e+00> : vector<128x384xf32>
      %54 = tpu.matmul %50, %53, %cst_21 {dimension_numbers = #tpu.dot_dimension_numbers<[1], [0], [0], [1], [0, 0, 1, 1], [], []>} : vector<128x128xbf16>, vector<128x384xbf16>, vector<128x384xf32> -> vector<128x384xf32>
      %55 = arith.index_cast %arg12 : i32 to index
      %c0_22 = arith.constant 0 : index
      %c0_23 = arith.constant 0 : index
      %56 = vector.load %arg5[%55, %c0_22, %c0_23] : memref<3x1x384xf32, #tpu.memory_space<vmem>>, vector<1x1x384xf32>
      %57 = vector.shape_cast %56 : vector<1x1x384xf32> to vector<1x384xf32>
      %58 = vector.broadcast %57 : vector<1x384xf32> to vector<128x384xf32>
      %59 = arith.addf %54, %58 : vector<128x384xf32>
      %60 = vector.extract_strided_slice %59 {offsets = [0, 128], sizes = [128, 128], strides = [1, 1]} : vector<128x384xf32> to vector<128x128xf32>
      %61 = tpu.transpose %60, [1, 0] : vector<128x128xf32> -> vector<128x128xf32>
      %62 = arith.index_cast %arg12 : i32 to index
      %c0_24 = arith.constant 0 : index
      %c0_25 = arith.constant 0 : index
      %63 = vector.load %arg6[%62, %c0_24, %c0_25] : memref<3x128x128xbf16, #tpu.memory_space<vmem>>, vector<1x128x128xbf16>
      %64 = vector.shape_cast %63 : vector<1x128x128xbf16> to vector<128x128xbf16>
      %cst_26 = arith.constant 0.000000e+00 : f32
      %65 = vector.broadcast %cst_26 : f32 to vector<128x128xf32>
      %66 = vector.extract_strided_slice %59 {offsets = [0, 0], sizes = [128, 32], strides = [1, 1]} : vector<128x384xf32> to vector<128x32xf32>
      %cst_27 = arith.constant 0.176776692 : f32
      %67 = vector.broadcast %cst_27 : f32 to vector<128x32xf32>
      %68 = arith.mulf %66, %67 : vector<128x32xf32>
      %69 = arith.truncf %68 : vector<128x32xf32> to vector<128x32xbf16>
      %70 = vector.extract_strided_slice %61 {offsets = [0, 0], sizes = [32, 128], strides = [1, 1]} : vector<128x128xf32> to vector<32x128xf32>
      %71 = arith.truncf %70 : vector<32x128xf32> to vector<32x128xbf16>
      %72 = vector.extract_strided_slice %59 {offsets = [0, 256], sizes = [128, 32], strides = [1, 1]} : vector<128x384xf32> to vector<128x32xf32>
      %73 = arith.truncf %72 : vector<128x32xf32> to vector<128x32xbf16>
      %cst_28 = arith.constant dense<0.000000e+00> : vector<128x128xf32>
      %74 = tpu.matmul %69, %71, %cst_28 {dimension_numbers = #tpu.dot_dimension_numbers<[1], [0], [0], [1], [0, 0, 1, 1], [], []>} : vector<128x32xbf16>, vector<32x128xbf16>, vector<128x128xf32> -> vector<128x128xf32>
      %75 = vector.broadcast %11 : vector<1x128xf32> to vector<128x128xf32>
      %76 = arith.addf %74, %75 : vector<128x128xf32>
      %cst_29 = arith.constant dense<0xFF800000> : vector<128xf32>
      %77 = vector.multi_reduction <maximumf>, %76, %cst_29 [1] : vector<128x128xf32> to vector<128xf32>
      %78 = vector.shape_cast %77 : vector<128xf32> to vector<128x1xf32>
      %79 = vector.broadcast %78 : vector<128x1xf32> to vector<128x128xf32>
      %80 = arith.subf %76, %79 : vector<128x128xf32>
      %81 = math.exp %80 : vector<128x128xf32>
      %cst_30 = arith.constant dense<0.000000e+00> : vector<128xf32>
      %82 = vector.multi_reduction <add>, %81, %cst_30 [1] : vector<128x128xf32> to vector<128xf32>
      %83 = vector.shape_cast %82 : vector<128xf32> to vector<128x1xf32>
      %84 = tpu.reciprocal %83 {approx = true} : vector<128x1xf32> -> vector<128x1xf32>
      %85 = vector.broadcast %84 : vector<128x1xf32> to vector<128x128xf32>
      %86 = arith.mulf %81, %85 : vector<128x128xf32>
      %87 = arith.truncf %86 : vector<128x128xf32> to vector<128x128xbf16>
      %cst_31 = arith.constant dense<0.000000e+00> : vector<128x32xf32>
      %88 = tpu.matmul %87, %73, %cst_31 {dimension_numbers = #tpu.dot_dimension_numbers<[1], [0], [0], [1], [0, 0, 1, 1], [], []>} : vector<128x128xbf16>, vector<128x32xbf16>, vector<128x32xf32> -> vector<128x32xf32>
      %89 = arith.truncf %88 : vector<128x32xf32> to vector<128x32xbf16>
      %90 = vector.extract_strided_slice %64 {offsets = [0, 0], sizes = [32, 128], strides = [1, 1]} : vector<128x128xbf16> to vector<32x128xbf16>
      %cst_32 = arith.constant dense<0.000000e+00> : vector<128x128xf32>
      %91 = tpu.matmul %89, %90, %cst_32 {dimension_numbers = #tpu.dot_dimension_numbers<[1], [0], [0], [1], [0, 0, 1, 1], [], []>} : vector<128x32xbf16>, vector<32x128xbf16>, vector<128x128xf32> -> vector<128x128xf32>
      %92 = arith.addf %65, %91 : vector<128x128xf32>
      %93 = vector.extract_strided_slice %59 {offsets = [0, 32], sizes = [128, 32], strides = [1, 1]} : vector<128x384xf32> to vector<128x32xf32>
      %cst_33 = arith.constant 0.176776692 : f32
      %94 = vector.broadcast %cst_33 : f32 to vector<128x32xf32>
      %95 = arith.mulf %93, %94 : vector<128x32xf32>
      %96 = arith.truncf %95 : vector<128x32xf32> to vector<128x32xbf16>
      %97 = vector.extract_strided_slice %61 {offsets = [32, 0], sizes = [32, 128], strides = [1, 1]} : vector<128x128xf32> to vector<32x128xf32>
      %98 = arith.truncf %97 : vector<32x128xf32> to vector<32x128xbf16>
      %99 = vector.extract_strided_slice %59 {offsets = [0, 288], sizes = [128, 32], strides = [1, 1]} : vector<128x384xf32> to vector<128x32xf32>
      %100 = arith.truncf %99 : vector<128x32xf32> to vector<128x32xbf16>
      %cst_34 = arith.constant dense<0.000000e+00> : vector<128x128xf32>
      %101 = tpu.matmul %96, %98, %cst_34 {dimension_numbers = #tpu.dot_dimension_numbers<[1], [0], [0], [1], [0, 0, 1, 1], [], []>} : vector<128x32xbf16>, vector<32x128xbf16>, vector<128x128xf32> -> vector<128x128xf32>
      %102 = vector.broadcast %11 : vector<1x128xf32> to vector<128x128xf32>
      %103 = arith.addf %101, %102 : vector<128x128xf32>
      %cst_35 = arith.constant dense<0xFF800000> : vector<128xf32>
      %104 = vector.multi_reduction <maximumf>, %103, %cst_35 [1] : vector<128x128xf32> to vector<128xf32>
      %105 = vector.shape_cast %104 : vector<128xf32> to vector<128x1xf32>
      %106 = vector.broadcast %105 : vector<128x1xf32> to vector<128x128xf32>
      %107 = arith.subf %103, %106 : vector<128x128xf32>
      %108 = math.exp %107 : vector<128x128xf32>
      %cst_36 = arith.constant dense<0.000000e+00> : vector<128xf32>
      %109 = vector.multi_reduction <add>, %108, %cst_36 [1] : vector<128x128xf32> to vector<128xf32>
      %110 = vector.shape_cast %109 : vector<128xf32> to vector<128x1xf32>
      %111 = tpu.reciprocal %110 {approx = true} : vector<128x1xf32> -> vector<128x1xf32>
      %112 = vector.broadcast %111 : vector<128x1xf32> to vector<128x128xf32>
      %113 = arith.mulf %108, %112 : vector<128x128xf32>
      %114 = arith.truncf %113 : vector<128x128xf32> to vector<128x128xbf16>
      %cst_37 = arith.constant dense<0.000000e+00> : vector<128x32xf32>
      %115 = tpu.matmul %114, %100, %cst_37 {dimension_numbers = #tpu.dot_dimension_numbers<[1], [0], [0], [1], [0, 0, 1, 1], [], []>} : vector<128x128xbf16>, vector<128x32xbf16>, vector<128x32xf32> -> vector<128x32xf32>
      %116 = arith.truncf %115 : vector<128x32xf32> to vector<128x32xbf16>
      %117 = vector.extract_strided_slice %64 {offsets = [32, 0], sizes = [32, 128], strides = [1, 1]} : vector<128x128xbf16> to vector<32x128xbf16>
      %cst_38 = arith.constant dense<0.000000e+00> : vector<128x128xf32>
      %118 = tpu.matmul %116, %117, %cst_38 {dimension_numbers = #tpu.dot_dimension_numbers<[1], [0], [0], [1], [0, 0, 1, 1], [], []>} : vector<128x32xbf16>, vector<32x128xbf16>, vector<128x128xf32> -> vector<128x128xf32>
      %119 = arith.addf %92, %118 : vector<128x128xf32>
      %120 = vector.extract_strided_slice %59 {offsets = [0, 64], sizes = [128, 32], strides = [1, 1]} : vector<128x384xf32> to vector<128x32xf32>
      %cst_39 = arith.constant 0.176776692 : f32
      %121 = vector.broadcast %cst_39 : f32 to vector<128x32xf32>
      %122 = arith.mulf %120, %121 : vector<128x32xf32>
      %123 = arith.truncf %122 : vector<128x32xf32> to vector<128x32xbf16>
      %124 = vector.extract_strided_slice %61 {offsets = [64, 0], sizes = [32, 128], strides = [1, 1]} : vector<128x128xf32> to vector<32x128xf32>
      %125 = arith.truncf %124 : vector<32x128xf32> to vector<32x128xbf16>
      %126 = vector.extract_strided_slice %59 {offsets = [0, 320], sizes = [128, 32], strides = [1, 1]} : vector<128x384xf32> to vector<128x32xf32>
      %127 = arith.truncf %126 : vector<128x32xf32> to vector<128x32xbf16>
      %cst_40 = arith.constant dense<0.000000e+00> : vector<128x128xf32>
      %128 = tpu.matmul %123, %125, %cst_40 {dimension_numbers = #tpu.dot_dimension_numbers<[1], [0], [0], [1], [0, 0, 1, 1], [], []>} : vector<128x32xbf16>, vector<32x128xbf16>, vector<128x128xf32> -> vector<128x128xf32>
      %129 = vector.broadcast %11 : vector<1x128xf32> to vector<128x128xf32>
      %130 = arith.addf %128, %129 : vector<128x128xf32>
      %cst_41 = arith.constant dense<0xFF800000> : vector<128xf32>
      %131 = vector.multi_reduction <maximumf>, %130, %cst_41 [1] : vector<128x128xf32> to vector<128xf32>
      %132 = vector.shape_cast %131 : vector<128xf32> to vector<128x1xf32>
      %133 = vector.broadcast %132 : vector<128x1xf32> to vector<128x128xf32>
      %134 = arith.subf %130, %133 : vector<128x128xf32>
      %135 = math.exp %134 : vector<128x128xf32>
      %cst_42 = arith.constant dense<0.000000e+00> : vector<128xf32>
      %136 = vector.multi_reduction <add>, %135, %cst_42 [1] : vector<128x128xf32> to vector<128xf32>
      %137 = vector.shape_cast %136 : vector<128xf32> to vector<128x1xf32>
      %138 = tpu.reciprocal %137 {approx = true} : vector<128x1xf32> -> vector<128x1xf32>
      %139 = vector.broadcast %138 : vector<128x1xf32> to vector<128x128xf32>
      %140 = arith.mulf %135, %139 : vector<128x128xf32>
      %141 = arith.truncf %140 : vector<128x128xf32> to vector<128x128xbf16>
      %cst_43 = arith.constant dense<0.000000e+00> : vector<128x32xf32>
      %142 = tpu.matmul %141, %127, %cst_43 {dimension_numbers = #tpu.dot_dimension_numbers<[1], [0], [0], [1], [0, 0, 1, 1], [], []>} : vector<128x128xbf16>, vector<128x32xbf16>, vector<128x32xf32> -> vector<128x32xf32>
      %143 = arith.truncf %142 : vector<128x32xf32> to vector<128x32xbf16>
      %144 = vector.extract_strided_slice %64 {offsets = [64, 0], sizes = [32, 128], strides = [1, 1]} : vector<128x128xbf16> to vector<32x128xbf16>
      %cst_44 = arith.constant dense<0.000000e+00> : vector<128x128xf32>
      %145 = tpu.matmul %143, %144, %cst_44 {dimension_numbers = #tpu.dot_dimension_numbers<[1], [0], [0], [1], [0, 0, 1, 1], [], []>} : vector<128x32xbf16>, vector<32x128xbf16>, vector<128x128xf32> -> vector<128x128xf32>
      %146 = arith.addf %119, %145 : vector<128x128xf32>
      %147 = vector.extract_strided_slice %59 {offsets = [0, 96], sizes = [128, 32], strides = [1, 1]} : vector<128x384xf32> to vector<128x32xf32>
      %cst_45 = arith.constant 0.176776692 : f32
      %148 = vector.broadcast %cst_45 : f32 to vector<128x32xf32>
      %149 = arith.mulf %147, %148 : vector<128x32xf32>
      %150 = arith.truncf %149 : vector<128x32xf32> to vector<128x32xbf16>
      %151 = vector.extract_strided_slice %61 {offsets = [96, 0], sizes = [32, 128], strides = [1, 1]} : vector<128x128xf32> to vector<32x128xf32>
      %152 = arith.truncf %151 : vector<32x128xf32> to vector<32x128xbf16>
      %153 = vector.extract_strided_slice %59 {offsets = [0, 352], sizes = [128, 32], strides = [1, 1]} : vector<128x384xf32> to vector<128x32xf32>
      %154 = arith.truncf %153 : vector<128x32xf32> to vector<128x32xbf16>
      %cst_46 = arith.constant dense<0.000000e+00> : vector<128x128xf32>
      %155 = tpu.matmul %150, %152, %cst_46 {dimension_numbers = #tpu.dot_dimension_numbers<[1], [0], [0], [1], [0, 0, 1, 1], [], []>} : vector<128x32xbf16>, vector<32x128xbf16>, vector<128x128xf32> -> vector<128x128xf32>
      %156 = vector.broadcast %11 : vector<1x128xf32> to vector<128x128xf32>
      %157 = arith.addf %155, %156 : vector<128x128xf32>
      %cst_47 = arith.constant dense<0xFF800000> : vector<128xf32>
      %158 = vector.multi_reduction <maximumf>, %157, %cst_47 [1] : vector<128x128xf32> to vector<128xf32>
      %159 = vector.shape_cast %158 : vector<128xf32> to vector<128x1xf32>
      %160 = vector.broadcast %159 : vector<128x1xf32> to vector<128x128xf32>
      %161 = arith.subf %157, %160 : vector<128x128xf32>
      %162 = math.exp %161 : vector<128x128xf32>
      %cst_48 = arith.constant dense<0.000000e+00> : vector<128xf32>
      %163 = vector.multi_reduction <add>, %162, %cst_48 [1] : vector<128x128xf32> to vector<128xf32>
      %164 = vector.shape_cast %163 : vector<128xf32> to vector<128x1xf32>
      %165 = tpu.reciprocal %164 {approx = true} : vector<128x1xf32> -> vector<128x1xf32>
      %166 = vector.broadcast %165 : vector<128x1xf32> to vector<128x128xf32>
      %167 = arith.mulf %162, %166 : vector<128x128xf32>
      %168 = arith.truncf %167 : vector<128x128xf32> to vector<128x128xbf16>
      %cst_49 = arith.constant dense<0.000000e+00> : vector<128x32xf32>
      %169 = tpu.matmul %168, %154, %cst_49 {dimension_numbers = #tpu.dot_dimension_numbers<[1], [0], [0], [1], [0, 0, 1, 1], [], []>} : vector<128x128xbf16>, vector<128x32xbf16>, vector<128x32xf32> -> vector<128x32xf32>
      %170 = arith.truncf %169 : vector<128x32xf32> to vector<128x32xbf16>
      %171 = vector.extract_strided_slice %64 {offsets = [96, 0], sizes = [32, 128], strides = [1, 1]} : vector<128x128xbf16> to vector<32x128xbf16>
      %cst_50 = arith.constant dense<0.000000e+00> : vector<128x128xf32>
      %172 = tpu.matmul %170, %171, %cst_50 {dimension_numbers = #tpu.dot_dimension_numbers<[1], [0], [0], [1], [0, 0, 1, 1], [], []>} : vector<128x32xbf16>, vector<32x128xbf16>, vector<128x128xf32> -> vector<128x128xf32>
      %173 = arith.addf %146, %172 : vector<128x128xf32>
      %174 = vector.broadcast %22 : vector<1x128xf32> to vector<128x128xf32>
      %175 = arith.addf %173, %174 : vector<128x128xf32>
      %176 = vector.broadcast %23 : vector<1x128xf32> to vector<128x128xf32>
      %177 = arith.mulf %175, %176 : vector<128x128xf32>
      %178 = arith.addf %arg13, %177 : vector<128x128xf32>
      %cst_51 = arith.constant dense<0.000000e+00> : vector<128xf32>
      %179 = vector.multi_reduction <add>, %178, %cst_51 [1] : vector<128x128xf32> to vector<128xf32>
      %180 = vector.shape_cast %179 : vector<128xf32> to vector<128x1xf32>
      %cst_52 = arith.constant 1.280000e+02 : f32
      %181 = vector.broadcast %cst_52 : f32 to vector<128x1xf32>
      %182 = arith.divf %180, %181 : vector<128x1xf32>
      %183 = vector.broadcast %182 : vector<128x1xf32> to vector<128x128xf32>
      %184 = arith.subf %178, %183 : vector<128x128xf32>
      %185 = arith.mulf %184, %184 : vector<128x128xf32>
      %cst_53 = arith.constant dense<0.000000e+00> : vector<128xf32>
      %186 = vector.multi_reduction <add>, %185, %cst_53 [1] : vector<128x128xf32> to vector<128xf32>
      %187 = vector.shape_cast %186 : vector<128xf32> to vector<128x1xf32>
      %cst_54 = arith.constant 1.280000e+02 : f32
      %188 = vector.broadcast %cst_54 : f32 to vector<128x1xf32>
      %189 = arith.divf %187, %188 : vector<128x1xf32>
      %190 = vector.broadcast %182 : vector<128x1xf32> to vector<128x128xf32>
      %191 = arith.subf %178, %190 : vector<128x128xf32>
      %cst_55 = arith.constant 9.99999997E-7 : f32
      %192 = vector.broadcast %cst_55 : f32 to vector<128x1xf32>
      %193 = arith.addf %189, %192 : vector<128x1xf32>
      %194 = math.rsqrt %193 : vector<128x1xf32>
      %195 = vector.broadcast %194 : vector<128x1xf32> to vector<128x128xf32>
      %196 = arith.mulf %191, %195 : vector<128x128xf32>
      %197 = vector.broadcast %24 : vector<1x128xf32> to vector<128x128xf32>
      %198 = arith.mulf %196, %197 : vector<128x128xf32>
      %199 = vector.broadcast %25 : vector<1x128xf32> to vector<128x128xf32>
      %200 = arith.addf %198, %199 : vector<128x128xf32>
      %201 = arith.truncf %200 : vector<128x128xf32> to vector<128x128xbf16>
      %202 = arith.index_cast %arg12 : i32 to index
      %c0_56 = arith.constant 0 : index
      %c0_57 = arith.constant 0 : index
      %203 = vector.load %arg7[%202, %c0_56, %c0_57] : memref<3x128x512xbf16, #tpu.memory_space<vmem>>, vector<1x128x512xbf16>
      %204 = vector.shape_cast %203 : vector<1x128x512xbf16> to vector<128x512xbf16>
      %cst_58 = arith.constant dense<0.000000e+00> : vector<128x512xf32>
      %205 = tpu.matmul %201, %204, %cst_58 {dimension_numbers = #tpu.dot_dimension_numbers<[1], [0], [0], [1], [0, 0, 1, 1], [], []>} : vector<128x128xbf16>, vector<128x512xbf16>, vector<128x512xf32> -> vector<128x512xf32>
      %206 = arith.index_cast %arg12 : i32 to index
      %c0_59 = arith.constant 0 : index
      %c0_60 = arith.constant 0 : index
      %207 = vector.load %arg8[%206, %c0_59, %c0_60] : memref<3x1x512xf32, #tpu.memory_space<vmem>>, vector<1x1x512xf32>
      %208 = vector.shape_cast %207 : vector<1x1x512xf32> to vector<1x512xf32>
      %209 = vector.broadcast %208 : vector<1x512xf32> to vector<128x512xf32>
      %210 = arith.addf %205, %209 : vector<128x512xf32>
      %211 = arith.mulf %210, %210 : vector<128x512xf32>
      %212 = arith.mulf %210, %211 : vector<128x512xf32>
      %cst_61 = arith.constant 4.471500e-02 : f32
      %213 = vector.broadcast %cst_61 : f32 to vector<128x512xf32>
      %214 = arith.mulf %213, %212 : vector<128x512xf32>
      %215 = arith.addf %210, %214 : vector<128x512xf32>
      %cst_62 = arith.constant 0.797884583 : f32
      %216 = vector.broadcast %cst_62 : f32 to vector<128x512xf32>
      %217 = arith.mulf %216, %215 : vector<128x512xf32>
      %218 = math.tanh %217 : vector<128x512xf32>
      %cst_63 = arith.constant 1.000000e+00 : f32
      %219 = vector.broadcast %cst_63 : f32 to vector<128x512xf32>
      %220 = arith.addf %219, %218 : vector<128x512xf32>
      %cst_64 = arith.constant 5.000000e-01 : f32
      %221 = vector.broadcast %cst_64 : f32 to vector<128x512xf32>
      %222 = arith.mulf %221, %220 : vector<128x512xf32>
      %223 = arith.mulf %210, %222 : vector<128x512xf32>
      %224 = arith.truncf %223 : vector<128x512xf32> to vector<128x512xbf16>
      %225 = arith.index_cast %arg12 : i32 to index
      %c0_65 = arith.constant 0 : index
      %c0_66 = arith.constant 0 : index
      %226 = vector.load %arg9[%225, %c0_65, %c0_66] : memref<3x512x128xbf16, #tpu.memory_space<vmem>>, vector<1x512x128xbf16>
      %227 = vector.shape_cast %226 : vector<1x512x128xbf16> to vector<512x128xbf16>
      %cst_67 = arith.constant dense<0.000000e+00> : vector<128x128xf32>
      %228 = tpu.matmul %224, %227, %cst_67 {dimension_numbers = #tpu.dot_dimension_numbers<[1], [0], [0], [1], [0, 0, 1, 1], [], []>} : vector<128x512xbf16>, vector<512x128xbf16>, vector<128x128xf32> -> vector<128x128xf32>
      %229 = vector.broadcast %26 : vector<1x128xf32> to vector<128x128xf32>
      %230 = arith.addf %228, %229 : vector<128x128xf32>
      %231 = vector.broadcast %27 : vector<1x128xf32> to vector<128x128xf32>
      %232 = arith.mulf %230, %231 : vector<128x128xf32>
      %233 = arith.addf %178, %232 : vector<128x128xf32>
      scf.yield %233 : vector<128x128xf32>
    }
    %c3_i32_8 = arith.constant 3 : i32
    %c0_9 = arith.constant 0 : index
    %c0_10 = arith.constant 0 : index
    %c0_11 = arith.constant 0 : index
    %14 = vector.load %arg11[%c0_9, %c0_10, %c0_11] : memref<1x128x128xf32, #tpu.memory_space<vmem>>, vector<1x128x128xf32>
    %15 = vector.shape_cast %14 : vector<1x128x128xf32> to vector<128x128xf32>
    %16 = vector.shape_cast %13 : vector<128x128xf32> to vector<1x128x128xf32>
    tpu.vector_store %arg11[%c0_9, %c0_10, %c0_11], %16 {strides = array<i32>} : memref<1x128x128xf32, #tpu.memory_space<vmem>>, vector<1x128x128xf32>,
    return
  }
  func.func @transform_0(%arg0: i32) -> (i32, i32, i32) {
    %c0_i32 = arith.constant 0 : i32
    %c0_i32_0 = arith.constant 0 : i32
    %c0_i32_1 = arith.constant 0 : i32
    return %arg0, %c0_i32, %c0_i32_0 : i32, i32, i32
  }
  func.func @transform_1(%arg0: i32) -> (i32, i32) {
    %c0_i32 = arith.constant 0 : i32
    %c0_i32_0 = arith.constant 0 : i32
    %c0_i32_1 = arith.constant 0 : i32
    return %c0_i32, %c0_i32_0 : i32, i32
  }
  func.func @transform_2(%arg0: i32) -> (i32, i32) {
    %c0_i32 = arith.constant 0 : i32
    %c0_i32_0 = arith.constant 0 : i32
    %c0_i32_1 = arith.constant 0 : i32
    return %c0_i32, %c0_i32_0 : i32, i32
  }
  func.func @transform_3(%arg0: i32) -> (i32, i32, i32) {
    %c0_i32 = arith.constant 0 : i32
    %c0_i32_0 = arith.constant 0 : i32
    %c0_i32_1 = arith.constant 0 : i32
    %c0_i32_2 = arith.constant 0 : i32
    return %c0_i32, %c0_i32_0, %c0_i32_1 : i32, i32, i32
  }
  func.func @transform_4(%arg0: i32) -> (i32, i32, i32) {
    %c0_i32 = arith.constant 0 : i32
    %c0_i32_0 = arith.constant 0 : i32
    %c0_i32_1 = arith.constant 0 : i32
    %c0_i32_2 = arith.constant 0 : i32
    return %c0_i32, %c0_i32_0, %c0_i32_1 : i32, i32, i32
  }
  func.func @transform_5(%arg0: i32) -> (i32, i32, i32) {
    %c0_i32 = arith.constant 0 : i32
    %c0_i32_0 = arith.constant 0 : i32
    %c0_i32_1 = arith.constant 0 : i32
    %c0_i32_2 = arith.constant 0 : i32
    return %c0_i32, %c0_i32_0, %c0_i32_1 : i32, i32, i32
  }
  func.func @transform_6(%arg0: i32) -> (i32, i32, i32) {
    %c0_i32 = arith.constant 0 : i32
    %c0_i32_0 = arith.constant 0 : i32
    %c0_i32_1 = arith.constant 0 : i32
    %c0_i32_2 = arith.constant 0 : i32
    return %c0_i32, %c0_i32_0, %c0_i32_1 : i32, i32, i32
  }
  func.func @transform_7(%arg0: i32) -> (i32, i32, i32) {
    %c0_i32 = arith.constant 0 : i32
    %c0_i32_0 = arith.constant 0 : i32
    %c0_i32_1 = arith.constant 0 : i32
    %c0_i32_2 = arith.constant 0 : i32
    return %c0_i32, %c0_i32_0, %c0_i32_1 : i32, i32, i32
  }
  func.func @transform_8(%arg0: i32) -> (i32, i32, i32) {
    %c0_i32 = arith.constant 0 : i32
    %c0_i32_0 = arith.constant 0 : i32
    %c0_i32_1 = arith.constant 0 : i32
    %c0_i32_2 = arith.constant 0 : i32
    return %c0_i32, %c0_i32_0, %c0_i32_1 : i32, i32, i32
  }
  func.func @transform_9(%arg0: i32) -> (i32, i32, i32) {
    %c0_i32 = arith.constant 0 : i32
    %c0_i32_0 = arith.constant 0 : i32
    %c0_i32_1 = arith.constant 0 : i32
    %c0_i32_2 = arith.constant 0 : i32
    return %c0_i32, %c0_i32_0, %c0_i32_1 : i32, i32, i32
  }
  func.func @transform_10(%arg0: i32) -> (i32, i32, i32) {
    %c0_i32 = arith.constant 0 : i32
    %c0_i32_0 = arith.constant 0 : i32
    %c0_i32_1 = arith.constant 0 : i32
    return %arg0, %c0_i32, %c0_i32_0 : i32, i32, i32
  }
}

</mosaic_0001>

<bundles_post_ra>
// kernel: _lambda_.1
= control target key start
LH: loop header
LB: loop body
LE: loop exit
PB: predicated region body
PF: predicated region fallthrough
CT: control target
= control target key end

     0   :  { %s8292_s13 = smov 0   ;;  %s11193_s0 = inlined_call_operand.vmem [shape: bf16[2,128,640], index: 0, kind: input, shape index: {}]   ;;  %s11194_s1 = inlined_call_operand.vmem [shape: bf16[640,128], index: 1, kind: input, shape index: {}]   ;;  %s11195_s2 = inlined_call_operand.vmem [shape: f32[128,128], index: 2, kind: input, shape index: {}]   ;;  %s11196_s3 = inlined_call_operand.vmem [shape: bf16[3,128,384], index: 3, kind: input, shape index: {}]   ;;  %s11197_s4 = inlined_call_operand.vmem [shape: f32[3,1,384], index: 4, kind: input, shape index: {}]   ;;  %s11198_s5 = inlined_call_operand.vmem [shape: bf16[3,128,128], index: 5, kind: input, shape index: {}]   ;;  %s11199_s6 = inlined_call_operand.vmem [shape: bf16[3,128,512], index: 6, kind: input, shape index: {}]   ;;  %s11200_s7 = inlined_call_operand.vmem [shape: f32[3,1,512], index: 7, kind: input, shape index: {}]   ;;  %s11201_s8 = inlined_call_operand.vmem [shape: bf16[3,512,128], index: 8, kind: input, shape index: {}]   ;;  %s11202_s9 = inlined_call_operand.vmem [shape: f32[3,8,128], index: 9, kind: input, shape index: {}]   ;;  %s11203_s10 = inlined_call_operand.vmem [shape: f32[2,128,128], index: 10, kind: output, shape index: {}]  }
   0x1 LB: > { %s6157_s14 = sadd.s32 4294967295, %s8162_s13   ;;  %p6161_p0 = scmp.ge.s32.totalorder %s8162_s13, 1  ;;  %s8162_s13 = sphi %s8292_s13, %s20_s13  }
   0x2   : > { %p312_p1 = scmp.lt.s32.totalorder %s8162_s13, 3 }
   0x4   : > { %p313_p2 = pnand %p6161_p0, %p312_p1 }
   0x6   : > { %316 = sbr.rel (%p313_p2) target bundleno = 4399 (0x112f), region = 60 }
   0xd   : > { %v7422_v0 = vld [vmem:[%s11194_s1 + $0x40] sm:$0xff]   ;;  %p350_p3 = scmp.lt.s32.totalorder %s6157_s14, 1  ;;  %v7426_v4 = vld [vmem:[%s11194_s1 + $0x48] sm:$0xff]   ;;  %v7430_v8 = vld [vmem:[%s11194_s1 + $0x50] sm:$0xff]   ;;  %s8587_s28 = smov 0  }
   0xe   : > { %v7423_v1 = vld [vmem:[%s11194_s1 + $0xc0] sm:$0xff]   ;;  %6420 = vmatprep.subr.bf16.mxu0 %v7422_v0  ;;  %v7427_v5 = vld [vmem:[%s11194_s1 + $0xc8] sm:$0xff]   ;;  %v7431_v9 = vld [vmem:[%s11194_s1 + $0xd0] sm:$0xff]  }
   0xf   : > { %v7424_v2 = vld [vmem:[%s11194_s1] sm:$0xff]   ;;  %6484 = vmatprep.subr.bf16.mxu1 %v7423_v1  ;;  %s11459_s14 = smov (!%p350_p3, %s6157_s14), 1  ;;  %v7428_v6 = vld [vmem:[%s11194_s1 + $0x8] sm:$0xff]   ;;  %v7432_v10 = vld [vmem:[%s11194_s1 + $0x10] sm:$0xff]  }
  0x10   : > { %v7425_v3 = vld [vmem:[%s11194_s1 + $0x80] sm:$0xff]   ;;  %6421 = vmatpush3.bf16.msra.mxu0 %v7424_v2  ;;  %s6415_s27 = sshll.u32 %s11459_s14, 7  ;;  %v7429_v7 = vld [vmem:[%s11194_s1 + $0x88] sm:$0xff]   ;;  %v7433_v11 = vld [vmem:[%s11194_s1 + $0x90] sm:$0xff]   ;;  %s7272_s19 = smul.u32 320, %s11459_s14 }
  0x11   : > { %6485 = vmatpush3.bf16.msra.mxu1 %v7425_v3  ;;  %6422 = vmatprep.subr.bf16.mxu0 %v7426_v4  ;;  %s8327_s12 = scalar_lea.vmem %s11203_s10, %s6415_s27  ;;  %v7434_v12 = vld [vmem:[%s11194_s1 + $0x58] sm:$0xff]   ;;  %v7438_v16 = vld [vmem:[%s11194_s1 + $0x60] sm:$0xff]   ;;  %v7442_v20 = vld [vmem:[%s11194_s1 + $0x68] sm:$0xff]  }
  0x12   : > { %6486 = vmatprep.subr.bf16.mxu1 %v7427_v5  ;;  %v7435_v13 = vld [vmem:[%s11194_s1 + $0xd8] sm:$0xff]   ;;  %v7439_v17 = vld [vmem:[%s11194_s1 + $0xe0] sm:$0xff]   ;;  %v7443_v21 = vld [vmem:[%s11194_s1 + $0xe8] sm:$0xff]   ;;  %s8402_s29 = scalar_lea.vmem %s11193_s0, %s7272_s19 }
  0x13   : > { %v7436_v14 = vld [vmem:[%s11194_s1 + $0x18] sm:$0xff]   ;;  %v7440_v18 = vld [vmem:[%s11194_s1 + $0x20] sm:$0xff]   ;;  %v7444_v22 = vld [vmem:[%s11194_s1 + $0x28] sm:$0xff]  }
  0x14   : > { %6423 = vmatpush3.bf16.msra.mxu0 %v7428_v6  ;;  %v7437_v15 = vld [vmem:[%s11194_s1 + $0x98] sm:$0xff]   ;;  %v7441_v19 = vld [vmem:[%s11194_s1 + $0xa0] sm:$0xff]   ;;  %v7445_v23 = vld [vmem:[%s11194_s1 + $0xa8] sm:$0xff]  }
  0x15   : > { %6487 = vmatpush3.bf16.msra.mxu1 %v7429_v7  ;;  %6424 = vmatprep.subr.bf16.mxu0 %v7430_v8  ;;  %v7446_v24 = vld [vmem:[%s11194_s1 + $0x70] sm:$0xff]   ;;  %v7450_v28 = vld [vmem:[%s11194_s1 + $0x78] sm:$0xff]   ;;  %v7459_v35 = vld [vmem:[%s8402_s29 + $0xc] ss:$20 sps:$4 sm:$0xff]  }
  0x16   : > { %6488 = vmatprep.subr.bf16.mxu1 %v7431_v9  ;;  %v7447_v25 = vld [vmem:[%s11194_s1 + $0xf0] sm:$0xff]   ;;  %v7451_v29 = vld [vmem:[%s11194_s1 + $0xf8] sm:$0xff]   ;;  %v7460_v36 = vld [vmem:[%s11194_s1 + $0x100] sm:$0xff]   ;;  %1082 = vmatprep.mubr.bf16.mxu1 %v7459_v35 }
  0x17   : > { %v7448_v26 = vld [vmem:[%s11194_s1 + $0x30] sm:$0xff]   ;;  %v7452_v30 = vld [vmem:[%s11194_s1 + $0x38] sm:$0xff]   ;;  %v7461_v37 = vld [vmem:[%s8402_s29 + $0x2c] ss:$20 sps:$4 sm:$0xff]  }
  0x18   : > { %6425 = vmatpush3.bf16.msra.mxu0 %v7432_v10  ;;  %v7449_v27 = vld [vmem:[%s11194_s1 + $0xb0] sm:$0xff]   ;;  %v7453_v31 = vld [vmem:[%s11194_s1 + $0xb8] sm:$0xff]   ;;  %v7467_v39 = vld [vmem:[%s11194_s1 + $0x108] sm:$0xff]  }
  0x19   : > { %6489 = vmatpush3.bf16.msra.mxu1 %v7433_v11  ;;  %6426 = vmatprep.subr.bf16.mxu0 %v7434_v12  ;;  %v7454_v32 = vld [vmem:[%s8402_s29] ss:$20 sps:$4 sm:$0xff]   ;;  %v7456_v33 = vld [vmem:[%s8402_s29 + $0x4] ss:$20 sps:$4 sm:$0xff]   ;;  %v7457_v34 = vld [vmem:[%s8402_s29 + $0x8] ss:$20 sps:$4 sm:$0xff]  }
  0x1a   : > { %6490 = vmatprep.subr.bf16.mxu1 %v7435_v13  ;;  %985 = vmatprep.mubr.bf16.mxu0 %v7456_v33  ;;  %v7463_v38 = vld [vmem:[%s8402_s29 + $0x34] ss:$20 sps:$4 sm:$0xff]   ;;  %v7466_v41 = vld [vmem:[%s8402_s29 + $0x30] ss:$20 sps:$4 sm:$0xff]   ;;  %v7481_v45 = vld [vmem:[%s11194_s1 + $0x118] sm:$0xff]  }
  0x1b   : > { %v7465_v40 = vld [vmem:[%s8402_s29 + $0x28] ss:$20 sps:$4 sm:$0xff]   ;;  %v7474_v44 = vld [vmem:[%s11194_s1 + $0x110] sm:$0xff]   ;;  %v7473_v47 = vld [vmem:[%s8402_s29 + $0x58] ss:$20 sps:$4 sm:$0xff]  }
  0x1c   : > { %6427 = vmatpush3.bf16.msra.mxu0 %v7436_v14  ;;  %v7468_v42 = vld [vmem:[%s8402_s29 + $0x54] ss:$20 sps:$4 sm:$0xff]   ;;  %v7470_v43 = vld [vmem:[%s8402_s29 + $0x5c] ss:$20 sps:$4 sm:$0xff]   ;;  %v7477_v49 = vld [vmem:[%s8402_s29 + $0x84] ss:$20 sps:$4 sm:$0xff]  }
  0x1d   : > { %6491 = vmatpush3.bf16.msra.mxu1 %v7437_v15  ;;  %6428 = vmatprep.subr.bf16.mxu0 %v7438_v16  ;;  %v7472_v46 = vld [vmem:[%s8402_s29 + $0x50] ss:$20 sps:$4 sm:$0xff]   ;;  %v7495_v51 = vld [vmem:[%s11194_s1 + $0x128] sm:$0xff]   ;;  %v7480_v53 = vld [vmem:[%s8402_s29 + $0x80] ss:$20 sps:$4 sm:$0xff]   ;;  %v11204_v16 = vlaneseq }
  0x1e   : > { %6492 = vmatprep.subr.bf16.mxu1 %v7439_v17  ;;  %v7475_v48 = vld [vmem:[%s8402_s29 + $0x7c] ss:$20 sps:$4 sm:$0xff]   ;;  %v7488_v50 = vld [vmem:[%s11194_s1 + $0x120] sm:$0xff]   ;;  %v7479_v52 = vld [vmem:[%s8402_s29 + $0x78] ss:$20 sps:$4 sm:$0xff]  }
  0x1f   : > { %v7482_v54 = vld [vmem:[%s8402_s29 + $0xa4] ss:$20 sps:$4 sm:$0xff]   ;;  %v7502_v55 = vld [vmem:[%s11194_s1 + $0x130] sm:$0xff]   ;;  %v7484_v56 = vld [vmem:[%s8402_s29 + $0xac] ss:$20 sps:$4 sm:$0xff]   ;;  %v1245_v17 = vand.u32 127, %v11204_v16 }
  0x20   : > { %6429 = vmatpush3.bf16.msra.mxu0 %v7440_v18  ;;  %v7509_v57 = vld [vmem:[%s11194_s1 + $0x138] sm:$0xff]   ;;  %v7486_v58 = vld [vmem:[%s8402_s29 + $0xa0] ss:$20 sps:$4 sm:$0xff]   ;;  %v7494_v63 = vld [vmem:[%s8402_s29 + $0xd0] ss:$20 sps:$4 sm:$0xff]  }
  0x21   : > { %6493 = vmatpush3.bf16.msra.mxu1 %v7441_v19  ;;  %6430 = vmatprep.subr.bf16.mxu0 %v7442_v20  ;;  %v7487_v59 = vld [vmem:[%s8402_s29 + $0xa8] ss:$20 sps:$4 sm:$0xff]   ;;  %v7489_v60 = vld [vmem:[%s8402_s29 + $0xcc] ss:$20 sps:$4 sm:$0xff]   ;;  %v7500_v2 = vld [vmem:[%s8402_s29 + $0xf0] ss:$20 sps:$4 sm:$0xff]  }
  0x22   : > { %6494 = vmatprep.subr.bf16.mxu1 %v7443_v21  ;;  %v7491_v61 = vld [vmem:[%s8402_s29 + $0xd4] ss:$20 sps:$4 sm:$0xff]   ;;  %v7498_v1 = vld [vmem:[%s8402_s29 + $0xfc] ss:$20 sps:$4 sm:$0xff]   ;;  %v7501_v3 = vld [vmem:[%s8402_s29 + $0xf8] ss:$20 sps:$4 sm:$0xff]  }
  0x23   : > { %v7493_v62 = vld [vmem:[%s8402_s29 + $0xc8] ss:$20 sps:$4 sm:$0xff]   ;;  %v7505_v5 = vld [vmem:[%s8402_s29 + $0x124] ss:$20 sps:$4 sm:$0xff]   ;;  %v7508_v7 = vld [vmem:[%s8402_s29 + $0x120] ss:$20 sps:$4 sm:$0xff]  }
  0x24   : > { %6431 = vmatpush3.bf16.msra.mxu0 %v7444_v22  ;;  %v7496_v0 = vld [vmem:[%s8402_s29 + $0xf4] ss:$20 sps:$4 sm:$0xff]   ;;  %v7503_v4 = vld [vmem:[%s8402_s29 + $0x11c] ss:$20 sps:$4 sm:$0xff]   ;;  %v7507_v6 = vld [vmem:[%s8402_s29 + $0x118] ss:$20 sps:$4 sm:$0xff]  }
  0x25   : > { %6495 = vmatpush3.bf16.msra.mxu1 %v7445_v23  ;;  %6432 = vmatprep.subr.bf16.mxu0 %v7446_v24  ;;  %v7510_v8 = vld [vmem:[%s8402_s29 + $0x10] ss:$20 sps:$4 sm:$0xff]   ;;  %v7512_v10 = vld [vmem:[%s8402_s29 + $0x38] ss:$20 sps:$4 sm:$0xff]   ;;  %v7514_v12 = vld [vmem:[%s8402_s29 + $0x60] ss:$20 sps:$4 sm:$0xff]  }
  0x26   : > { %6496 = vmatprep.subr.bf16.mxu1 %v7447_v25  ;;  %v7511_v9 = vld [vmem:[%s8402_s29 + $0xb0] ss:$20 sps:$4 sm:$0xff]   ;;  %v7513_v11 = vld [vmem:[%s8402_s29 + $0xd8] ss:$20 sps:$4 sm:$0xff]   ;;  %v7515_v13 = vld [vmem:[%s8402_s29 + $0x100] ss:$20 sps:$4 sm:$0xff]  }
  0x27   : > { %v7516_v14 = vld [vmem:[%s8402_s29 + $0x88] ss:$20 sps:$4 sm:$0xff]   ;;  %vm1246_vm0 = vcmp.lt.s32.totalorder %v1245_v17, 65  ;;  %v8232_v18 = vmov -1e+30   ;;  %v489_v22 = vld [vmem:[%s11195_s2] sm:$0xff] }
  0x28   : > { %6433 = vmatpush3.bf16.msra.mxu0 %v7448_v26  ;;  %v7517_v15 = vld [vmem:[%s8402_s29 + $0x128] ss:$20 sps:$4 sm:$0xff]   ;;  %v8475_v19 = vsel %vm1246_vm0, 0.0, %v8232_v18 }
  0x29   : > { %6497 = vmatpush3.bf16.msra.mxu1 %v7449_v27  ;;  %6434 = vmatprep.subr.bf16.mxu0 %v7450_v28  ;;  %11283 = vst [vmem:[#allocation2_spill] sm:$0xff] %v8475_v19 }
  0x2a   : > { %6498 = vmatprep.subr.bf16.mxu1 %v7451_v29  ;;  %v490_v29 = vld [vmem:[%s11195_s2 + $0x8] sm:$0xff] }
  0x2c   : > { %6435 = vmatpush3.bf16.msra.mxu0 %v7452_v30 }
  0x2d   : > { %6499 = vmatpush3.bf16.msra.mxu1 %v7453_v31  ;;  %6852 = vmatprep.subr.bf16.mxu0 %v7460_v36 }
  0x2e   : > { %7204 = vmatprep.subr.bf16.mxu1 %v7460_v36 }
  0x2f   : > { %986 = vmatmul.mubr.bf16.vlgmr.msra.gmra.mrb[0].mxu0 %v7454_v32 }
  0x30   : > { %1083 = vmatmul.mubr.bf16.vlgmr.msra.gmra.mrb[0].mxu1 %v7457_v34  ;;  %6853 = vmatpush3.bf16.msra.mxu0 %v7460_v36 }
  0x31   : > { %7212 = vmatpush3.bf16.msra.mxu1 %v7460_v36  ;;  %993 = vmatprep.mubr.bf16.mxu0 %v7461_v37 }
  0x32   : > { %1090 = vmatprep.mubr.bf16.mxu1 %v7463_v38  ;;  %6854 = vmatprep.subr.bf16.mxu0 %v7467_v39 }
  0x33   : > { %7205 = vmatprep.subr.bf16.mxu1 %v7467_v39 }
  0x34   : > { %6855 = vmatpush3.bf16.msra.mxu0 %v7467_v39 }
  0x35   : > { %7213 = vmatpush3.bf16.msra.mxu1 %v7467_v39  ;;  %6856 = vmatprep.subr.bf16.mxu0 %v7474_v44 }
  0x36   : > { %7206 = vmatprep.subr.bf16.mxu1 %v7474_v44 }
  0x37   : > { %994 = vmatmul.mubr.bf16.gmra.mrb[4].mxu0 %v7465_v40  ;;  %v491_v40 = vld [vmem:[%s11195_s2 + $0x10] sm:$0xff] }
  0x38   : > { %1091 = vmatmul.mubr.bf16.gmra.mrb[4].mxu1 %v7466_v41  ;;  %1001 = vmatprep.mubr.bf16.mxu0 %v7468_v42 }
  0x39   : > { %1098 = vmatprep.mubr.bf16.mxu1 %v7470_v43  ;;  %6857 = vmatpush3.bf16.msra.mxu0 %v7474_v44 }
  0x3a   : > { %7214 = vmatpush3.bf16.msra.mxu1 %v7474_v44  ;;  %6858 = vmatprep.subr.bf16.mxu0 %v7481_v45 }
  0x3b   : > { %7207 = vmatprep.subr.bf16.mxu1 %v7481_v45 }
  0x3d   : > { %6859 = vmatpush3.bf16.msra.mxu0 %v7481_v45 }
  0x3e   : > { %7215 = vmatpush3.bf16.msra.mxu1 %v7481_v45  ;;  %6860 = vmatprep.subr.bf16.mxu0 %v7488_v50 }
  0x3f   : > { %1002 = vmatmul.mubr.bf16.gmra.mrb[8].mxu0 %v7472_v46  ;;  %7208 = vmatprep.subr.bf16.mxu1 %v7488_v50 }
  0x40   : > { %1099 = vmatmul.mubr.bf16.gmra.mrb[8].mxu1 %v7473_v47  ;;  %1009 = vmatprep.mubr.bf16.mxu0 %v7475_v48  ;;  %v492_v47 = vld [vmem:[%s11195_s2 + $0x18] sm:$0xff] }
  0x41   : > { %1106 = vmatprep.mubr.bf16.mxu1 %v7477_v49  ;;  %6861 = vmatpush3.bf16.msra.mxu0 %v7488_v50 }
  0x42   : > { %7216 = vmatpush3.bf16.msra.mxu1 %v7488_v50  ;;  %6862 = vmatprep.subr.bf16.mxu0 %v7495_v51 }
  0x43   : > { %7209 = vmatprep.subr.bf16.mxu1 %v7495_v51 }
  0x45   : > { %6863 = vmatpush3.bf16.msra.mxu0 %v7495_v51 }
  0x46   : > { %7217 = vmatpush3.bf16.msra.mxu1 %v7495_v51  ;;  %6864 = vmatprep.subr.bf16.mxu0 %v7502_v55 }
  0x47   : > { %1010 = vmatmul.mubr.bf16.gmra.mrb[12].mxu0 %v7479_v52  ;;  %7210 = vmatprep.subr.bf16.mxu1 %v7502_v55 }
  0x48   : > { %1107 = vmatmul.mubr.bf16.gmra.mrb[12].mxu1 %v7480_v53  ;;  %1017 = vmatprep.mubr.bf16.mxu0 %v7482_v54 }
  0x49   : > { %1114 = vmatprep.mubr.bf16.mxu1 %v7484_v56  ;;  %6865 = vmatpush3.bf16.msra.mxu0 %v7502_v55 }
  0x4a   : > { %7218 = vmatpush3.bf16.msra.mxu1 %v7502_v55  ;;  %6866 = vmatprep.subr.bf16.mxu0 %v7509_v57 }
  0x4b   : > { %7211 = vmatprep.subr.bf16.mxu1 %v7509_v57 }
  0x4d   : > { %6867 = vmatpush3.bf16.msra.mxu0 %v7509_v57 }
  0x4e   : > { %7219 = vmatpush3.bf16.msra.mxu1 %v7509_v57 }
  0x4f   : > { %1018 = vmatmul.mubr.bf16.gmra.mrb[16].mxu0 %v7486_v58  ;;  %v493_v58 = vld [vmem:[%s11195_s2 + $0x20] sm:$0xff] }
  0x50   : > { %1115 = vmatmul.mubr.bf16.gmra.mrb[16].mxu1 %v7487_v59  ;;  %1025 = vmatprep.mubr.bf16.mxu0 %v7489_v60 }
  0x51   : > { %1122 = vmatprep.mubr.bf16.mxu1 %v7491_v61 }
  0x57   : > { %1026 = vmatmul.mubr.bf16.gmra.mrb[20].mxu0 %v7493_v62 }
  0x58   : > { %1123 = vmatmul.mubr.bf16.gmra.mrb[20].mxu1 %v7494_v63  ;;  %1033 = vmatprep.mubr.bf16.mxu0 %v7496_v0 }
  0x59   : > { %1130 = vmatprep.mubr.bf16.mxu1 %v7498_v1  ;;  %v494_v1 = vld [vmem:[%s11195_s2 + $0x28] sm:$0xff] }
  0x5f   : > { %1034 = vmatmul.mubr.bf16.gmra.mrb[24].mxu0 %v7500_v2 }
  0x60   : > { %1131 = vmatmul.mubr.bf16.gmra.mrb[24].mxu1 %v7501_v3  ;;  %1041 = vmatprep.mubr.bf16.mxu0 %v7503_v4 }
  0x61   : > { %1138 = vmatprep.mubr.bf16.mxu1 %v7505_v5 }
  0x67   : > { %1042 = vmatmul.mubr.bf16.gmra.mrb[28].mxu0 %v7507_v6 }
  0x68   : > { %1139 = vmatmul.mubr.bf16.gmra.mrb[28].mxu1 %v7508_v7  ;;  %6868 = vmatprep.mubr.bf16.mxu0 %v7510_v8 }
  0x69   : > { %6876 = vmatprep.mubr.bf16.mxu1 %v7511_v9 }
  0x6f   : > { %6869 = vmatmul.mubr.bf16.vlgmr.msra.gmra.mrb[32].mxu0 %v7512_v10 }
  0x70   : > { %6877 = vmatmul.mubr.bf16.vlgmr.msra.gmra.mrb[32].mxu1 %v7513_v11  ;;  %6872 = vmatprep.mubr.bf16.mxu0 %v7514_v12  ;;  %v495_v12 = vld [vmem:[%s11195_s2 + $0x30] sm:$0xff] }
  0x71   : > { %6880 = vmatprep.mubr.bf16.mxu1 %v7515_v13 }
  0x77   : > { %6873 = vmatmul.mubr.bf16.gmra.mrb[36].mxu0 %v7516_v14 }
  0x78   : > { %6881 = vmatmul.mubr.bf16.gmra.mrb[36].mxu1 %v7517_v15 }
 0x102   : > { %v6436_v20 = vpop.f32.mrb[0].mxu0 }
 0x103   : > { %v6500_v21 = vpop.f32.mrb[0].mxu1  ;;  %v6437_v23 = vpop.f32.mrb[1].mxu0 }
 0x104   : > { %v6438_v24 = vadd.f32 %v6437_v23, %v6436_v20  ;;  %v6501_v25 = vpop.f32.mrb[1].mxu1  ;;  %v6439_v26 = vpop.f32.mrb[2].mxu0 }
 0x105   : > { %v6502_v27 = vadd.f32 %v6501_v25, %v6500_v21  ;;  %v6503_v28 = vpop.f32.mrb[2].mxu1  ;;  %v6440_v30 = vpop.f32.mrb[3].mxu0  ;;  %v496_v21 = vld [vmem:[%s11195_s2 + $0x38] sm:$0xff] }
 0x106   : > { %v988_v31 = vadd.f32 %v6438_v24, %v489_v22  ;;  %v6441_v32 = vadd.f32 %v6440_v30, %v6439_v26  ;;  %v6504_v33 = vpop.f32.mrb[3].mxu1 }
 0x107   : > { %v6505_v34 = vadd.f32 %v6504_v33, %v6503_v28 }
 0x108   : > { %v991_v35 = vadd.f32 %v6441_v32, %v490_v29  ;;  %v8483_v36 = vadd.f32 %v6502_v27, %v988_v31  ;;  %v497_v32 = vld [vmem:[%s11195_s2 + $0x40] sm:$0xff] }
 0x10a   : > { %v6442_v37 = vpop.f32.mrb[4].mxu0  ;;  %v8485_v38 = vadd.f32 %v6505_v34, %v991_v35 }
 0x10b   : > { %v6506_v39 = vpop.f32.mrb[4].mxu1  ;;  %v6443_v41 = vpop.f32.mrb[5].mxu0 }
 0x10c   : > { %v6444_v42 = vadd.f32 %v6443_v41, %v6442_v37  ;;  %v6507_v43 = vpop.f32.mrb[5].mxu1  ;;  %v6445_v44 = vpop.f32.mrb[6].mxu0  ;;  %v498_v41 = vld [vmem:[%s11195_s2 + $0x48] sm:$0xff] }
 0x10d   : > { %v6508_v45 = vadd.f32 %v6507_v43, %v6506_v39  ;;  %v6509_v46 = vpop.f32.mrb[6].mxu1  ;;  %v6446_v48 = vpop.f32.mrb[7].mxu0 }
 0x10e   : > { %v996_v49 = vadd.f32 %v6444_v42, %v491_v40  ;;  %v6447_v50 = vadd.f32 %v6446_v48, %v6445_v44  ;;  %v6510_v51 = vpop.f32.mrb[7].mxu1 }
 0x10f   : > { %v6511_v52 = vadd.f32 %v6510_v51, %v6509_v46 }
 0x110   : > { %v999_v53 = vadd.f32 %v6447_v50, %v492_v47  ;;  %v8493_v54 = vadd.f32 %v6508_v45, %v996_v49 }
 0x112   : > { %v6448_v55 = vpop.f32.mrb[8].mxu0  ;;  %v8495_v56 = vadd.f32 %v6511_v52, %v999_v53  ;;  %v499_v52 = vld [vmem:[%s11195_s2 + $0x50] sm:$0xff] }
 0x113   : > { %v6512_v57 = vpop.f32.mrb[8].mxu1  ;;  %v6449_v59 = vpop.f32.mrb[9].mxu0 }
 0x114   : > { %v6450_v60 = vadd.f32 %v6449_v59, %v6448_v55  ;;  %v6513_v61 = vpop.f32.mrb[9].mxu1  ;;  %v6451_v62 = vpop.f32.mrb[10].mxu0 }
 0x115   : > { %v6514_v63 = vadd.f32 %v6513_v61, %v6512_v57  ;;  %v6515_v0 = vpop.f32.mrb[10].mxu1  ;;  %v6452_v2 = vpop.f32.mrb[11].mxu0  ;;  %v500_v61 = vld [vmem:[%s11195_s2 + $0x58] sm:$0xff] }
 0x116   : > { %v1004_v3 = vadd.f32 %v6450_v60, %v493_v58  ;;  %v6453_v4 = vadd.f32 %v6452_v2, %v6451_v62  ;;  %v6516_v5 = vpop.f32.mrb[11].mxu1 }
 0x117   : > { %v6517_v6 = vadd.f32 %v6516_v5, %v6515_v0 }
 0x118   : > { %v1007_v7 = vadd.f32 %v6453_v4, %v494_v1  ;;  %v8503_v8 = vadd.f32 %v6514_v63, %v1004_v3 }
 0x11a   : > { %v6454_v9 = vpop.f32.mrb[12].mxu0  ;;  %v8505_v10 = vadd.f32 %v6517_v6, %v1007_v7 }
 0x11b   : > { %v6518_v11 = vpop.f32.mrb[12].mxu1  ;;  %v6455_v13 = vpop.f32.mrb[13].mxu0 }
 0x11c   : > { %v6456_v14 = vadd.f32 %v6455_v13, %v6454_v9  ;;  %v6519_v15 = vpop.f32.mrb[13].mxu1  ;;  %v6457_v17 = vpop.f32.mrb[14].mxu0  ;;  %v501_v9 = vld [vmem:[%s11195_s2 + $0x60] sm:$0xff] }
 0x11d   : > { %v6520_v18 = vadd.f32 %v6519_v15, %v6518_v11  ;;  %v6521_v20 = vpop.f32.mrb[14].mxu1  ;;  %v6458_v22 = vpop.f32.mrb[15].mxu0 }
 0x11e   : > { %v1012_v23 = vadd.f32 %v6456_v14, %v495_v12  ;;  %v6459_v24 = vadd.f32 %v6458_v22, %v6457_v17  ;;  %v6522_v25 = vpop.f32.mrb[15].mxu1 }
 0x11f   : > { %v6523_v26 = vadd.f32 %v6522_v25, %v6521_v20 }
 0x120   : > { %v1015_v27 = vadd.f32 %v6459_v24, %v496_v21  ;;  %v8513_v28 = vadd.f32 %v6520_v18, %v1012_v23  ;;  %v502_v18 = vld [vmem:[%s11195_s2 + $0x68] sm:$0xff] }
 0x122   : > { %v6460_v29 = vpop.f32.mrb[16].mxu0  ;;  %v8515_v30 = vadd.f32 %v6523_v26, %v1015_v27 }
 0x123   : > { %v6524_v31 = vpop.f32.mrb[16].mxu1  ;;  %v6461_v33 = vpop.f32.mrb[17].mxu0 }
 0x124   : > { %v6462_v34 = vadd.f32 %v6461_v33, %v6460_v29  ;;  %v6525_v35 = vpop.f32.mrb[17].mxu1  ;;  %v6463_v37 = vpop.f32.mrb[18].mxu0 }
 0x125   : > { %v6526_v39 = vadd.f32 %v6525_v35, %v6524_v31  ;;  %v6527_v40 = vpop.f32.mrb[18].mxu1  ;;  %v6464_v42 = vpop.f32.mrb[19].mxu0 }
 0x126   : > { %v1020_v43 = vadd.f32 %v6462_v34, %v497_v32  ;;  %v6465_v44 = vadd.f32 %v6464_v42, %v6463_v37  ;;  %v6528_v45 = vpop.f32.mrb[19].mxu1  ;;  %v503_v32 = vld [vmem:[%s11195_s2 + $0x70] sm:$0xff] }
 0x127   : > { %v6529_v46 = vadd.f32 %v6528_v45, %v6527_v40 }
 0x128   : > { %v1023_v47 = vadd.f32 %v6465_v44, %v498_v41  ;;  %v8523_v48 = vadd.f32 %v6526_v39, %v1020_v43  ;;  %v504_v41 = vld [vmem:[%s11195_s2 + $0x78] sm:$0xff] }
 0x12a   : > { %v6466_v49 = vpop.f32.mrb[20].mxu0  ;;  %v8525_v50 = vadd.f32 %v6529_v46, %v1023_v47 }
 0x12b   : > { %v6530_v51 = vpop.f32.mrb[20].mxu1  ;;  %v6467_v53 = vpop.f32.mrb[21].mxu0 }
 0x12c   : > { %v6468_v55 = vadd.f32 %v6467_v53, %v6466_v49  ;;  %v6531_v57 = vpop.f32.mrb[21].mxu1  ;;  %v6469_v58 = vpop.f32.mrb[22].mxu0 }
 0x12d   : > { %v6532_v59 = vadd.f32 %v6531_v57, %v6530_v51  ;;  %v6533_v60 = vpop.f32.mrb[22].mxu1  ;;  %v6470_v62 = vpop.f32.mrb[23].mxu0 }
 0x12e   : > { %v1028_v63 = vadd.f32 %v6468_v55, %v499_v52  ;;  %v6471_v0 = vadd.f32 %v6470_v62, %v6469_v58  ;;  %v6534_v1 = vpop.f32.mrb[23].mxu1 }
 0x12f   : > { %v6535_v2 = vadd.f32 %v6534_v1, %v6533_v60 }
 0x130   : > { %v1031_v3 = vadd.f32 %v6471_v0, %v500_v61  ;;  %v1125_v4 = vadd.f32 %v6532_v59, %v1028_v63 }
 0x132   : > { %v6472_v5 = vpop.f32.mrb[24].mxu0  ;;  %v1128_v6 = vadd.f32 %v6535_v2, %v1031_v3 }
 0x133   : > { %v6536_v7 = vpop.f32.mrb[24].mxu1  ;;  %v6473_v11 = vpop.f32.mrb[25].mxu0 }
 0x134   : > { %v6474_v12 = vadd.f32 %v6473_v11, %v6472_v5  ;;  %v6537_v13 = vpop.f32.mrb[25].mxu1  ;;  %v6475_v14 = vpop.f32.mrb[26].mxu0 }
 0x135   : > { %v6538_v15 = vadd.f32 %v6537_v13, %v6536_v7  ;;  %v6539_v17 = vpop.f32.mrb[26].mxu1  ;;  %v6476_v20 = vpop.f32.mrb[27].mxu0 }
 0x136   : > { %v1036_v21 = vadd.f32 %v6474_v12, %v501_v9  ;;  %v6477_v22 = vadd.f32 %v6476_v20, %v6475_v14  ;;  %v6540_v23 = vpop.f32.mrb[27].mxu1 }
 0x137   : > { %v6541_v24 = vadd.f32 %v6540_v23, %v6539_v17 }
 0x138   : > { %v1039_v25 = vadd.f32 %v6477_v22, %v502_v18  ;;  %v1133_v26 = vadd.f32 %v6538_v15, %v1036_v21 }
 0x13a   : > { %v6478_v27 = vpop.f32.mrb[28].mxu0  ;;  %v1136_v29 = vadd.f32 %v6541_v24, %v1039_v25 }
 0x13b   : > { %v6542_v31 = vpop.f32.mrb[28].mxu1  ;;  %v6479_v33 = vpop.f32.mrb[29].mxu0 }
 0x13c   : > { %v6480_v34 = vadd.f32 %v6479_v33, %v6478_v27  ;;  %v6543_v35 = vpop.f32.mrb[29].mxu1  ;;  %v6481_v37 = vpop.f32.mrb[30].mxu0 }
 0x13d   : > { %v6544_v39 = vadd.f32 %v6543_v35, %v6542_v31  ;;  %v6545_v40 = vpop.f32.mrb[30].mxu1  ;;  %v6482_v42 = vpop.f32.mrb[31].mxu0 }
 0x13e   : > { %v1044_v43 = vadd.f32 %v6480_v34, %v503_v32  ;;  %v6483_v44 = vadd.f32 %v6482_v42, %v6481_v37  ;;  %v6546_v45 = vpop.f32.mrb[31].mxu1 }
 0x13f   : > { %v6547_v46 = vadd.f32 %v6546_v45, %v6545_v40 }
 0x140   : > { %v1047_v47 = vadd.f32 %v6483_v44, %v504_v41  ;;  %v1141_v49 = vadd.f32 %v6544_v39, %v1044_v43 }
 0x142   : > { %v6870_v51 = vpop.f32.mrb[32].mxu0  ;;  %v1144_v52 = vadd.f32 %v6547_v46, %v1047_v47 }
 0x143   : > { %v1190_v53 = vadd.f32 %v6870_v51, %v8493_v54   ;;  %v6878_v55 = vpop.f32.mrb[32].mxu1  ;;  %v1181_v57 = vpop.f32.mrb[33].mxu0 }
 0x144   : > { %v1222_v58 = vadd.f32 %v6878_v55, %v1125_v4   ;;  %v1182_v59 = vadd.f32 %v1181_v57, %v8483_v36   ;;  %v1213_v60 = vpop.f32.mrb[33].mxu1  ;;  %v6871_v61 = vpop.f32.mrb[34].mxu0 }
 0x145   : > { %v1214_v62 = vadd.f32 %v1213_v60, %v8523_v48   ;;  %v1193_v63 = vadd.f32 %v6871_v61, %v8495_v56   ;;  %v6879_v0 = vpop.f32.mrb[34].mxu1  ;;  %v1184_v1 = vpop.f32.mrb[35].mxu0 }
 0x146   : > { %v1225_v2 = vadd.f32 %v6879_v0, %v1128_v6   ;;  %v1185_v3 = vadd.f32 %v1184_v1, %v8485_v38   ;;  %v1216_v5 = vpop.f32.mrb[35].mxu1 }
 0x147   : > { %v1217_v7 = vadd.f32 %v1216_v5, %v8525_v50  }
 0x14a   : > { %v6874_v54 = vpop.f32.mrb[36].mxu0 }
 0x14b   : > { %v1206_v9 = vadd.f32 %v6874_v54, %v8513_v28   ;;  %v6882_v4 = vpop.f32.mrb[36].mxu1  ;;  %v1197_v11 = vpop.f32.mrb[37].mxu0 }
 0x14c   : > { %v1238_v36 = vadd.f32 %v6882_v4, %v1141_v49   ;;  %v1198_v12 = vadd.f32 %v1197_v11, %v8503_v8   ;;  %v1229_v13 = vpop.f32.mrb[37].mxu1  ;;  %v6875_v48 = vpop.f32.mrb[38].mxu0 }
 0x14d   : > { %v1230_v14 = vadd.f32 %v1229_v13, %v1133_v26   ;;  %v1209_v56 = vadd.f32 %v6875_v48, %v8515_v30   ;;  %v6883_v15 = vpop.f32.mrb[38].mxu1  ;;  %v1200_v6 = vpop.f32.mrb[39].mxu0 }
 0x14e   : > { %v1241_v17 = vadd.f32 %v6883_v15, %v1144_v52   ;;  %v1201_v38 = vadd.f32 %v1200_v6, %v8505_v10   ;;  %v1232_v18 = vpop.f32.mrb[39].mxu1 }
 0x14f   : > { %v1233_v50 = vadd.f32 %v1232_v18, %v1136_v29  }
 0x150 LB: >> { %v11284_v19 = vld [vmem:[#allocation2_spill] sm:$0xff]  ;;  %11285 = vst [vmem:[#allocation3_spill] sm:$0xff] %v8166_v17  ;;  %11286 = vst [vmem:[#allocation4_spill] sm:$0xff] %v8170_v36  ;;  %1273 = vadd.xlane.f32.xlu0 %v8226_v59  ;;  %1277 = vadd.xlane.f32.xlu1 %v8218_v53  ;;  %s6416_s30 = smul.u32 192, %s8230_s28  ;;  %s6245_s17 = sshll.u32 %s8230_s28, 3  ;;  %v11301_v16 = vlaneseq  ;;  %vm1975_vm1 = vcmask 261120   ;;  %v8166_v17 = vphi %v1241_v17, %v11442_v17   ;;  %s8230_s28 = sphi %s8587_s28, %s1253_s28   ;;  %v8226_v59 = vphi %v1182_v59, %v11457_v59   ;;  %v8222_v3 = vphi %v1185_v3, %v11456_v3   ;;  %v8218_v53 = vphi %v1190_v53, %v11455_v53   ;;  %v8214_v63 = vphi %v1193_v63, %v11454_v63   ;;  %v8210_v12 = vphi %v1198_v12, %v11453_v12   ;;  %v8206_v38 = vphi %v1201_v38, %v11452_v38   ;;  %v8202_v9 = vphi %v1206_v9, %v11451_v9   ;;  %v8198_v56 = vphi %v1209_v56, %v11450_v56   ;;  %v8194_v62 = vphi %v1214_v62, %v11449_v62   ;;  %v8190_v7 = vphi %v1217_v7, %v11448_v7   ;;  %v8186_v58 = vphi %v1222_v58, %v11447_v58   ;;  %v8182_v2 = vphi %v1225_v2, %v11446_v2   ;;  %v8178_v14 = vphi %v1230_v14, %v11445_v14   ;;  %v8174_v50 = vphi %v1233_v50, %v11444_v50   ;;  %v8170_v36 = vphi %v1238_v36, %v11443_v36  }
 0x151   : >> { %11287 = vst [vmem:[#allocation5_spill] sm:$0xff] %v8174_v50  ;;  %11288 = vst [vmem:[#allocation6_spill] sm:$0xff] %v8178_v14  ;;  %s8774_s19 = scalar_lea.vmem %s11202_s9, %s6245_s17  ;;  %s1533_s20 = smul.u32 3, %s8230_s28 }
 0x152   : >> { %11289 = vst [vmem:[#allocation7_spill] sm:$0xff] %v8182_v2  ;;  %11290 = vst [vmem:[#allocation8_spill] sm:$0xff] %v8186_v58  ;;  %s8660_s16 = scalar_lea.vmem %s11196_s3, %s6416_s30  ;;  %s8234_s24 = smov 96  }
 0x153   : >> { %11291 = vst [vmem:[#allocation9_spill] sm:$0xff] %v8190_v7  ;;  %11292 = vst [vmem:[#allocation10_spill] sm:$0xff] %v8194_v62  ;;  %v7518_v8 = vld [vmem:[%s8660_s16 + $0x4] ss:$12 sps:$4 sm:$0xff]   ;;  %v7520_v10 = vld [vmem:[%s8660_s16] ss:$12 sps:$4 sm:$0xff]   ;;  %s1534_s23 = scalar_lea.vmem %s11197_s4, %s1533_s20 }
 0x154   : >> { %11293 = vst [vmem:[#allocation11_spill] sm:$0xff] %v8198_v56  ;;  %11294 = vst [vmem:[#allocation12_spill] sm:$0xff] %v8202_v9  ;;  %1275 = vadd.xlane.f32.xlu0 %v8222_v3  ;;  %1279 = vadd.xlane.f32.xlu1 %v8214_v63  ;;  %v7521_v28 = vld [vmem:[%s8660_s16 + $0x1c] ss:$12 sps:$4 sm:$0xff]   ;;  %v7524_v48 = vld [vmem:[%s8660_s16 + $0x18] ss:$12 sps:$4 sm:$0xff]  }
 0x155   : >> { %11295 = vst [vmem:[#allocation13_spill] sm:$0xff] %v8206_v38  ;;  %11296 = vst [vmem:[#allocation14_spill] sm:$0xff] %v8210_v12  ;;  %1680 = vmatprep.subr.bf16.mxu0 %v7518_v8  ;;  %v7523_v30 = vld [vmem:[%s8660_s16 + $0x8] ss:$12 sps:$4 sm:$0xff]   ;;  %s6417_s25 = sshll.u32 %s8230_s28, 6  ;;  %s8235_s30 = smov 64  }
 0x156   : >> { %11297 = vst [vmem:[#allocation15_spill] sm:$0xff] %v8214_v63  ;;  %11298 = vst [vmem:[#allocation16_spill] sm:$0xff] %v8218_v53  ;;  %1681 = vmatpush1.bf16.msra.mxu0 %v7520_v10  ;;  %6884 = vmatprep.subr.bf16.mxu1 %v7523_v30  ;;  %s9249_s14 = scalar_lea.vmem %s11198_s5, %s6417_s25  ;;  %s8236_s11 = smov 32  }
 0x157   : >> { %11299 = vst [vmem:[#allocation17_spill] sm:$0xff] %v8222_v3  ;;  %11300 = vst [vmem:[#allocation18_spill] sm:$0xff] %v8226_v59  ;;  %1682 = vmatprep.subr.bf16.mxu0 %v7521_v28  ;;  %6885 = vmatpush3.bf16.msra.mxu1 %v7523_v30  ;;  %v7525_v28 = vld [vmem:[%s8660_s16 + $0x34] ss:$12 sps:$4 sm:$0xff]   ;;  %s6418_s15 = sshll.u32 %s8230_s28, 8  ;;  %s6347_s22 = sshll.u32 %s8230_s28, 2 }
 0x158   : >> { %1281 = vadd.xlane.f32.xlu0 %v8210_v12  ;;  %1283 = vadd.xlane.f32.xlu1 %v8206_v38  ;;  %v7527_v30 = vld [vmem:[%s8660_s16 + $0x20] ss:$12 sps:$4 sm:$0xff]   ;;  %s9957_s29 = scalar_lea.vmem %s11199_s6, %s6418_s15  ;;  %s9970_s21 = scalar_lea.vmem %s11201_s8, %s6418_s15 }
 0x159   : >> { %6886 = vmatprep.subr.bf16.mxu1 %v7527_v30  ;;  %s4510_s25 = scalar_lea.vmem %s11200_s7, %s6347_s22  ;;  %s1253_s28 = sadd.s32 1, %s8230_s28  }
 0x15a   : >> { %1683 = vmatpush1.bf16.msra.mxu0 %v7524_v48  ;;  %v7537_v48 = vld [vmem:[%s8660_s16 + $0x7c] ss:$12 sps:$4 sm:$0xff]   ;;  %p11112_p4 = scmp.ge.s32.totalorder %s1253_s28, 3  }
 0x15b   : >> { %1684 = vmatprep.subr.bf16.mxu0 %v7525_v28  ;;  %6887 = vmatpush3.bf16.msra.mxu1 %v7527_v30  ;;  %v7545_v28 = vld [vmem:[%s8660_s16 + $0xac] ss:$12 sps:$4 sm:$0xff]  }
 0x15c   : >> { %1285 = vadd.xlane.f32.xlu0 %v8202_v9  ;;  %1287 = vadd.xlane.f32.xlu1 %v8198_v56  ;;  %v7547_v30 = vld [vmem:[%s8660_s16 + $0x98] ss:$12 sps:$4 sm:$0xff]  }
 0x160   : >> { %1289 = vadd.xlane.f32.xlu0 %v8194_v62  ;;  %1291 = vadd.xlane.f32.xlu1 %v8190_v7 }
 0x164   : >> { %1293 = vadd.xlane.f32.xlu0 %v8186_v58  ;;  %1295 = vadd.xlane.f32.xlu1 %v8182_v2 }
 0x168   : >> { %1297 = vadd.xlane.f32.xlu0 %v8178_v14  ;;  %1299 = vadd.xlane.f32.xlu1 %v8174_v50 }
 0x16c   : >> { %1301 = vadd.xlane.f32.xlu0 %v8170_v36  ;;  %1303 = vadd.xlane.f32.xlu1 %v8166_v17 }
 0x1dd   : >> { %v1274_v20 = vpop.xlane.xlu0 %1273  ;;  %v1278_v21 = vpop.xlane.xlu1 %1277 }
 0x1de   : >> { %v1306_v22 = vmul.f32 0.0078125, %v1274_v20  ;;  %v1308_v23 = vmul.f32 0.0078125, %v1278_v21 }
 0x1e0   : >> { %v8667_v24 = vsub.f32 %v8226_v59, %v1306_v22  ;;  %v8670_v25 = vsub.f32 %v8218_v53, %v1308_v23 }
 0x1e1   : >> { %v1276_v26 = vpop.xlane.xlu0 %1275  ;;  %v1280_v27 = vpop.xlane.xlu1 %1279 }
 0x1e2   : >> { %v1307_v29 = vmul.f32 0.0078125, %v1276_v26  ;;  %v1338_v31 = vmul.f32 %v8667_v24, %v8667_v24  ;;  %v1309_v32 = vmul.f32 0.0078125, %v1280_v27  ;;  %v1340_v33 = vmul.f32 %v8670_v25, %v8670_v25  ;;  %v7528_v27 = vld [vmem:[%s8660_s16 + $0x30] ss:$12 sps:$4 sm:$0xff]  }
 0x1e3   : >> { %1685 = vmatpush1.bf16.msra.mxu0 %v7528_v27 }
 0x1e4   : >> { %1354 = vadd.xlane.f32.xlu0 %v1338_v31  ;;  %v8677_v34 = vsub.f32 %v8222_v3, %v1307_v29  ;;  %v8680_v35 = vsub.f32 %v8214_v63, %v1309_v32 }
 0x1e5   : >> { %v1282_v37 = vpop.xlane.xlu0 %1281  ;;  %v1284_v39 = vpop.xlane.xlu1 %1283 }
 0x1e6   : >> { %v1310_v40 = vmul.f32 0.0078125, %v1282_v37  ;;  %v1339_v41 = vmul.f32 %v8677_v34, %v8677_v34  ;;  %v1311_v42 = vmul.f32 0.0078125, %v1284_v39  ;;  %v1341_v44 = vmul.f32 %v8680_v35, %v8680_v35 }
 0x1e8   : >> { %1358 = vadd.xlane.f32.xlu0 %v1340_v33  ;;  %1356 = vadd.xlane.f32.xlu1 %v1339_v41  ;;  %v8685_v43 = vsub.f32 %v8210_v12, %v1310_v40  ;;  %v8690_v45 = vsub.f32 %v8206_v38, %v1311_v42  ;;  %v7529_v40 = vld [vmem:[%s8660_s16 + $0x4c] ss:$12 sps:$4 sm:$0xff]  }
 0x1e9   : >> { %v1286_v46 = vpop.xlane.xlu0 %1285  ;;  %v1288_v47 = vpop.xlane.xlu1 %1287  ;;  %v7531_v41 = vld [vmem:[%s8660_s16 + $0x38] ss:$12 sps:$4 sm:$0xff]   ;;  %1686 = vmatprep.subr.bf16.mxu0 %v7529_v40 }
 0x1ea   : >> { %v1312_v49 = vmul.f32 0.0078125, %v1286_v46  ;;  %v1342_v51 = vmul.f32 %v8685_v43, %v8685_v43  ;;  %v1313_v52 = vmul.f32 0.0078125, %v1288_v47  ;;  %v1343_v57 = vmul.f32 %v8690_v45, %v8690_v45  ;;  %v7532_v46 = vld [vmem:[%s8660_s16 + $0x48] ss:$12 sps:$4 sm:$0xff]   ;;  %6888 = vmatprep.subr.bf16.mxu1 %v7531_v41 }
 0x1eb   : >> { %1687 = vmatpush1.bf16.msra.mxu0 %v7532_v46  ;;  %6889 = vmatpush3.bf16.msra.mxu1 %v7531_v41 }
 0x1ec   : >> { %1362 = vadd.xlane.f32.xlu0 %v1342_v51  ;;  %1360 = vadd.xlane.f32.xlu1 %v1341_v44  ;;  %v8695_v55 = vsub.f32 %v8202_v9, %v1312_v49  ;;  %v8700_v60 = vsub.f32 %v8198_v56, %v1313_v52 }
 0x1ed   : >> { %v1290_v61 = vpop.xlane.xlu0 %1289  ;;  %v1292_v0 = vpop.xlane.xlu1 %1291 }
 0x1ee   : >> { %v1314_v1 = vmul.f32 0.0078125, %v1290_v61  ;;  %v1344_v5 = vmul.f32 %v8695_v55, %v8695_v55  ;;  %v1315_v54 = vmul.f32 0.0078125, %v1292_v0  ;;  %v1345_v11 = vmul.f32 %v8700_v60, %v8700_v60  ;;  %v7533_v0 = vld [vmem:[%s8660_s16 + $0x64] ss:$12 sps:$4 sm:$0xff]  }
 0x1ef   : >> { %1688 = vmatprep.subr.bf16.mxu0 %v7533_v0 }
 0x1f0   : >> { %1366 = vadd.xlane.f32.xlu0 %v1344_v5  ;;  %1364 = vadd.xlane.f32.xlu1 %v1343_v57  ;;  %v8705_v4 = vsub.f32 %v8194_v62, %v1314_v1  ;;  %v8710_v13 = vsub.f32 %v8190_v7, %v1315_v54  ;;  %v7535_v1 = vld [vmem:[%s8660_s16 + $0x50] ss:$12 sps:$4 sm:$0xff]   ;;  %v7536_v5 = vld [vmem:[%s8660_s16 + $0x60] ss:$12 sps:$4 sm:$0xff]  }
 0x1f1   : >> { %v1294_v15 = vpop.xlane.xlu0 %1293  ;;  %v1296_v6 = vpop.xlane.xlu1 %1295  ;;  %6890 = vmatprep.subr.bf16.mxu1 %v7535_v1  ;;  %1689 = vmatpush1.bf16.msra.mxu0 %v7536_v5 }
 0x1f2   : >> { %v1316_v18 = vmul.f32 0.0078125, %v1294_v15  ;;  %v1346_v8 = vmul.f32 %v8705_v4, %v8705_v4  ;;  %v1317_v10 = vmul.f32 0.0078125, %v1296_v6  ;;  %v1347_v21 = vmul.f32 %v8710_v13, %v8710_v13  ;;  %6891 = vmatpush3.bf16.msra.mxu1 %v7535_v1  ;;  %v7539_v15 = vld [vmem:[%s8660_s16 + $0x68] ss:$12 sps:$4 sm:$0xff]   ;;  %v7540_v6 = vld [vmem:[%s8660_s16 + $0x78] ss:$12 sps:$4 sm:$0xff]   ;;  %1690 = vmatprep.subr.bf16.mxu0 %v7537_v48 }
 0x1f3   : >> { %6892 = vmatprep.subr.bf16.mxu1 %v7539_v15 }
 0x1f4   : >> { %1370 = vadd.xlane.f32.xlu0 %v1346_v8  ;;  %1368 = vadd.xlane.f32.xlu1 %v1345_v11  ;;  %v8718_v20 = vsub.f32 %v8186_v58, %v1316_v18  ;;  %v8723_v22 = vsub.f32 %v8182_v2, %v1317_v10  ;;  %v7541_v18 = vld [vmem:[%s8660_s16 + $0x94] ss:$12 sps:$4 sm:$0xff]   ;;  %v7544_v10 = vld [vmem:[%s8660_s16 + $0x90] ss:$12 sps:$4 sm:$0xff]  }
 0x1f5   : >> { %v1298_v23 = vpop.xlane.xlu0 %1297  ;;  %v1300_v26 = vpop.xlane.xlu1 %1299  ;;  %1691 = vmatpush1.bf16.msra.mxu0 %v7540_v6  ;;  %v7543_v8 = vld [vmem:[%s8660_s16 + $0x80] ss:$12 sps:$4 sm:$0xff]  }
 0x1f6   : >> { %v1318_v29 = vmul.f32 0.0078125, %v1298_v23  ;;  %v1348_v31 = vmul.f32 %v8718_v20, %v8718_v20  ;;  %v1319_v32 = vmul.f32 0.0078125, %v1300_v26  ;;  %v1349_v37 = vmul.f32 %v8723_v22, %v8723_v22  ;;  %6893 = vmatpush3.bf16.msra.mxu1 %v7539_v15  ;;  %1692 = vmatprep.subr.bf16.mxu0 %v7541_v18  ;;  %v7549_v23 = vld [vmem:[%s8660_s16 + $0xb0] ss:$12 sps:$4 sm:$0xff]   ;;  %v1272_v6 = vld [vmem:[%s8774_s19] sm:$0xff] }
 0x1f7   : >> { %6894 = vmatprep.subr.bf16.mxu1 %v7543_v8  ;;  %v11205_v26 = vmov 0  }
 0x1f8   : >> { %1374 = vadd.xlane.f32.xlu0 %v1348_v31  ;;  %1372 = vadd.xlane.f32.xlu1 %v1347_v21  ;;  %v8729_v33 = vsub.f32 %v8178_v14, %v1318_v29  ;;  %v8734_v39 = vsub.f32 %v8174_v50, %v1319_v32  ;;  %v7548_v21 = vld [vmem:[%s8660_s16 + $0xa8] ss:$12 sps:$4 sm:$0xff]  }
 0x1f9   : >> { %v1302_v42 = vpop.xlane.xlu0 %1301  ;;  %v1304_v44 = vpop.xlane.xlu1 %1303  ;;  %1693 = vmatpush1.bf16.msra.mxu0 %v7544_v10  ;;  %1712 = vmatprep.mubr.bf16.mxu0 %v11205_v26 }
 0x1fa   : >> { %v1320_v47 = vmul.f32 0.0078125, %v1302_v42  ;;  %v1350_v49 = vmul.f32 %v8729_v33, %v8729_v33  ;;  %v1321_v51 = vmul.f32 0.0078125, %v1304_v44  ;;  %v1351_v57 = vmul.f32 %v8734_v39, %v8734_v39  ;;  %6895 = vmatpush3.bf16.msra.mxu1 %v7543_v8  ;;  %1694 = vmatprep.subr.bf16.mxu0 %v7545_v28 }
 0x1fb   : >> { %6896 = vmatprep.subr.bf16.mxu1 %v7547_v30 }
 0x1fc   : >> { %1378 = vadd.xlane.f32.xlu0 %v1350_v49  ;;  %1376 = vadd.xlane.f32.xlu1 %v1349_v37  ;;  %v8742_v52 = vsub.f32 %v8170_v36, %v1320_v47  ;;  %v8747_v61 = vsub.f32 %v8166_v17, %v1321_v51  ;;  %v8769_v49 = vshrl.u32 %v11301_v16, 7 }
 0x1fd   : >> { %1695 = vmatpush1.bf16.msra.mxu0 %v7548_v21 }
 0x1fe   : >> { %v1352_v54 = vmul.f32 %v8742_v52, %v8742_v52  ;;  %v1353_v11 = vmul.f32 %v8747_v61, %v8747_v61  ;;  %6897 = vmatpush3.bf16.msra.mxu1 %v7547_v30  ;;  %11302 = vst [vmem:[#allocation19_spill] sm:$0xff] %v8769_v49 }
 0x1ff   : >> { %6898 = vmatprep.subr.bf16.mxu1 %v7549_v23 }
 0x200   : >> { %1382 = vadd.xlane.f32.xlu0 %v1352_v54  ;;  %1380 = vadd.xlane.f32.xlu1 %v1351_v57 }
 0x202   : >> { %6899 = vmatpush3.bf16.msra.mxu1 %v7549_v23 }
 0x204   : >> { %1384 = vadd.xlane.f32.xlu1 %v1353_v11  ;;  %v8777_v11 = vsub.s32 0, %v8769_v49 }
 0x206   : >> { %11303 = vst [vmem:[#allocation20_spill] sm:$0xff] %v8777_v11  ;;  %v8782_v23 = vrot.slane %v1272_v6, %v8777_v11 }
 0x271   : >> { %v1355_v27 = vpop.xlane.xlu0 %1354 }
 0x272   : >> { %v1386_v29 = vmul.f32 0.0078125, %v1355_v27  ;;  %v8785_v27 = vsub.s32 1, %v8769_v49 }
 0x274   : >> { %v1402_v31 = vadd.f32 1e-06, %v1386_v29  ;;  %11304 = vst [vmem:[#allocation21_spill] sm:$0xff] %v8785_v27 }
 0x275   : >> { %v1359_v32 = vpop.xlane.xlu0 %1358  ;;  %v1357_v37 = vpop.xlane.xlu1 %1356 }
 0x276   : >> { %7638 = vrsqrt.f32 %v1402_v31  ;;  %v1388_v40 = vmul.f32 0.0078125, %v1359_v32  ;;  %v1387_v41 = vmul.f32 0.0078125, %v1357_v37 }
 0x278   : >> { %v1404_v42 = vadd.f32 1e-06, %v1388_v40  ;;  %v1403_v44 = vadd.f32 1e-06, %v1387_v41 }
 0x279   : >> { %v1363_v46 = vpop.xlane.xlu0 %1362  ;;  %v1361_v47 = vpop.xlane.xlu1 %1360 }
 0x27a   : >> { %7640 = vrsqrt.f32 %v1404_v42  ;;  %v1390_v51 = vmul.f32 0.0078125, %v1363_v46  ;;  %v1389_v57 = vmul.f32 0.0078125, %v1361_v47 }
 0x27b   : >> { %7642 = vrsqrt.f32 %v1403_v44 }
 0x27c   : >> { %v1406_v0 = vadd.f32 1e-06, %v1390_v51  ;;  %v1405_v1 = vadd.f32 1e-06, %v1389_v57 }
 0x27d   : >> { %v1367_v5 = vpop.xlane.xlu0 %1366  ;;  %v1365_v54 = vpop.xlane.xlu1 %1364 }
 0x27e   : >> { %7644 = vrsqrt.f32 %v1406_v0  ;;  %v1392_v48 = vmul.f32 0.0078125, %v1367_v5  ;;  %v1391_v15 = vmul.f32 0.0078125, %v1365_v54 }
 0x27f   : >> { %7646 = vrsqrt.f32 %v1405_v1 }
 0x280   : >> { %v7639_v18 = vpop.eup %7638  ;;  %v1408_v8 = vadd.f32 1e-06, %v1392_v48  ;;  %v1407_v10 = vadd.f32 1e-06, %v1391_v15 }
 0x281   : >> { %v1371_v28 = vpop.xlane.xlu0 %1370  ;;  %v1369_v30 = vpop.xlane.xlu1 %1368  ;;  %v1434_v21 = vmul.f32 %v7639_v18, %v8667_v24  ;;  %v8789_v24 = vrot.slane %v1272_v6, %v8785_v27 }
 0x282   : >> { %7648 = vrsqrt.f32 %v1408_v8  ;;  %v1394_v29 = vmul.f32 0.0078125, %v1371_v28  ;;  %v1393_v31 = vmul.f32 0.0078125, %v1369_v30 }
 0x283   : >> { %7650 = vrsqrt.f32 %v1407_v10  ;;  %v1454_v46 = vmul.f32 %v8782_v23, %v1434_v21 }
 0x284   : >> { %v7641_v32 = vpop.eup %7640  ;;  %v1410_v37 = vadd.f32 1e-06, %v1394_v29  ;;  %v1409_v40 = vadd.f32 1e-06, %v1393_v31 }
 0x285   : >> { %v7643_v41 = vpop.eup %7642  ;;  %v1375_v42 = vpop.xlane.xlu0 %1374  ;;  %v1436_v0 = vmul.f32 %v7641_v32, %v8670_v25  ;;  %v1474_v10 = vadd.f32 %v8789_v24, %v1454_v46 }
 0x286   : >> { %v1373_v44 = vpop.xlane.xlu1 %1372  ;;  %7652 = vrsqrt.f32 %v1410_v37  ;;  %v1396_v47 = vmul.f32 0.0078125, %v1375_v42  ;;  %v1435_v57 = vmul.f32 %v7643_v41, %v8677_v34 }
 0x287   : >> { %v1395_v51 = vmul.f32 0.0078125, %v1373_v44  ;;  %7654 = vrsqrt.f32 %v1409_v40  ;;  %v1456_v21 = vmul.f32 %v8782_v23, %v1436_v0 }
 0x288   : >> { %v7645_v1 = vpop.eup %7644  ;;  %v1412_v5 = vadd.f32 1e-06, %v1396_v47  ;;  %v1455_v48 = vmul.f32 %v8782_v23, %v1435_v57 }
 0x289   : >> { %v1411_v54 = vadd.f32 1e-06, %v1395_v51  ;;  %v7647_v15 = vpop.eup %7646  ;;  %v1379_v18 = vpop.xlane.xlu0 %1378  ;;  %v1438_v6 = vmul.f32 %v7645_v1, %v8685_v43  ;;  %v1476_v57 = vadd.f32 %v8789_v24, %v1456_v21 }
 0x28a   : >> { %v1377_v8 = vpop.xlane.xlu1 %1376  ;;  %7656 = vrsqrt.f32 %v1412_v5  ;;  %v1398_v28 = vmul.f32 0.0078125, %v1379_v18  ;;  %v1475_v34 = vadd.f32 %v8789_v24, %v1455_v48  ;;  %v1437_v25 = vmul.f32 %v7647_v15, %v8680_v35 }
 0x28b   : >> { %v1397_v30 = vmul.f32 0.0078125, %v1377_v8  ;;  %7658 = vrsqrt.f32 %v1411_v54  ;;  %v1458_v43 = vmul.f32 %v8782_v23, %v1438_v6 }
 0x28c   : >> { %v7649_v29 = vpop.eup %7648  ;;  %v1414_v31 = vadd.f32 1e-06, %v1398_v28  ;;  %v1490_v37 = vpack.c.bf16 %v1475_v34, %v1474_v10  ;;  %v1457_v44 = vmul.f32 %v8782_v23, %v1437_v25 }
 0x28d   : >> { %v1413_v32 = vadd.f32 1e-06, %v1397_v30  ;;  %v7651_v40 = vpop.eup %7650  ;;  %v1383_v41 = vpop.xlane.xlu0 %1382  ;;  %v1440_v46 = vmul.f32 %v7649_v29, %v8695_v55  ;;  %v1478_v8 = vadd.f32 %v8789_v24, %v1458_v43 }
 0x28e   : >> { %v1381_v42 = vpop.xlane.xlu1 %1380  ;;  %7660 = vrsqrt.f32 %v1414_v31  ;;  %v1400_v47 = vmul.f32 0.0078125, %v1383_v41  ;;  %1713 = vmatmul.mubr.bf16.vlgmr.msra.gmra.mrb[0].mxu0 %v1490_v37  ;;  %6900 = vmatprep.mubr.bf16.mxu1 %v1490_v37  ;;  %v1439_v51 = vmul.f32 %v7651_v40, %v8690_v45  ;;  %v1477_v0 = vadd.f32 %v8789_v24, %v1457_v44 }
 0x28f   : >> { %v1399_v35 = vmul.f32 0.0078125, %v1381_v42  ;;  %7662 = vrsqrt.f32 %v1413_v32  ;;  %1722 = vmatprep.mubr.bf16.mxu0 %v11205_v26  ;;  %v1460_v10 = vmul.f32 %v8782_v23, %v1440_v46 }
 0x290   : >> { %v7653_v1 = vpop.eup %7652  ;;  %v1416_v5 = vadd.f32 1e-06, %v1400_v47  ;;  %v1459_v48 = vmul.f32 %v8782_v23, %v1439_v51  ;;  %v1491_v15 = vpack.c.bf16 %v1477_v0, %v1476_v57 }
 0x291   : >> { %v1415_v54 = vadd.f32 1e-06, %v1399_v35  ;;  %v7655_v55 = vpop.eup %7654  ;;  %v1442_v45 = vmul.f32 %v7653_v1, %v8705_v4  ;;  %v1480_v32 = vadd.f32 %v8789_v24, %v1460_v10 }
 0x292   : >> { %v1385_v18 = vpop.xlane.xlu1 %1384  ;;  %7664 = vrsqrt.f32 %v1416_v5  ;;  %v1479_v28 = vadd.f32 %v8789_v24, %v1459_v48  ;;  %v1441_v30 = vmul.f32 %v7655_v55, %v8700_v60  ;;  %6901 = vmatmul.mubr.bf16.vlgmr.msra.gmra.mrb[0].mxu1 %v1491_v15 }
 0x293   : >> { %v1401_v6 = vmul.f32 0.0078125, %v1385_v18  ;;  %7666 = vrsqrt.f32 %v1415_v54  ;;  %v1462_v60 = vmul.f32 %v8782_v23, %v1442_v45 }
 0x294   : >> { %v7657_v34 = vpop.eup %7656  ;;  %v1492_v21 = vpack.c.bf16 %v1479_v28, %v1478_v8  ;;  %v1461_v29 = vmul.f32 %v8782_v23, %v1441_v30 }
 0x295   : >> { %v1417_v25 = vadd.f32 1e-06, %v1401_v6  ;;  %v7659_v31 = vpop.eup %7658  ;;  %v1444_v37 = vmul.f32 %v7657_v34, %v8718_v20  ;;  %v1482_v20 = vadd.f32 %v8789_v24, %v1462_v60 }
 0x296   : >> { %1723 = vmatmul.mubr.bf16.gmra.mrb[4].mxu0 %v1491_v15  ;;  %6904 = vmatprep.mubr.bf16.mxu1 %v1492_v21  ;;  %v1481_v4 = vadd.f32 %v8789_v24, %v1461_v29  ;;  %v1443_v40 = vmul.f32 %v7659_v31, %v8710_v13 }
 0x297   : >> { %7668 = vrsqrt.f32 %v1417_v25  ;;  %1732 = vmatprep.mubr.bf16.mxu0 %v11205_v26  ;;  %v1464_v46 = vmul.f32 %v8782_v23, %v1444_v37 }
 0x298   : >> { %v7661_v41 = vpop.eup %7660  ;;  %v1493_v42 = vpack.c.bf16 %v1481_v4, %v1480_v32  ;;  %v1463_v44 = vmul.f32 %v8782_v23, %v1443_v40 }
 0x299   : >> { %v7663_v43 = vpop.eup %7662  ;;  %v1446_v51 = vmul.f32 %v7661_v41, %v8729_v33  ;;  %v1484_v5 = vadd.f32 %v8789_v24, %v1464_v46 }
 0x29a   : >> { %v1483_v47 = vadd.f32 %v8789_v24, %v1463_v44  ;;  %v1445_v35 = vmul.f32 %v7663_v43, %v8723_v22  ;;  %6905 = vmatmul.mubr.bf16.gmra.mrb[4].mxu1 %v1493_v42 }
 0x29b   : >> { %v1466_v22 = vmul.f32 %v8782_v23, %v1446_v51 }
 0x29c   : >> { %v7665_v13 = vpop.eup %7664  ;;  %v1494_v57 = vpack.c.bf16 %v1483_v47, %v1482_v20  ;;  %v1465_v0 = vmul.f32 %v8782_v23, %v1445_v35 }
 0x29d   : >> { %v7667_v1 = vpop.eup %7666  ;;  %v1448_v54 = vmul.f32 %v7665_v13, %v8742_v52  ;;  %v1486_v52 = vadd.f32 %v8789_v24, %v1466_v22 }
 0x29e   : >> { %1733 = vmatmul.mubr.bf16.gmra.mrb[8].mxu0 %v1492_v21  ;;  %6908 = vmatprep.mubr.bf16.mxu1 %v1494_v57  ;;  %v1485_v48 = vadd.f32 %v8789_v24, %v1465_v0  ;;  %v1447_v55 = vmul.f32 %v7667_v1, %v8734_v39  ;;  %v8855_v21 = vsub.s32 2, %v8769_v49 }
 0x29f   : >> { %1742 = vmatprep.mubr.bf16.mxu0 %v11205_v26  ;;  %v1468_v10 = vmul.f32 %v8782_v23, %v1448_v54 }
 0x2a0   : >> { %v1495_v15 = vpack.c.bf16 %v1485_v48, %v1484_v5  ;;  %v1467_v18 = vmul.f32 %v8782_v23, %v1447_v55  ;;  %11305 = vst [vmem:[#allocation22_spill] sm:$0xff] %v8855_v21 }
 0x2a1   : >> { %v7669_v33 = vpop.eup %7668  ;;  %v1488_v28 = vadd.f32 %v8789_v24, %v1468_v10 }
 0x2a2   : >> { %v1449_v8 = vmul.f32 %v7669_v33, %v8747_v61  ;;  %v1487_v45 = vadd.f32 %v8789_v24, %v1467_v18  ;;  %6909 = vmatmul.mubr.bf16.gmra.mrb[8].mxu1 %v1495_v15  ;;  %v1535_v61 = vld [vmem:[%s1534_s23] sm:$0x7] }
 0x2a3   : >> { %v8861_v60 = vrot.slane %v1535_v61, %v8855_v21 }
 0x2a4   : >> { %v1469_v6 = vmul.f32 %v8782_v23, %v1449_v8  ;;  %v1496_v39 = vpack.c.bf16 %v1487_v45, %v1486_v52  ;;  %v8849_v23 = vrot.slane %v1535_v61, %v8777_v11 }
 0x2a6   : >> { %v1489_v30 = vadd.f32 %v8789_v24, %v1469_v6  ;;  %1743 = vmatmul.mubr.bf16.gmra.mrb[12].mxu0 %v1493_v42  ;;  %6912 = vmatprep.mubr.bf16.mxu1 %v1496_v39  ;;  %v8852_v24 = vrot.slane %v1535_v61, %v8785_v27 }
 0x2a7   : >> { %1752 = vmatprep.mubr.bf16.mxu0 %v11205_v26 }
 0x2a8   : >> { %v1497_v34 = vpack.c.bf16 %v1489_v30, %v1488_v28 }
 0x2aa   : >> { %6913 = vmatmul.mubr.bf16.gmra.mrb[12].mxu1 %v1497_v34 }
 0x2ae   : >> { %1753 = vmatmul.mubr.bf16.gmra.mrb[16].mxu0 %v1494_v57 }
 0x2af   : >> { %1762 = vmatprep.mubr.bf16.mxu0 %v11205_v26 }
 0x2b6   : >> { %1763 = vmatmul.mubr.bf16.gmra.mrb[20].mxu0 %v1495_v15 }
 0x2b7   : >> { %1772 = vmatprep.mubr.bf16.mxu0 %v11205_v26 }
 0x2be   : >> { %1773 = vmatmul.mubr.bf16.gmra.mrb[24].mxu0 %v1496_v39 }
 0x2bf   : >> { %1782 = vmatprep.mubr.bf16.mxu0 %v11205_v26 }
 0x2c6   : >> { %1783 = vmatmul.mubr.bf16.gmra.mrb[28].mxu0 %v1497_v34 }
 0x361   : >> { %v1714_v25 = vpop.f32.mrb[0].mxu0 }
 0x362   : >> { %v1715_v29 = vadd.f32 %v1714_v25, %v8849_v23  ;;  %v1716_v31 = vpop.f32.mrb[1].mxu0 }
 0x363   : >> { %v1717_v32 = vadd.f32 %v1716_v31, %v8852_v24  ;;  %v1718_v37 = vpop.f32.mrb[2].mxu0 }
 0x364   : >> { %v1719_v4 = vadd.f32 %v1718_v37, %v8849_v23  ;;  %v1720_v40 = vpop.f32.mrb[3].mxu0  ;;  %v1941_v41 = vmul.f32 0.17677669, %v1715_v29 }
 0x365   : >> { %1890 = vxpose.xlu0.b32.start [1/16] %v1717_v32, 128  ;;  %v6902_v44 = vpop.f32.mrb[0].mxu1  ;;  %v1721_v43 = vadd.f32 %v1720_v40, %v8852_v24 }
 0x366   : >> { %v1942_v42 = vmul.f32 0.17677669, %v1719_v4  ;;  %v1827_v46 = vpop.f32.mrb[1].mxu1  ;;  %v1836_v35 = vadd.f32 %v6902_v44, %v8861_v60 }
 0x367   : >> { %v6903_v47 = vpop.f32.mrb[2].mxu1  ;;  %v1828_v0 = vadd.f32 %v1827_v46, %v8861_v60 }
 0x368   : >> { %v8864_v20 = vpack.c.bf16 %v1942_v42, %v1941_v41  ;;  %v1839_v51 = vadd.f32 %v6903_v47, %v8861_v60  ;;  %v1830_v13 = vpop.f32.mrb[3].mxu1 }
 0x369   : >> { %1891 = vxpose.xlu0.b32.cont [2/16] %v1721_v43, 128  ;;  %v1724_v57 = vpop.f32.mrb[4].mxu0  ;;  %v1831_v1 = vadd.f32 %v1830_v13, %v8861_v60 }
 0x36a   : >> { %v1725_v5 = vadd.f32 %v1724_v57, %v8849_v23  ;;  %2364 = vrot.lane.b32.xlu1 %v8864_v20, %s8234_s24  ;;  %v1726_v54 = vpop.f32.mrb[5].mxu0  ;;  %6920 = vmatprep.mubr.msk.bf16.mxu1 %vm1975_vm1, %v8864_v20  ;;  %v8875_v48 = vpack.c.bf16 %v1839_v51, %v1836_v35 }
 0x36b   : >> { %v1727_v55 = vadd.f32 %v1726_v54, %v8852_v24  ;;  %v1728_v22 = vpop.f32.mrb[6].mxu0  ;;  %v8878_v33 = vpack.c.bf16 %v1831_v1, %v1828_v0 }
 0x36c   : >> { %11306 = vst [vmem:[#allocation23_spill] sm:$0xff] %v8875_v48  ;;  %v1729_v15 = vadd.f32 %v1728_v22, %v8849_v23  ;;  %v1730_v18 = vpop.f32.mrb[7].mxu0  ;;  %v1943_v8 = vmul.f32 0.17677669, %v1725_v5 }
 0x36d   : >> { %11307 = vst [vmem:[#allocation24_spill] sm:$0xff] %v8878_v33  ;;  %1892 = vxpose.xlu0.b32.cont [3/16] %v1727_v55, 128  ;;  %6936 = vmatprep.subr.bf16.mxu0 %v8878_v33  ;;  %v6906_v52 = vpop.f32.mrb[4].mxu1  ;;  %v1731_v45 = vadd.f32 %v1730_v18, %v8852_v24 }
 0x36e   : >> { %v1944_v10 = vmul.f32 0.17677669, %v1729_v15  ;;  %v1843_v6 = vpop.f32.mrb[5].mxu1  ;;  %6937 = vmatpush3.bf16.msra.mxu0 %v8878_v33  ;;  %v1852_v30 = vadd.f32 %v6906_v52, %v8861_v60 }
 0x36f   : >> { %v6907_v28 = vpop.f32.mrb[6].mxu1  ;;  %6938 = vmatprep.subr.bf16.mxu0 %v8875_v48  ;;  %v1844_v29 = vadd.f32 %v1843_v6, %v8861_v60 }
 0x370   : >> { %v8884_v39 = vpack.c.bf16 %v1944_v10, %v1943_v8  ;;  %v1855_v34 = vadd.f32 %v6907_v28, %v8861_v60  ;;  %v1846_v61 = vpop.f32.mrb[7].mxu1 }
 0x371   : >> { %1893 = vxpose.xlu0.b32.cont [4/16] %v1731_v45, 128  ;;  %v1734_v25 = vpop.f32.mrb[8].mxu0  ;;  %v1847_v31 = vadd.f32 %v1846_v61, %v8861_v60 }
 0x372   : >> { %v1735_v32 = vadd.f32 %v1734_v25, %v8849_v23  ;;  %2366 = vrot.lane.b32.xlu1 %v8884_v39, %s8234_s24  ;;  %v1736_v37 = vpop.f32.mrb[9].mxu0  ;;  %v8894_v4 = vpack.c.bf16 %v1855_v34, %v1852_v30  ;;  %6939 = vmatpush3.bf16.msra.mxu0 %v8875_v48 }
 0x373   : >> { %v1737_v40 = vadd.f32 %v1736_v37, %v8852_v24  ;;  %v1738_v41 = vpop.f32.mrb[10].mxu0  ;;  %v8898_v42 = vpack.c.bf16 %v1847_v31, %v1844_v29 }
 0x374   : >> { %11308 = vst [vmem:[#allocation25_spill] sm:$0xff] %v8894_v4  ;;  %v1739_v44 = vadd.f32 %v1738_v41, %v8849_v23  ;;  %v1740_v43 = vpop.f32.mrb[11].mxu0  ;;  %v1945_v46 = vmul.f32 0.17677669, %v1735_v32 }
 0x375   : >> { %11309 = vst [vmem:[#allocation26_spill] sm:$0xff] %v8898_v42  ;;  %1894 = vxpose.xlu0.b32.cont [5/16] %v1737_v40, 128  ;;  %v6910_v35 = vpop.f32.mrb[8].mxu1  ;;  %6940 = vmatprep.subr.bf16.mxu0 %v8898_v42  ;;  %v1741_v51 = vadd.f32 %v1740_v43, %v8852_v24 }
 0x376   : >> { %v1946_v47 = vmul.f32 0.17677669, %v1739_v44  ;;  %v1859_v13 = vpop.f32.mrb[9].mxu1  ;;  %6941 = vmatpush3.bf16.msra.mxu0 %v8898_v42  ;;  %v1868_v1 = vadd.f32 %v6910_v35, %v8861_v60 }
 0x377   : >> { %v6911_v0 = vpop.f32.mrb[10].mxu1  ;;  %6942 = vmatprep.subr.bf16.mxu0 %v8894_v4  ;;  %v1860_v22 = vadd.f32 %v1859_v13, %v8861_v60 }
 0x378   : >> { %v8904_v57 = vpack.c.bf16 %v1946_v47, %v1945_v46  ;;  %v1871_v5 = vadd.f32 %v6911_v0, %v8861_v60  ;;  %v1862_v54 = vpop.f32.mrb[11].mxu1 }
 0x379   : >> { %1895 = vxpose.xlu0.b32.cont [6/16] %v1741_v51, 128  ;;  %v1744_v55 = vpop.f32.mrb[12].mxu0  ;;  %v1863_v15 = vadd.f32 %v1862_v54, %v8861_v60 }
 0x37a   : >> { %v1745_v18 = vadd.f32 %v1744_v55, %v8849_v23  ;;  %2368 = vrot.lane.b32.xlu1 %v8904_v57, %s8234_s24  ;;  %v1746_v8 = vpop.f32.mrb[13].mxu0  ;;  %v8914_v10 = vpack.c.bf16 %v1871_v5, %v1868_v1  ;;  %6943 = vmatpush3.bf16.msra.mxu0 %v8894_v4 }
 0x37b   : >> { %v1747_v52 = vadd.f32 %v1746_v8, %v8852_v24  ;;  %v1748_v45 = vpop.f32.mrb[14].mxu0  ;;  %v8918_v6 = vpack.c.bf16 %v1863_v15, %v1860_v22 }
 0x37c   : >> { %11310 = vst [vmem:[#allocation27_spill] sm:$0xff] %v8914_v10  ;;  %v1749_v28 = vadd.f32 %v1748_v45, %v8849_v23  ;;  %v1750_v30 = vpop.f32.mrb[15].mxu0  ;;  %v1947_v34 = vmul.f32 0.17677669, %v1745_v18 }
 0x37d   : >> { %11311 = vst [vmem:[#allocation28_spill] sm:$0xff] %v8918_v6  ;;  %1896 = vxpose.xlu0.b32.cont [7/16] %v1747_v52, 128  ;;  %v6914_v25 = vpop.f32.mrb[12].mxu1  ;;  %6944 = vmatprep.subr.bf16.mxu0 %v8918_v6  ;;  %v1751_v29 = vadd.f32 %v1750_v30, %v8852_v24 }
 0x37e   : >> { %v1948_v61 = vmul.f32 0.17677669, %v1749_v28  ;;  %v1875_v31 = vpop.f32.mrb[13].mxu1  ;;  %6945 = vmatpush3.bf16.msra.mxu0 %v8918_v6  ;;  %v1884_v40 = vadd.f32 %v6914_v25, %v8861_v60 }
 0x37f   : >> { %v6915_v37 = vpop.f32.mrb[14].mxu1  ;;  %6946 = vmatprep.subr.bf16.mxu0 %v8914_v10  ;;  %v1876_v46 = vadd.f32 %v1875_v31, %v8861_v60 }
 0x380   : >> { %v8924_v32 = vpack.c.bf16 %v1948_v61, %v1947_v34  ;;  %v1887_v41 = vadd.f32 %v6915_v37, %v8861_v60  ;;  %v1878_v44 = vpop.f32.mrb[15].mxu1 }
 0x381   : >> { %1897 = vxpose.xlu0.b32.cont [8/16] %v1751_v29, 128  ;;  %v1754_v43 = vpop.f32.mrb[16].mxu0  ;;  %v1879_v47 = vadd.f32 %v1878_v44, %v8861_v60 }
 0x382   : >> { %v1755_v35 = vadd.f32 %v1754_v43, %v8849_v23  ;;  %2370 = vrot.lane.b32.xlu1 %v8924_v32, %s8234_s24  ;;  %v1756_v51 = vpop.f32.mrb[17].mxu0  ;;  %v8934_v13 = vpack.c.bf16 %v1887_v41, %v1884_v40  ;;  %6947 = vmatpush3.bf16.msra.mxu0 %v8914_v10 }
 0x383   : >> { %v1757_v0 = vadd.f32 %v1756_v51, %v8852_v24  ;;  %v1758_v1 = vpop.f32.mrb[18].mxu0  ;;  %v8938_v5 = vpack.c.bf16 %v1879_v47, %v1876_v46 }
 0x384   : >> { %11312 = vst [vmem:[#allocation29_spill] sm:$0xff] %v8934_v13  ;;  %v1759_v54 = vadd.f32 %v1758_v1, %v8849_v23  ;;  %v1760_v55 = vpop.f32.mrb[19].mxu0  ;;  %v1949_v60 = vmul.f32 0.17677669, %v1755_v35 }
 0x385   : >> { %11313 = vst [vmem:[#allocation30_spill] sm:$0xff] %v8938_v5  ;;  %1898 = vxpose.xlu0.b32.cont [9/16] %v1757_v0, 128  ;;  %6948 = vmatprep.subr.bf16.mxu0 %v8938_v5  ;;  %v1761_v15 = vadd.f32 %v1760_v55, %v8852_v24 }
 0x386   : >> { %v1950_v22 = vmul.f32 0.17677669, %v1759_v54  ;;  %6949 = vmatpush3.bf16.msra.mxu0 %v8938_v5 }
 0x387   : >> { %6950 = vmatprep.subr.bf16.mxu0 %v8934_v13 }
 0x388   : >> { %v8944_v18 = vpack.c.bf16 %v1950_v22, %v1949_v60 }
 0x389   : >> { %1899 = vxpose.xlu0.b32.cont [10/16] %v1761_v15, 128  ;;  %v1764_v8 = vpop.f32.mrb[20].mxu0 }
 0x38a   : >> { %v1765_v52 = vadd.f32 %v1764_v8, %v8849_v23  ;;  %2372 = vrot.lane.b32.xlu1 %v8944_v18, %s8234_s24  ;;  %v1766_v45 = vpop.f32.mrb[21].mxu0  ;;  %6951 = vmatpush3.bf16.msra.mxu0 %v8934_v13 }
 0x38b   : >> { %v1767_v28 = vadd.f32 %v1766_v45, %v8852_v24  ;;  %v1768_v30 = vpop.f32.mrb[22].mxu0 }
 0x38c   : >> { %v1769_v34 = vadd.f32 %v1768_v30, %v8849_v23  ;;  %v1770_v61 = vpop.f32.mrb[23].mxu0  ;;  %v1951_v25 = vmul.f32 0.17677669, %v1765_v52 }
 0x38d   : >> { %1900 = vxpose.xlu0.b32.cont [11/16] %v1767_v28, 128  ;;  %v1771_v31 = vadd.f32 %v1770_v61, %v8852_v24 }
 0x38e   : >> { %v1952_v29 = vmul.f32 0.17677669, %v1769_v34 }
 0x390   : >> { %v8954_v37 = vpack.c.bf16 %v1952_v29, %v1951_v25 }
 0x391   : >> { %1901 = vxpose.xlu0.b32.cont [12/16] %v1771_v31, 128  ;;  %v1774_v40 = vpop.f32.mrb[24].mxu0 }
 0x392   : >> { %v1775_v41 = vadd.f32 %v1774_v40, %v8849_v23  ;;  %2374 = vrot.lane.b32.xlu1 %v8954_v37, %s8234_s24  ;;  %v1776_v44 = vpop.f32.mrb[25].mxu0 }
 0x393   : >> { %v1777_v43 = vadd.f32 %v1776_v44, %v8852_v24  ;;  %v1778_v46 = vpop.f32.mrb[26].mxu0 }
 0x394   : >> { %v1779_v47 = vadd.f32 %v1778_v46, %v8849_v23  ;;  %v1780_v35 = vpop.f32.mrb[27].mxu0  ;;  %v1953_v51 = vmul.f32 0.17677669, %v1775_v41 }
 0x395   : >> { %1902 = vxpose.xlu0.b32.cont [13/16] %v1777_v43, 128  ;;  %v1781_v1 = vadd.f32 %v1780_v35, %v8852_v24 }
 0x396   : >> { %v1954_v0 = vmul.f32 0.17677669, %v1779_v47 }
 0x398   : >> { %v8962_v54 = vpack.c.bf16 %v1954_v0, %v1953_v51 }
 0x399   : >> { %1903 = vxpose.xlu0.b32.cont [14/16] %v1781_v1, 128  ;;  %v1784_v55 = vpop.f32.mrb[28].mxu0 }
 0x39a   : >> { %v1785_v60 = vadd.f32 %v1784_v55, %v8849_v23  ;;  %2376 = vrot.lane.b32.xlu1 %v8962_v54, %s8234_s24  ;;  %v1786_v22 = vpop.f32.mrb[29].mxu0 }
 0x39b   : >> { %v1787_v15 = vadd.f32 %v1786_v22, %v8852_v24  ;;  %v1788_v8 = vpop.f32.mrb[30].mxu0 }
 0x39c   : >> { %v1789_v52 = vadd.f32 %v1788_v8, %v8849_v23  ;;  %v1790_v45 = vpop.f32.mrb[31].mxu0  ;;  %v1955_v28 = vmul.f32 0.17677669, %v1785_v60 }
 0x39d   : >> { %1904 = vxpose.xlu0.b32.cont [15/16] %v1787_v15, 128  ;;  %v1791_v34 = vadd.f32 %v1790_v45, %v8852_v24 }
 0x39e   : >> { %v1956_v30 = vmul.f32 0.17677669, %v1789_v52  ;;  %2663 = vrot.lane.b32.xlu1 %v8875_v48, %s8234_s24 }
 0x3a0   : >> { %v8972_v61 = vpack.c.bf16 %v1956_v30, %v1955_v28 }
 0x3a1   : >> { %1905 = vxpose.xlu0.b32.end [16/16] %v1791_v34, 128 }
 0x3a2   : >> { %11314 = vst [vmem:[#allocation31_spill] sm:$0xff] %v8972_v61  ;;  %2378 = vrot.lane.b32.xlu1 %v8972_v61, %s8234_s24 }
 0x3ca   : >> { %2661 = vrot.lane.b32.xlu0 %v8878_v33, %s8234_s24 }
 0x3ce   : >> { %2665 = vrot.lane.b32.xlu0 %v8898_v42, %s8234_s24 }
 0x3dc   : >> { %v2365_v51 = vpop.permute.xlu1 %2364 }
 0x3e4   : >> { %v2367_v1 = vpop.permute.xlu1 %2366 }
 0x3e5   : >> { %v1906_v23 = vpop.trf.xlu0 }
 0x3e9   : >> { %v1907_v25 = vpop.trf.xlu0 }
 0x3ea   : >> { %v1965_v29 = vpack.c.bf16 %v1907_v25, %v1906_v23 }
 0x3ec   : >> { %6916 = vmatprep.subr.bf16.mxu1 %v1965_v29  ;;  %v2369_v60 = vpop.permute.xlu1 %2368 }
 0x3ed   : >> { %6917 = vmatpush3.bf16.msra.mxu1 %v1965_v29  ;;  %v1908_v31 = vpop.trf.xlu0 }
 0x3f1   : >> { %v1909_v40 = vpop.trf.xlu0 }
 0x3f2   : >> { %v1966_v24 = vpack.c.bf16 %v1909_v40, %v1908_v31 }
 0x3f4   : >> { %6918 = vmatprep.subr.bf16.mxu1 %v1966_v24  ;;  %v2371_v22 = vpop.permute.xlu1 %2370 }
 0x3f5   : >> { %6919 = vmatpush3.bf16.msra.mxu1 %v1966_v24  ;;  %v1910_v41 = vpop.trf.xlu0 }
 0x3f8   : >> { %6921 = vmatmul.mubr.msk.bf16.vlgmr.msra.gmra.mrb[16].mxu1 %vm1975_vm1, %v8884_v39 }
 0x3f9   : >> { %6924 = vmatprep.mubr.msk.bf16.mxu1 %vm1975_vm1, %v8904_v57  ;;  %v1911_v44 = vpop.trf.xlu0 }
 0x3fa   : >> { %v2354_v43 = vpack.c.bf16 %v1911_v44, %v1910_v41 }
 0x3fc   : >> { %6968 = vmatprep.subr.bf16.mxu1 %v2354_v43  ;;  %v2373_v8 = vpop.permute.xlu1 %2372 }
 0x3fd   : >> { %v1912_v46 = vpop.trf.xlu0  ;;  %6969 = vmatpush3.bf16.msra.mxu1 %v2354_v43 }
 0x400   : >> { %6925 = vmatmul.mubr.msk.bf16.gmra.mrb[20].mxu1 %vm1975_vm1, %v8924_v32 }
 0x401   : >> { %6928 = vmatprep.mubr.msk.bf16.mxu1 %vm1975_vm1, %v8944_v18  ;;  %v1913_v47 = vpop.trf.xlu0 }
 0x402   : >> { %v2355_v35 = vpack.c.bf16 %v1913_v47, %v1912_v46 }
 0x404   : >> { %6970 = vmatprep.subr.bf16.mxu1 %v2355_v35  ;;  %v2375_v45 = vpop.permute.xlu1 %2374 }
 0x405   : >> { %6971 = vmatpush3.bf16.msra.mxu1 %v2355_v35  ;;  %v8992_v0 = vpop.trf.xlu0 }
 0x408   : >> { %6929 = vmatmul.mubr.msk.bf16.gmra.mrb[24].mxu1 %vm1975_vm1, %v8954_v37 }
 0x409   : >> { %6932 = vmatprep.mubr.msk.bf16.mxu1 %vm1975_vm1, %v8962_v54  ;;  %v8997_v55 = vpop.trf.xlu0 }
 0x40c   : >> { %v2377_v28 = vpop.permute.xlu1 %2376 }
 0x40d   : >> { %v9000_v15 = vpop.trf.xlu0 }
 0x40e   : >> { %11315 = vst [vmem:[#allocation32_spill] sm:$0xff] %v9000_v15 }
 0x410   : >> { %6933 = vmatmul.mubr.msk.bf16.gmra.mrb[28].mxu1 %vm1975_vm1, %v8972_v61  ;;  %v9010_v34 = vpop.permute.xlu1 %2663 }
 0x411   : >> { %6972 = vmatprep.mubr.msk.bf16.mxu1 %vm1975_vm1, %v2365_v51  ;;  %v9003_v52 = vpop.trf.xlu0 }
 0x412   : >> { %11316 = vst [vmem:[#allocation33_spill] sm:$0xff] %v9003_v52 }
 0x414   : >> { %v2379_v25 = vpop.permute.xlu1 %2378 }
 0x415   : >> { %v9007_v30 = vpop.trf.xlu0 }
 0x416   : >> { %11317 = vst [vmem:[#allocation34_spill] sm:$0xff] %v9007_v30 }
 0x418   : >> { %6973 = vmatmul.mubr.msk.bf16.vlgmr.msra.gmra.mrb[32].mxu1 %vm1975_vm1, %v2367_v1 }
 0x419   : >> { %6976 = vmatprep.mubr.msk.bf16.mxu1 %vm1975_vm1, %v2369_v60  ;;  %v9013_v23 = vpop.trf.xlu0 }
 0x41a   : >> { %11318 = vst [vmem:[#allocation35_spill] sm:$0xff] %v9013_v23 }
 0x41d   : >> { %v9016_v29 = vpop.trf.xlu0 }
 0x41e   : >> { %11319 = vst [vmem:[#allocation36_spill] sm:$0xff] %v9016_v29 }
 0x420   : >> { %6977 = vmatmul.mubr.msk.bf16.gmra.mrb[36].mxu1 %vm1975_vm1, %v2371_v22 }
 0x421   : >> { %6980 = vmatprep.mubr.msk.bf16.mxu1 %vm1975_vm1, %v2373_v8  ;;  %v9018_v31 = vpop.trf.xlu0 }
 0x422   : >> { %11320 = vst [vmem:[#allocation37_spill] sm:$0xff] %v9018_v31 }
 0x428   : >> { %6981 = vmatmul.mubr.msk.bf16.gmra.mrb[40].mxu1 %vm1975_vm1, %v2375_v45 }
 0x429   : >> { %6984 = vmatprep.mubr.msk.bf16.mxu1 %vm1975_vm1, %v2377_v28 }
 0x430   : >> { %6985 = vmatmul.mubr.msk.bf16.gmra.mrb[44].mxu1 %vm1975_vm1, %v2379_v25 }
 0x43c   : >> { %v9020_v40 = vpop.permute.xlu0 %2661 }
 0x43d   : >> { %6988 = vmatprep.subr.bf16.mxu0 %v9020_v40 }
 0x440   : >> { %v9143_v29 = vpop.permute.xlu0 %2665 }
 0x4cb   : >> { %v6922_v24 = vpop.f32.mrb[16].mxu1 }
 0x4cc   : >> { %v9024_v41 = vadd.f32 %v6922_v24, %v11284_v19  ;;  %v2034_v44 = vpop.f32.mrb[17].mxu1 }
 0x4cd   : >> { %v6923_v43 = vpop.f32.mrb[18].mxu1  ;;  %v9028_v47 = vadd.f32 %v2034_v44, %v11284_v19 }
 0x4ce   : >> { %v2037_v46 = vpop.f32.mrb[19].mxu1  ;;  %2101 = vmax.xlane.f32.xlu1 %v9024_v41  ;;  %v9032_v51 = vadd.f32 %v6923_v43, %v11284_v19 }
 0x4cf   : >> { %v9039_v45 = vadd.f32 %v2037_v46, %v11284_v19 }
 0x4d2   : >> { %2097 = vmax.xlane.f32.xlu1 %v9028_v47 }
 0x4d3   : >> { %v6926_v35 = vpop.f32.mrb[20].mxu1 }
 0x4d4   : >> { %v2050_v1 = vpop.f32.mrb[21].mxu1  ;;  %v9044_v25 = vadd.f32 %v6926_v35, %v11284_v19 }
 0x4d5   : >> { %v6927_v60 = vpop.f32.mrb[22].mxu1 }
 0x4d6   : >> { %v9035_v22 = vadd.f32 %v6927_v60, %v11284_v19  ;;  %v2053_v8 = vpop.f32.mrb[23].mxu1  ;;  %2103 = vmax.xlane.f32.xlu1 %v9032_v51  ;;  %v9048_v60 = vadd.f32 %v2050_v1, %v11284_v19 }
 0x4d7   : >> { %v9052_v16 = vadd.f32 %v2053_v8, %v11284_v19 }
 0x4d8   : >> { %2111 = vmax.xlane.f32.xlu0 %v9035_v22 }
 0x4da   : >> { %2099 = vmax.xlane.f32.xlu1 %v9039_v45 }
 0x4db   : >> { %v6930_v28 = vpop.f32.mrb[24].mxu1 }
 0x4dc   : >> { %v2066_v24 = vpop.f32.mrb[25].mxu1  ;;  %v9056_v11 = vadd.f32 %v6930_v28, %v11284_v19 }
 0x4dd   : >> { %v6931_v44 = vpop.f32.mrb[26].mxu1  ;;  %v9060_v1 = vadd.f32 %v2066_v24, %v11284_v19 }
 0x4de   : >> { %v2069_v43 = vpop.f32.mrb[27].mxu1  ;;  %2109 = vmax.xlane.f32.xlu1 %v9044_v25  ;;  %v9066_v14 = vadd.f32 %v6931_v44, %v11284_v19 }
 0x4df   : >> { %v9070_v2 = vadd.f32 %v2069_v43, %v11284_v19 }
 0x4e2   : >> { %2105 = vmax.xlane.f32.xlu1 %v9048_v60 }
 0x4e3   : >> { %v6934_v46 = vpop.f32.mrb[28].mxu1 }
 0x4e4   : >> { %v2082_v26 = vpop.f32.mrb[29].mxu1  ;;  %v9074_v62 = vadd.f32 %v6934_v46, %v11284_v19 }
 0x4e5   : >> { %v6935_v27 = vpop.f32.mrb[30].mxu1  ;;  %v9080_v44 = vadd.f32 %v2082_v26, %v11284_v19 }
 0x4e6   : >> { %2107 = vmax.xlane.f32.xlu1 %v9052_v16  ;;  %v2085_v35 = vpop.f32.mrb[31].mxu1  ;;  %v9090_v12 = vadd.f32 %v6935_v27, %v11284_v19 }
 0x4e7   : >> { %v9096_v63 = vadd.f32 %v2085_v35, %v11284_v19 }
 0x4ea   : >> { %2117 = vmax.xlane.f32.xlu1 %v9056_v11 }
 0x4eb   : >> { %v6974_v17 = vpop.f32.mrb[32].mxu1 }
 0x4ec   : >> { %v2438_v36 = vpop.f32.mrb[33].mxu1  ;;  %v9106_v59 = vadd.f32 %v6974_v17, %v11284_v19 }
 0x4ed   : >> { %v6975_v50 = vpop.f32.mrb[34].mxu1  ;;  %v9113_v21 = vadd.f32 %v2438_v36, %v11284_v19 }
 0x4ee   : >> { %2667 = vrot.lane.b32.xlu0 %v8894_v4, %s8234_s24  ;;  %2113 = vmax.xlane.f32.xlu1 %v9060_v1  ;;  %v2441_v8 = vpop.f32.mrb[35].mxu1  ;;  %v9121_v49 = vadd.f32 %v6975_v50, %v11284_v19 }
 0x4ef   : >> { %v9126_v17 = vadd.f32 %v2441_v8, %v11284_v19 }
 0x4f2   : >> { %2119 = vmax.xlane.f32.xlu1 %v9066_v14 }
 0x4f3   : >> { %v6978_v28 = vpop.f32.mrb[36].mxu1 }
 0x4f4   : >> { %v2454_v58 = vpop.f32.mrb[37].mxu1  ;;  %v9110_v27 = vadd.f32 %v6978_v28, %v11284_v19 }
 0x4f5   : >> { %v6979_v24 = vpop.f32.mrb[38].mxu1  ;;  %v9118_v35 = vadd.f32 %v2454_v58, %v11284_v19 }
 0x4f6   : >> { %2115 = vmax.xlane.f32.xlu1 %v9070_v2  ;;  %v2457_v7 = vpop.f32.mrb[39].mxu1  ;;  %v9130_v36 = vadd.f32 %v6979_v24, %v11284_v19 }
 0x4f7   : >> { %v9134_v58 = vadd.f32 %v2457_v7, %v11284_v19 }
 0x4fa   : >> { %2125 = vmax.xlane.f32.xlu1 %v9074_v62 }
 0x4fb   : >> { %v9077_v56 = vpop.f32.mrb[40].mxu1 }
 0x4fc   : >> { %v9082_v9 = vpop.f32.mrb[41].mxu1 }
 0x4fd   : >> { %v9084_v38 = vpop.f32.mrb[42].mxu1 }
 0x4fe   : >> { %2121 = vmax.xlane.f32.xlu1 %v9080_v44  ;;  %v9087_v43 = vpop.f32.mrb[43].mxu1 }
 0x502   : >> { %2127 = vmax.xlane.f32.xlu1 %v9090_v12 }
 0x503   : >> { %v9093_v46 = vpop.f32.mrb[44].mxu1 }
 0x504   : >> { %v9098_v26 = vpop.f32.mrb[45].mxu1 }
 0x505   : >> { %v9100_v53 = vpop.f32.mrb[46].mxu1 }
 0x506   : >> { %2123 = vmax.xlane.f32.xlu1 %v9096_v63  ;;  %v9103_v3 = vpop.f32.mrb[47].mxu1 }
 0x50a   : >> { %2505 = vmax.xlane.f32.xlu1 %v9106_v59 }
 0x50d   : >> { %2513 = vmax.xlane.f32.xlu0 %v9110_v27 }
 0x50e   : >> { %2501 = vmax.xlane.f32.xlu1 %v9113_v21 }
 0x511   : >> { %2509 = vmax.xlane.f32.xlu0 %v9118_v35 }
 0x512   : >> { %2507 = vmax.xlane.f32.xlu1 %v9121_v49 }
 0x516   : >> { %2503 = vmax.xlane.f32.xlu1 %v9126_v17 }
 0x51a   : >> { %2515 = vmax.xlane.f32.xlu1 %v9130_v36 }
 0x51e   : >> { %2511 = vmax.xlane.f32.xlu1 %v9134_v58 }
 0x527   : >> { %2671 = vrot.lane.b32.xlu0 %v8914_v10, %s8234_s24 }
 0x52f   : >> { %2669 = vrot.lane.b32.xlu1 %v8918_v6, %s8234_s24 }
 0x55b   : >> { %v2102_v50 = vpop.xlane.xlu1 %2101 }
 0x55c   : >> { %v2131_v8 = vsub.f32 %v9024_v41, %v2102_v50 }
 0x55e   : >> { %v2149_v28 = vmul.f32 1.442695, %v2131_v8 }
 0x55f   : >> { %v2098_v31 = vpop.xlane.xlu1 %2097 }
 0x560   : >> { %7670 = vpow2.f32 %v2149_v28  ;;  %v2129_v24 = vsub.f32 %v9028_v47, %v2098_v31 }
 0x562   : >> { %v2145_v7 = vmul.f32 1.442695, %v2129_v24 }
 0x563   : >> { %v2104_v23 = vpop.xlane.xlu1 %2103 }
 0x564   : >> { %7672 = vpow2.f32 %v2145_v7  ;;  %v2132_v30 = vsub.f32 %v9032_v51, %v2104_v23 }
 0x565   : >> { %v2112_v4 = vpop.xlane.xlu0 %2111 }
 0x566   : >> { %v2151_v10 = vmul.f32 1.442695, %v2132_v30  ;;  %v2136_v42 = vsub.f32 %v9035_v22, %v2112_v4 }
 0x567   : >> { %v2100_v6 = vpop.xlane.xlu1 %2099 }
 0x568   : >> { %7674 = vpow2.f32 %v2151_v10  ;;  %v2130_v41 = vsub.f32 %v9039_v45, %v2100_v6  ;;  %v2159_v28 = vmul.f32 1.442695, %v2136_v42 }
 0x56a   : >> { %v9148_v50 = vpop.eup %7670  ;;  %v2147_v8 = vmul.f32 1.442695, %v2130_v41 }
 0x56b   : >> { %2181 = vadd.xlane.f32.xlu0 %v9148_v50  ;;  %v2110_v31 = vpop.xlane.xlu1 %2109 }
 0x56c   : >> { %7676 = vpow2.f32 %v2147_v8  ;;  %v2135_v47 = vsub.f32 %v9044_v25, %v2110_v31 }
 0x56d   : >> { %7678 = vpow2.f32 %v2159_v28 }
 0x56e   : >> { %v9152_v24 = vpop.eup %7672  ;;  %v2157_v23 = vmul.f32 1.442695, %v2135_v47 }
 0x56f   : >> { %2177 = vadd.xlane.f32.xlu0 %v9152_v24  ;;  %v2106_v4 = vpop.xlane.xlu1 %2105 }
 0x570   : >> { %7680 = vpow2.f32 %v2157_v23  ;;  %v2133_v10 = vsub.f32 %v9048_v60, %v2106_v4 }
 0x572   : >> { %v9156_v6 = vpop.eup %7674  ;;  %v2153_v30 = vmul.f32 1.442695, %v2133_v10 }
 0x573   : >> { %2183 = vadd.xlane.f32.xlu1 %v9156_v6  ;;  %v2108_v42 = vpop.xlane.xlu1 %2107 }
 0x574   : >> { %7682 = vpow2.f32 %v2153_v30  ;;  %v2134_v51 = vsub.f32 %v9052_v16, %v2108_v42 }
 0x576   : >> { %v9160_v22 = vpop.eup %7676  ;;  %v2155_v45 = vmul.f32 1.442695, %v2134_v51 }
 0x577   : >> { %2179 = vadd.xlane.f32.xlu1 %v9160_v22  ;;  %v2118_v25 = vpop.xlane.xlu1 %2117  ;;  %v9164_v41 = vpop.eup %7678 }
 0x578   : >> { %7684 = vpow2.f32 %v2155_v45  ;;  %v2139_v7 = vsub.f32 %v9056_v11, %v2118_v25 }
 0x57a   : >> { %v9166_v60 = vpop.eup %7680  ;;  %v2165_v8 = vmul.f32 1.442695, %v2139_v7 }
 0x57b   : >> { %2191 = vadd.xlane.f32.xlu1 %v9164_v41  ;;  %2189 = vadd.xlane.f32.xlu0 %v9166_v60  ;;  %v2114_v28 = vpop.xlane.xlu1 %2113 }
 0x57c   : >> { %7686 = vpow2.f32 %v2165_v8  ;;  %v2137_v16 = vsub.f32 %v9060_v1, %v2114_v28 }
 0x57e   : >> { %v9171_v31 = vpop.eup %7682  ;;  %v2161_v47 = vmul.f32 1.442695, %v2137_v16 }
 0x57f   : >> { %2185 = vadd.xlane.f32.xlu0 %v9171_v31  ;;  %v2120_v23 = vpop.xlane.xlu1 %2119 }
 0x580   : >> { %7688 = vpow2.f32 %v2161_v47  ;;  %v2140_v11 = vsub.f32 %v9066_v14, %v2120_v23 }
 0x582   : >> { %v9175_v4 = vpop.eup %7684  ;;  %v2167_v10 = vmul.f32 1.442695, %v2140_v11 }
 0x583   : >> { %2187 = vadd.xlane.f32.xlu1 %v9175_v4  ;;  %v2116_v30 = vpop.xlane.xlu1 %2115 }
 0x584   : >> { %7690 = vpow2.f32 %v2167_v10  ;;  %v2138_v42 = vsub.f32 %v9070_v2, %v2116_v30 }
 0x586   : >> { %v9179_v51 = vpop.eup %7686  ;;  %v2163_v1 = vmul.f32 1.442695, %v2138_v42 }
 0x587   : >> { %2197 = vadd.xlane.f32.xlu0 %v9179_v51  ;;  %v2126_v45 = vpop.xlane.xlu1 %2125 }
 0x588   : >> { %7692 = vpow2.f32 %v2163_v1  ;;  %v2143_v25 = vsub.f32 %v9074_v62, %v2126_v45 }
 0x58a   : >> { %v9183_v7 = vpop.eup %7688  ;;  %v2173_v14 = vmul.f32 1.442695, %v2143_v25 }
 0x58b   : >> { %2193 = vadd.xlane.f32.xlu0 %v9183_v7  ;;  %v2122_v8 = vpop.xlane.xlu1 %2121 }
 0x58c   : >> { %7694 = vpow2.f32 %v2173_v14  ;;  %v2141_v28 = vsub.f32 %v9080_v44, %v2122_v8  ;;  %v9197_v44 = vpop.permute.xlu0 %2667 }
 0x58e   : >> { %v9187_v16 = vpop.eup %7690  ;;  %v2169_v2 = vmul.f32 1.442695, %v2141_v28 }
 0x58f   : >> { %2199 = vadd.xlane.f32.xlu1 %v9187_v16  ;;  %v2128_v47 = vpop.xlane.xlu1 %2127 }
 0x590   : >> { %7696 = vpow2.f32 %v2169_v2  ;;  %v2144_v23 = vsub.f32 %v9090_v12, %v2128_v47 }
 0x592   : >> { %v9191_v11 = vpop.eup %7692  ;;  %v2175_v62 = vmul.f32 1.442695, %v2144_v23 }
 0x593   : >> { %2195 = vadd.xlane.f32.xlu1 %v9191_v11  ;;  %v2124_v10 = vpop.xlane.xlu1 %2123 }
 0x594   : >> { %7698 = vpow2.f32 %v2175_v62  ;;  %v2142_v30 = vsub.f32 %v9096_v63, %v2124_v10 }
 0x596   : >> { %v9195_v42 = vpop.eup %7694  ;;  %v2171_v1 = vmul.f32 1.442695, %v2142_v30 }
 0x597   : >> { %2205 = vadd.xlane.f32.xlu0 %v9195_v42  ;;  %v2506_v45 = vpop.xlane.xlu1 %2505 }
 0x598   : >> { %7700 = vpow2.f32 %v2171_v1  ;;  %v2535_v12 = vsub.f32 %v9106_v59, %v2506_v45 }
 0x59a   : >> { %v9201_v25 = vpop.eup %7696  ;;  %v2553_v14 = vmul.f32 1.442695, %v2535_v12  ;;  %v2514_v8 = vpop.xlane.xlu0 %2513 }
 0x59b   : >> { %v2539_v28 = vsub.f32 %v9110_v27, %v2514_v8  ;;  %2201 = vadd.xlane.f32.xlu0 %v9201_v25  ;;  %v2502_v63 = vpop.xlane.xlu1 %2501 }
 0x59c   : >> { %7702 = vpow2.f32 %v2553_v14  ;;  %v2533_v2 = vsub.f32 %v9113_v21, %v2502_v63 }
 0x59d   : >> { %v2561_v47 = vmul.f32 1.442695, %v2539_v28 }
 0x59e   : >> { %v9206_v23 = vpop.eup %7698  ;;  %v2549_v62 = vmul.f32 1.442695, %v2533_v2  ;;  %v2510_v10 = vpop.xlane.xlu0 %2509 }
 0x59f   : >> { %7704 = vpow2.f32 %v2561_v47  ;;  %v2537_v59 = vsub.f32 %v9118_v35, %v2510_v10  ;;  %2207 = vadd.xlane.f32.xlu1 %v9206_v23  ;;  %v2508_v30 = vpop.xlane.xlu1 %2507 }
 0x5a0   : >> { %7706 = vpow2.f32 %v2549_v62  ;;  %v2536_v27 = vsub.f32 %v9121_v49, %v2508_v30 }
 0x5a1   : >> { %v2557_v1 = vmul.f32 1.442695, %v2537_v59 }
 0x5a2   : >> { %v9211_v45 = vpop.eup %7700  ;;  %v2555_v12 = vmul.f32 1.442695, %v2536_v27 }
 0x5a3   : >> { %7708 = vpow2.f32 %v2557_v1  ;;  %2203 = vadd.xlane.f32.xlu1 %v9211_v45  ;;  %v2504_v21 = vpop.xlane.xlu1 %2503 }
 0x5a4   : >> { %7710 = vpow2.f32 %v2555_v12  ;;  %v2534_v14 = vsub.f32 %v9126_v17, %v2504_v21  ;;  %v9257_v12 = vld [vmem:[%s9249_s14 + $0x18] sm:$0xff]   ;;  %v9263_v21 = vadd.f32 %v9087_v43, %v11284_v19  ;;  %v9282_v43 = vadd.f32 %v9098_v26, %v11284_v19 }
 0x5a6   : >> { %v9215_v8 = vpop.eup %7702  ;;  %v2551_v35 = vmul.f32 1.442695, %v2534_v14  ;;  %v9268_v14 = vadd.f32 %v9077_v56, %v11284_v19  ;;  %v9292_v56 = vadd.f32 %v9103_v3, %v11284_v19 }
 0x5a7   : >> { %2585 = vadd.xlane.f32.xlu1 %v9215_v8  ;;  %v2516_v28 = vpop.xlane.xlu1 %2515 }
 0x5a8   : >> { %7712 = vpow2.f32 %v2551_v35  ;;  %v2540_v49 = vsub.f32 %v9130_v36, %v2516_v28  ;;  %v9272_v35 = vadd.f32 %v9082_v9, %v11284_v19  ;;  %v9278_v28 = vadd.f32 %v9084_v38, %v11284_v19 }
 0x5a9   : >> { %v9219_v63 = vpop.eup %7704  ;;  %v9288_v9 = vadd.f32 %v9093_v46, %v11284_v19  ;;  %v9300_v38 = vadd.f32 %v9100_v53, %v11284_v19 }
 0x5aa   : >> { %v9221_v2 = vpop.eup %7706  ;;  %v2563_v47 = vmul.f32 1.442695, %v2540_v49  ;;  %2593 = vadd.xlane.f32.xlu0 %v9219_v63  ;;  %v9294_v49 = vpop.permute.xlu0 %2671 }
 0x5ab   : >> { %2581 = vadd.xlane.f32.xlu1 %v9221_v2  ;;  %v2512_v62 = vpop.xlane.xlu1 %2511 }
 0x5ac   : >> { %7714 = vpow2.f32 %v2563_v47  ;;  %v2538_v17 = vsub.f32 %v9134_v58, %v2512_v62  ;;  %v9252_v58 = vld [vmem:[%s9249_s14 + $0x10] sm:$0xff]  }
 0x5ad   : >> { %v9226_v10 = vpop.eup %7708  ;;  %7220 = vmatprep.subr.bf16.mxu1 %v9252_v58 }
 0x5ae   : >> { %v9228_v59 = vpop.eup %7710  ;;  %v2559_v30 = vmul.f32 1.442695, %v2538_v17  ;;  %2589 = vadd.xlane.f32.xlu0 %v9226_v10  ;;  %7222 = vmatpush3.bf16.msra.mxu1 %v9252_v58 }
 0x5af   : >> { %2587 = vadd.xlane.f32.xlu1 %v9228_v59  ;;  %7221 = vmatprep.subr.bf16.mxu1 %v9257_v12  ;;  %v2670_v47 = vpop.permute.xlu1 %2669 }
 0x5b0   : >> { %7716 = vpow2.f32 %v2559_v30 }
 0x5b2   : >> { %v9232_v36 = vpop.eup %7712  ;;  %7223 = vmatpush3.bf16.msra.mxu1 %v9257_v12 }
 0x5b3   : >> { %2583 = vadd.xlane.f32.xlu1 %v9232_v36 }
 0x5b6   : >> { %v9235_v27 = vpop.eup %7714 }
 0x5b7   : >> { %2595 = vadd.xlane.f32.xlu0 %v9235_v27 }
 0x5ba   : >> { %v9238_v1 = vpop.eup %7716 }
 0x5bb   : >> { %2591 = vadd.xlane.f32.xlu1 %v9238_v1 }
 0x5cc   : >> { %2673 = vrot.lane.b32.xlu1 %v8938_v5, %s8234_s24 }
 0x5cd   : >> { %2675 = vrot.lane.b32.xlu0 %v8934_v13, %s8234_s24 }
 0x5ec   : >> { %2519 = vmax.xlane.f32.xlu0 %v9263_v21 }
 0x5f0   : >> { %2521 = vmax.xlane.f32.xlu0 %v9268_v14  ;;  %2517 = vmax.xlane.f32.xlu1 %v9272_v35 }
 0x5f4   : >> { %2525 = vmax.xlane.f32.xlu0 %v9282_v43  ;;  %2523 = vmax.xlane.f32.xlu1 %v9278_v28 }
 0x5f8   : >> { %2529 = vmax.xlane.f32.xlu0 %v9288_v9  ;;  %2527 = vmax.xlane.f32.xlu1 %v9292_v56  ;;  %v2182_v26 = vpop.xlane.xlu0 %2181 }
 0x5fc   : >> { %2531 = vmax.xlane.f32.xlu1 %v9300_v38  ;;  %v2178_v46 = vpop.xlane.xlu0 %2177 }
 0x600   : >> { %v2184_v62 = vpop.xlane.xlu1 %2183 }
 0x601   : >> { %7718 = vrcp.f32 %v2184_v62 }
 0x602   : >> { %7720 = vrcp.f32 %v2178_v46 }
 0x603   : >> { %7722 = vrcp.f32 %v2182_v26 }
 0x604   : >> { %v2180_v3 = vpop.xlane.xlu1 %2179 }
 0x605   : >> { %7724 = vrcp.f32 %v2180_v3 }
 0x608   : >> { %v2190_v17 = vpop.xlane.xlu0 %2189  ;;  %v2192_v30 = vpop.xlane.xlu1 %2191 }
 0x609   : >> { %7726 = vrcp.f32 %v2190_v17 }
 0x60a   : >> { %7728 = vrcp.f32 %v2192_v30 }
 0x60b   : >> { %v7719_v13 = vpop.eup %7718 }
 0x60c   : >> { %v2186_v5 = vpop.xlane.xlu0 %2185  ;;  %v7721_v52 = vpop.eup %7720  ;;  %v2228_v19 = vmul.f32 %v7719_v13, %v9156_v6 }
 0x60d   : >> { %v7723_v15 = vpop.eup %7722  ;;  %7730 = vrcp.f32 %v2186_v5  ;;  %v2225_v61 = vmul.f32 %v7721_v52, %v9152_v24 }
 0x60e   : >> { %v2227_v26 = vmul.f32 %v7723_v15, %v9148_v50 }
 0x60f   : >> { %v7725_v53 = vpop.eup %7724 }
 0x610   : >> { %v2188_v33 = vpop.xlane.xlu1 %2187  ;;  %v2226_v46 = vmul.f32 %v7725_v53, %v9160_v22  ;;  %v2242_v3 = vpack.c.bf16 %v2228_v19, %v2227_v26 }
 0x611   : >> { %7732 = vrcp.f32 %v2188_v33 }
 0x612   : >> { %v2241_v62 = vpack.c.bf16 %v2226_v46, %v2225_v61 }
 0x613   : >> { %v7727_v17 = vpop.eup %7726 }
 0x614   : >> { %6952 = vmatprep.mubr.bf16.mxu0 %v2241_v62  ;;  %v2198_v48 = vpop.xlane.xlu0 %2197  ;;  %v7729_v13 = vpop.eup %7728  ;;  %v2231_v15 = vmul.f32 %v7727_v17, %v9166_v60 }
 0x615   : >> { %6953 = vmatmul.mubr.bf16.vlgmr.msra.gmra.mrb[32].mxu0 %v2242_v3  ;;  %v2232_v33 = vmul.f32 %v7729_v13, %v9164_v41 }
 0x616   : >> { %6989 = vmatpush3.bf16.msra.mxu0 %v9020_v40 }
 0x617   : >> { %6990 = vmatprep.subr.bf16.mxu0 %v9010_v34  ;;  %v7731_v5 = vpop.eup %7730 }
 0x618   : >> { %v2194_v19 = vpop.xlane.xlu0 %2193  ;;  %v2229_v50 = vmul.f32 %v7731_v5, %v9171_v31 }
 0x61a   : >> { %6991 = vmatpush3.bf16.msra.mxu0 %v9010_v34  ;;  %v2244_v34 = vpack.c.bf16 %v2232_v33, %v2231_v15 }
 0x61b   : >> { %v7733_v52 = vpop.eup %7732  ;;  %6992 = vmatprep.subr.bf16.mxu0 %v9143_v29 }
 0x61c   : >> { %v2200_v61 = vpop.xlane.xlu1 %2199  ;;  %v2230_v40 = vmul.f32 %v7733_v52, %v9175_v4 }
 0x61d   : >> { %7734 = vrcp.f32 %v2200_v61 }
 0x61e   : >> { %6993 = vmatpush3.bf16.msra.mxu0 %v9143_v29  ;;  %v2243_v24 = vpack.c.bf16 %v2230_v40, %v2229_v50  ;;  %7736 = vrcp.f32 %v2194_v19 }
 0x61f   : >> { %6994 = vmatprep.subr.bf16.mxu0 %v9197_v44  ;;  %7738 = vrcp.f32 %v2198_v48 }
 0x620   : >> { %6956 = vmatprep.mubr.bf16.mxu0 %v2243_v24  ;;  %v2196_v6 = vpop.xlane.xlu1 %2195 }
 0x621   : >> { %7740 = vrcp.f32 %v2196_v6  ;;  %6957 = vmatmul.mubr.bf16.gmra.mrb[36].mxu0 %v2244_v34 }
 0x622   : >> { %6995 = vmatpush3.bf16.msra.mxu0 %v9197_v44 }
 0x623   : >> { %6996 = vmatprep.subr.bf16.mxu0 %v2670_v47 }
 0x624   : >> { %v2206_v22 = vpop.xlane.xlu0 %2205 }
 0x626   : >> { %6997 = vmatpush3.bf16.msra.mxu0 %v2670_v47 }
 0x627   : >> { %6998 = vmatprep.subr.bf16.mxu0 %v9294_v49  ;;  %v7735_v41 = vpop.eup %7734 }
 0x628   : >> { %v7737_v60 = vpop.eup %7736  ;;  %v2236_v4 = vmul.f32 %v7735_v41, %v9187_v16  ;;  %v2202_v48 = vpop.xlane.xlu0 %2201 }
 0x629   : >> { %v7739_v29 = vpop.eup %7738  ;;  %v2233_v53 = vmul.f32 %v7737_v60, %v9183_v7 }
 0x62a   : >> { %6999 = vmatpush3.bf16.msra.mxu0 %v9294_v49  ;;  %v2235_v44 = vmul.f32 %v7739_v29, %v9179_v51 }
 0x62b   : >> { %v7741_v31 = vpop.eup %7740 }
 0x62c   : >> { %v2208_v30 = vpop.xlane.xlu1 %2207  ;;  %v2234_v46 = vmul.f32 %v7741_v31, %v9191_v11  ;;  %v2246_v26 = vpack.c.bf16 %v2236_v4, %v2235_v44 }
 0x62d   : >> { %7742 = vrcp.f32 %v2208_v30 }
 0x62e   : >> { %v2245_v47 = vpack.c.bf16 %v2234_v46, %v2233_v53  ;;  %7744 = vrcp.f32 %v2202_v48 }
 0x62f   : >> { %7746 = vrcp.f32 %v2206_v22 }
 0x630   : >> { %6960 = vmatprep.mubr.bf16.mxu0 %v2245_v47  ;;  %v2204_v62 = vpop.xlane.xlu1 %2203 }
 0x631   : >> { %7748 = vrcp.f32 %v2204_v62  ;;  %6961 = vmatmul.mubr.bf16.gmra.mrb[40].mxu0 %v2246_v26 }
 0x634   : >> { %v2586_v49 = vpop.xlane.xlu1 %2585 }
 0x637   : >> { %v7743_v3 = vpop.eup %7742  ;;  %v2594_v15 = vpop.xlane.xlu0 %2593 }
 0x638   : >> { %v2582_v16 = vpop.xlane.xlu1 %2581  ;;  %v7745_v17 = vpop.eup %7744  ;;  %v2240_v7 = vmul.f32 %v7743_v3, %v9206_v23 }
 0x639   : >> { %v7747_v13 = vpop.eup %7746  ;;  %v2237_v51 = vmul.f32 %v7745_v17, %v9201_v25  ;;  %7750 = vrcp.f32 %v2582_v16 }
 0x63a   : >> { %v2239_v33 = vmul.f32 %v7747_v13, %v9195_v42 }
 0x63b   : >> { %v7749_v5 = vpop.eup %7748  ;;  %v2590_v40 = vpop.xlane.xlu0 %2589 }
 0x63c   : >> { %v2588_v11 = vpop.xlane.xlu1 %2587  ;;  %v2238_v52 = vmul.f32 %v7749_v5, %v9211_v45  ;;  %v2248_v61 = vpack.c.bf16 %v2240_v7, %v2239_v33 }
 0x63e   : >> { %v2247_v19 = vpack.c.bf16 %v2238_v52, %v2237_v51 }
 0x640   : >> { %6964 = vmatprep.mubr.bf16.mxu0 %v2247_v19  ;;  %v2584_v50 = vpop.xlane.xlu1 %2583 }
 0x641   : >> { %7752 = vrcp.f32 %v2584_v50  ;;  %6965 = vmatmul.mubr.bf16.gmra.mrb[44].mxu0 %v2248_v61 }
 0x642   : >> { %7754 = vrcp.f32 %v2588_v11 }
 0x643   : >> { %7756 = vrcp.f32 %v2586_v49  ;;  %v7751_v34 = vpop.eup %7750 }
 0x644   : >> { %7758 = vrcp.f32 %v2590_v40  ;;  %v2596_v23 = vpop.xlane.xlu0 %2595  ;;  %v2629_v6 = vmul.f32 %v7751_v34, %v9221_v2  ;;  %v11323_v34 = vld [vmem:[#allocation24_spill] sm:$0xff] }
 0x648   : >> { %v2592_v24 = vpop.xlane.xlu1 %2591  ;;  %v2676_v60 = vpop.permute.xlu0 %2675 }
 0x649   : >> { %7760 = vrcp.f32 %v2592_v24  ;;  %v11322_v24 = vld [vmem:[#allocation31_spill] sm:$0xff] }
 0x64a   : >> { %7762 = vrcp.f32 %v2596_v23  ;;  %v11321_v23 = vld [vmem:[#allocation23_spill] sm:$0xff] }
 0x64b   : >> { %v7753_v25 = vpop.eup %7752  ;;  %7764 = vrcp.f32 %v2594_v15 }
 0x64c   : >> { %v7755_v45 = vpop.eup %7754  ;;  %v2674_v42 = vpop.permute.xlu1 %2673  ;;  %v2630_v22 = vmul.f32 %v7753_v25, %v9232_v36 }
 0x64d   : >> { %7000 = vmatprep.subr.bf16.mxu0 %v2674_v42  ;;  %v7757_v41 = vpop.eup %7756  ;;  %v2632_v31 = vmul.f32 %v7755_v45, %v9228_v59 }
 0x64e   : >> { %7001 = vmatpush3.bf16.msra.mxu0 %v2674_v42  ;;  %v2645_v29 = vpack.c.bf16 %v2630_v22, %v2629_v6  ;;  %v7759_v4 = vpop.eup %7758  ;;  %v2631_v48 = vmul.f32 %v7757_v41, %v9215_v8  ;;  %v9340_v8 = vpack.c.bf16 %v8997_v55, %v8992_v0 }
 0x64f   : >> { %7002 = vmatprep.subr.bf16.mxu0 %v2676_v60  ;;  %v2633_v36 = vmul.f32 %v7759_v4, %v9226_v10 }
 0x650   : >> { %7004 = vmatprep.mubr.bf16.mxu0 %v2645_v29  ;;  %v2646_v53 = vpack.c.bf16 %v2632_v31, %v2631_v48 }
 0x652   : >> { %7003 = vmatpush3.bf16.msra.mxu0 %v2676_v60 }
 0x653   : >> { %v7761_v30 = vpop.eup %7760  ;;  %7020 = vmatprep.subr.bf16.mxu0 %v9252_v58 }
 0x654   : >> { %v7763_v2 = vpop.eup %7762  ;;  %v2634_v46 = vmul.f32 %v7761_v30, %v9238_v1 }
 0x655   : >> { %7005 = vmatmul.mubr.bf16.vlgmr.msra.gmra.mrb[48].mxu0 %v2646_v53  ;;  %v7765_v44 = vpop.eup %7764  ;;  %v2636_v47 = vmul.f32 %v7763_v2, %v9235_v27 }
 0x656   : >> { %7021 = vmatpush3.bf16.msra.mxu0 %v9252_v58  ;;  %v2647_v59 = vpack.c.bf16 %v2634_v46, %v2633_v36  ;;  %v2635_v26 = vmul.f32 %v7765_v44, %v9219_v63 }
 0x657   : >> { %7022 = vmatprep.subr.bf16.mxu0 %v9257_v12 }
 0x658   : >> { %7008 = vmatprep.mubr.bf16.mxu0 %v2647_v59  ;;  %v2648_v10 = vpack.c.bf16 %v2636_v47, %v2635_v26 }
 0x65a   : >> { %7023 = vmatpush3.bf16.msra.mxu0 %v9257_v12 }
 0x65b   : >> { %7060 = vmatprep.subr.bf16.mxu0 %v9340_v8 }
 0x65d   : >> { %7009 = vmatmul.mubr.bf16.gmra.mrb[52].mxu0 %v2648_v10 }
 0x679   : >> { %v2520_v1 = vpop.xlane.xlu0 %2519 }
 0x67a   : >> { %v2542_v58 = vsub.f32 %v9263_v21, %v2520_v1 }
 0x67c   : >> { %v2567_v62 = vmul.f32 1.442695, %v2542_v58 }
 0x67d   : >> { %v2522_v49 = vpop.xlane.xlu0 %2521  ;;  %v2518_v3 = vpop.xlane.xlu1 %2517 }
 0x67e   : >> { %7766 = vpow2.f32 %v2567_v62  ;;  %v2543_v27 = vsub.f32 %v9268_v14, %v2522_v49  ;;  %v2541_v0 = vsub.f32 %v9272_v35, %v2518_v3 }
 0x680   : >> { %v2565_v55 = vmul.f32 1.442695, %v2541_v0  ;;  %v2569_v17 = vmul.f32 1.442695, %v2543_v27 }
 0x681   : >> { %v2526_v16 = vpop.xlane.xlu0 %2525  ;;  %v2524_v63 = vpop.xlane.xlu1 %2523 }
 0x682   : >> { %v2545_v12 = vsub.f32 %v9282_v43, %v2526_v16  ;;  %v2544_v13 = vsub.f32 %v9278_v28, %v2524_v63  ;;  %7768 = vpow2.f32 %v2565_v55 }
 0x683   : >> { %7770 = vpow2.f32 %v2569_v17 }
 0x684   : >> { %v2571_v5 = vmul.f32 1.442695, %v2544_v13  ;;  %v2573_v11 = vmul.f32 1.442695, %v2545_v12 }
 0x685   : >> { %v2530_v7 = vpop.xlane.xlu0 %2529  ;;  %v2528_v21 = vpop.xlane.xlu1 %2527 }
 0x686   : >> { %v2546_v51 = vsub.f32 %v9292_v56, %v2528_v21  ;;  %7772 = vpow2.f32 %v2571_v5  ;;  %v2547_v14 = vsub.f32 %v9288_v9, %v2530_v7 }
 0x687   : >> { %7774 = vpow2.f32 %v2573_v11 }
 0x688   : >> { %v9352_v35 = vpop.eup %7766  ;;  %v2575_v52 = vmul.f32 1.442695, %v2546_v51  ;;  %v2577_v43 = vmul.f32 1.442695, %v2547_v14 }
 0x689   : >> { %2599 = vadd.xlane.f32.xlu1 %v9352_v35  ;;  %v2532_v15 = vpop.xlane.xlu1 %2531 }
 0x68a   : >> { %v2548_v28 = vsub.f32 %v9300_v38, %v2532_v15  ;;  %7776 = vpow2.f32 %v2575_v52 }
 0x68c   : >> { %v2579_v33 = vmul.f32 1.442695, %v2548_v28  ;;  %v9356_v19 = vpop.eup %7768 }
 0x68d   : >> { %2597 = vadd.xlane.f32.xlu0 %v9356_v19  ;;  %v9359_v56 = vpop.eup %7770 }
 0x68e   : >> { %7778 = vpow2.f32 %v2579_v33 }
 0x68f   : >> { %7780 = vpow2.f32 %v2577_v43 }
 0x690   : >> { %v9361_v9 = vpop.eup %7772 }
 0x691   : >> { %2601 = vadd.xlane.f32.xlu0 %v9359_v56  ;;  %2603 = vadd.xlane.f32.xlu1 %v9361_v9  ;;  %v9365_v61 = vpop.eup %7774 }
 0x694   : >> { %v9367_v38 = vpop.eup %7776 }
 0x695   : >> { %2605 = vadd.xlane.f32.xlu0 %v9365_v61  ;;  %2607 = vadd.xlane.f32.xlu1 %v9367_v38 }
 0x698   : >> { %v9371_v50 = vpop.eup %7778 }
 0x699   : >> { %v9373_v40 = vpop.eup %7780  ;;  %2611 = vadd.xlane.f32.xlu1 %v9371_v50 }
 0x69a   : >> { %2609 = vadd.xlane.f32.xlu0 %v9373_v40 }
 0x6aa   : >> { %3060 = vrot.lane.b32.xlu1 %v8884_v39, %s8235_s30 }
 0x6ae   : >> { %3062 = vrot.lane.b32.xlu1 %v8904_v57, %s8235_s30 }
 0x6b0   : >> { %3058 = vrot.lane.b32.xlu0 %v8864_v20, %s8235_s30 }
 0x6b2   : >> { %3066 = vrot.lane.b32.xlu1 %v8944_v18, %s8235_s30 }
 0x6b4   : >> { %3064 = vrot.lane.b32.xlu0 %v8924_v32, %s8235_s30 }
 0x6b6   : >> { %3070 = vrot.lane.b32.xlu1 %v8962_v54, %s8235_s30 }
 0x6b8   : >> { %3068 = vrot.lane.b32.xlu0 %v8954_v37, %s8235_s30 }
 0x6ba   : >> { %3349 = vrot.lane.b32.xlu1 %v11321_v23, %s8235_s30 }
 0x6bc   : >> { %3072 = vrot.lane.b32.xlu0 %v11322_v24, %s8235_s30 }
 0x6c0   : >> { %3347 = vrot.lane.b32.xlu0 %v11323_v34, %s8235_s30 }
 0x6e8   : >> { %v9397_v25 = vpop.f32.mrb[32].mxu0 }
 0x6e9   : >> { %v9399_v45 = vpop.f32.mrb[33].mxu0 }
 0x6ea   : >> { %v9401_v42 = vpop.f32.mrb[34].mxu0 }
 0x6eb   : >> { %v2347_v6 = vpack.c.bf16 %v9401_v42, %v9397_v25  ;;  %v9405_v22 = vpop.f32.mrb[35].mxu0  ;;  %v11326_v42 = vld [vmem:[#allocation2_spill] sm:$0xff] }
 0x6ec   : >> { %v2346_v41 = vpack.c.bf16 %v9405_v22, %v9399_v45 }
 0x6f4   : >> { %v9409_v60 = vpop.f32.mrb[36].mxu0 }
 0x6f5   : >> { %v9411_v29 = vpop.f32.mrb[37].mxu0 }
 0x6f6   : >> { %v9413_v31 = vpop.f32.mrb[38].mxu0 }
 0x6f7   : >> { %v2349_v4 = vpack.c.bf16 %v9413_v31, %v9409_v60  ;;  %v9417_v48 = vpop.f32.mrb[39].mxu0 }
 0x6f8   : >> { %v2348_v30 = vpack.c.bf16 %v9417_v48, %v9411_v29 }
 0x704   : >> { %v9421_v53 = vpop.f32.mrb[40].mxu0 }
 0x705   : >> { %v9423_v2 = vpop.f32.mrb[41].mxu0 }
 0x706   : >> { %v9425_v36 = vpop.f32.mrb[42].mxu0 }
 0x707   : >> { %v2351_v46 = vpack.c.bf16 %v9425_v36, %v9421_v53  ;;  %v9429_v44 = vpop.f32.mrb[43].mxu0 }
 0x708   : >> { %v2350_v59 = vpack.c.bf16 %v9429_v44, %v9423_v2 }
 0x714   : >> { %v9433_v47 = vpop.f32.mrb[44].mxu0 }
 0x715   : >> { %v9435_v26 = vpop.f32.mrb[45].mxu0 }
 0x716   : >> { %v9437_v10 = vpop.f32.mrb[46].mxu0  ;;  %v2600_v58 = vpop.xlane.xlu1 %2599 }
 0x717   : >> { %v2353_v1 = vpack.c.bf16 %v9437_v10, %v9433_v47  ;;  %v9441_v62 = vpop.f32.mrb[47].mxu0  ;;  %7782 = vrcp.f32 %v2600_v58 }
 0x718   : >> { %v2352_v49 = vpack.c.bf16 %v9441_v62, %v9435_v26 }
 0x71a   : >> { %v2598_v3 = vpop.xlane.xlu0 %2597 }
 0x71b   : >> { %7784 = vrcp.f32 %v2598_v3 }
 0x71e   : >> { %v2602_v27 = vpop.xlane.xlu0 %2601  ;;  %v2604_v0 = vpop.xlane.xlu1 %2603 }
 0x71f   : >> { %7786 = vrcp.f32 %v2602_v27 }
 0x720   : >> { %7788 = vrcp.f32 %v2604_v0 }
 0x721   : >> { %v7783_v63 = vpop.eup %7782 }
 0x722   : >> { %v2606_v55 = vpop.xlane.xlu0 %2605  ;;  %v2608_v16 = vpop.xlane.xlu1 %2607  ;;  %v2638_v7 = vmul.f32 %v7783_v63, %v9352_v35 }
 0x723   : >> { %7790 = vrcp.f32 %v2606_v55 }
 0x724   : >> { %7792 = vrcp.f32 %v2608_v16 }
 0x725   : >> { %v7785_v17 = vpop.eup %7784 }
 0x726   : >> { %v2612_v13 = vpop.xlane.xlu1 %2611  ;;  %v2637_v5 = vmul.f32 %v7785_v17, %v9356_v19 }
 0x727   : >> { %v2610_v12 = vpop.xlane.xlu0 %2609 }
 0x728   : >> { %7794 = vrcp.f32 %v2610_v12  ;;  %v7006_v21 = vpop.f32.mrb[48].mxu0  ;;  %v2649_v51 = vpack.c.bf16 %v2638_v7, %v2637_v5 }
 0x729   : >> { %7796 = vrcp.f32 %v2612_v13  ;;  %v2719_v11 = vpop.f32.mrb[49].mxu0  ;;  %v7787_v14 = vpop.eup %7786 }
 0x72a   : >> { %v7007_v52 = vpop.f32.mrb[50].mxu0  ;;  %v7789_v15 = vpop.eup %7788  ;;  %7012 = vmatprep.mubr.bf16.mxu0 %v2649_v51  ;;  %v2639_v43 = vmul.f32 %v7787_v14, %v9359_v56 }
 0x72b   : >> { %v2783_v28 = vpack.c.bf16 %v7007_v52, %v7006_v21  ;;  %v2722_v33 = vpop.f32.mrb[51].mxu0  ;;  %v2640_v58 = vmul.f32 %v7789_v15, %v9361_v9  ;;  %v3059_v3 = vpop.permute.xlu0 %3058 }
 0x72c   : >> { %v2782_v27 = vpack.c.bf16 %v2722_v33, %v2719_v11  ;;  %v11324_v33 = vld [vmem:[#allocation32_spill] sm:$0xff] }
 0x72d   : >> { %v7791_v19 = vpop.eup %7790  ;;  %v2650_v0 = vpack.c.bf16 %v2640_v58, %v2639_v43  ;;  %v11325_v58 = vld [vmem:[#allocation33_spill] sm:$0xff] }
 0x72e   : >> { %v7793_v35 = vpop.eup %7792  ;;  %v2641_v55 = vmul.f32 %v7791_v19, %v9365_v61  ;;  %v3061_v61 = vpop.permute.xlu1 %3060  ;;  %v3057_v19 = vpack.c.bf16 %v11325_v58, %v11324_v33 }
 0x72f   : >> { %7013 = vmatmul.mubr.bf16.gmra.mrb[56].mxu0 %v2650_v0  ;;  %v2642_v63 = vmul.f32 %v7793_v35, %v9367_v38  ;;  %v3065_v56 = vpop.permute.xlu0 %3064 }
 0x730   : >> { %v7010_v16 = vpop.f32.mrb[52].mxu0 }
 0x731   : >> { %v2735_v17 = vpop.f32.mrb[53].mxu0  ;;  %v2651_v5 = vpack.c.bf16 %v2642_v63, %v2641_v55 }
 0x732   : >> { %v7795_v12 = vpop.eup %7794  ;;  %v7011_v13 = vpop.f32.mrb[54].mxu0 }
 0x733   : >> { %v7797_v7 = vpop.eup %7796  ;;  %v2785_v21 = vpack.c.bf16 %v7011_v13, %v7010_v16  ;;  %v2643_v9 = vmul.f32 %v7795_v12, %v9373_v40  ;;  %7016 = vmatprep.mubr.bf16.mxu0 %v2651_v5  ;;  %v2738_v11 = vpop.f32.mrb[55].mxu0 }
 0x734   : >> { %v2644_v51 = vmul.f32 %v7797_v7, %v9371_v50  ;;  %v2784_v14 = vpack.c.bf16 %v2738_v11, %v2735_v17  ;;  %v3069_v15 = vpop.permute.xlu0 %3068  ;;  %v3063_v38 = vpop.permute.xlu1 %3062  ;;  %v7553_v17 = vld [vmem:[%s9249_s14 + $0x8] sm:$0xff]  }
 0x736   : >> { %v2652_v52 = vpack.c.bf16 %v2644_v51, %v2643_v9 }
 0x738   : >> { %7017 = vmatmul.mubr.bf16.gmra.mrb[60].mxu0 %v2652_v52  ;;  %v3073_v43 = vpop.permute.xlu0 %3072  ;;  %v3067_v50 = vpop.permute.xlu1 %3066 }
 0x739   : >> { %7024 = vmatprep.mubr.msk.bf16.mxu0 %vm1975_vm1, %v2782_v27 }
 0x73c   : >> { %v3348_v40 = vpop.permute.xlu0 %3347  ;;  %v3071_v27 = vpop.permute.xlu1 %3070 }
 0x740   : >> { %7025 = vmatmul.mubr.msk.bf16.vlgmr.msra.gmra.mrb[64].mxu0 %vm1975_vm1, %v2783_v28  ;;  %v3350_v0 = vpop.permute.xlu1 %3349 }
 0x741   : >> { %7061 = vmatpush3.bf16.msra.mxu0 %v9340_v8  ;;  %7028 = vmatprep.mubr.msk.bf16.mxu0 %vm1975_vm1, %v2784_v14  ;;  %v7552_v8 = vld [vmem:[%s9249_s14] sm:$0xff]  }
 0x742   : >> { %7062 = vmatprep.subr.bf16.mxu0 %v3057_v19  ;;  %7040 = vmatprep.subr.bf16.mxu1 %v7552_v8 }
 0x745   : >> { %7063 = vmatpush3.bf16.msra.mxu0 %v3057_v19 }
 0x746   : >> { %7080 = vmatprep.subr.bf16.mxu0 %v3348_v40 }
 0x748   : >> { %7029 = vmatmul.mubr.msk.bf16.gmra.mrb[68].mxu0 %vm1975_vm1, %v2785_v21 }
 0x749   : >> { %7064 = vmatprep.mubr.msk.bf16.mxu0 %vm1975_vm1, %v3059_v3 }
 0x750   : >> { %7065 = vmatmul.mubr.msk.bf16.vlgmr.msra.gmra.mrb[72].mxu0 %vm1975_vm1, %v3061_v61 }
 0x751   : >> { %7081 = vmatpush3.bf16.msra.mxu0 %v3348_v40  ;;  %7068 = vmatprep.mubr.msk.bf16.mxu0 %vm1975_vm1, %v3063_v38 }
 0x752   : >> { %7082 = vmatprep.subr.bf16.mxu0 %v3350_v0 }
 0x755   : >> { %7083 = vmatpush3.bf16.msra.mxu0 %v3350_v0  ;;  %v11327_v0 = vld [vmem:[#allocation28_spill] sm:$0xff] }
 0x758   : >> { %7069 = vmatmul.mubr.msk.bf16.gmra.mrb[76].mxu0 %vm1975_vm1, %v3065_v56 }
 0x759   : >> { %7072 = vmatprep.mubr.msk.bf16.mxu0 %vm1975_vm1, %v3067_v50 }
 0x760   : >> { %7073 = vmatmul.mubr.msk.bf16.gmra.mrb[80].mxu0 %vm1975_vm1, %v3069_v15 }
 0x761   : >> { %7076 = vmatprep.mubr.msk.bf16.mxu0 %vm1975_vm1, %v3071_v27 }
 0x768   : >> { %7077 = vmatmul.mubr.msk.bf16.gmra.mrb[84].mxu0 %vm1975_vm1, %v3073_v43 }
 0x802   : >> { %v7014_v28 = vpop.f32.mrb[56].mxu0 }
 0x803   : >> { %v2751_v3 = vpop.f32.mrb[57].mxu0 }
 0x804   : >> { %v7015_v35 = vpop.f32.mrb[58].mxu0 }
 0x805   : >> { %v2787_v55 = vpack.c.bf16 %v7015_v35, %v7014_v28  ;;  %v2754_v16 = vpop.f32.mrb[59].mxu0  ;;  %v11329_v28 = vld [vmem:[#allocation25_spill] sm:$0xff] }
 0x806   : >> { %v2786_v63 = vpack.c.bf16 %v2754_v16, %v2751_v3  ;;  %v11330_v3 = vld [vmem:[#allocation30_spill] sm:$0xff]  ;;  %v11331_v16 = vld [vmem:[#allocation27_spill] sm:$0xff] }
 0x808   : >> { %7032 = vmatprep.mubr.msk.bf16.mxu1 %vm1975_vm1, %v2786_v63 }
 0x809   : >> { %7033 = vmatmul.mubr.msk.bf16.vlgmr.msra.gmra.mrb[48].mxu1 %vm1975_vm1, %v2787_v55 }
 0x80a   : >> { %7041 = vmatpush3.bf16.msra.mxu1 %v7552_v8  ;;  %v11328_v8 = vld [vmem:[#allocation26_spill] sm:$0xff] }
 0x80b   : >> { %v7018_v12 = vpop.f32.mrb[60].mxu0  ;;  %7042 = vmatprep.subr.bf16.mxu1 %v7553_v17 }
 0x80c   : >> { %v2767_v13 = vpop.f32.mrb[61].mxu0 }
 0x80d   : >> { %v7019_v5 = vpop.f32.mrb[62].mxu0 }
 0x80e   : >> { %v2789_v7 = vpack.c.bf16 %v7019_v5, %v7018_v12  ;;  %v2770_v56 = vpop.f32.mrb[63].mxu0  ;;  %7043 = vmatpush3.bf16.msra.mxu1 %v7553_v17 }
 0x80f   : >> { %v2788_v21 = vpack.c.bf16 %v2770_v56, %v2767_v13 }
 0x811   : >> { %7036 = vmatprep.mubr.msk.bf16.mxu1 %vm1975_vm1, %v2788_v21 }
 0x812   : >> { %7037 = vmatmul.mubr.msk.bf16.gmra.mrb[52].mxu1 %vm1975_vm1, %v2789_v7 }
 0x813   : >> { %v9474_v9 = vpop.f32.mrb[64].mxu0  ;;  %7044 = vmatprep.mubr.msk.bf16.mxu1 %vm1975_vm1, %v2346_v41 }
 0x814   : >> { %v9480_v11 = vpop.f32.mrb[65].mxu0 }
 0x815   : >> { %v9482_v51 = vpop.f32.mrb[66].mxu0 }
 0x816   : >> { %v9484_v14 = vpop.f32.mrb[67].mxu0 }
 0x81a   : >> { %7045 = vmatmul.mubr.msk.bf16.vlgmr.msra.gmra.mrb[56].mxu1 %vm1975_vm1, %v2347_v6 }
 0x81b   : >> { %v9490_v52 = vpop.f32.mrb[68].mxu0  ;;  %7048 = vmatprep.mubr.msk.bf16.mxu1 %vm1975_vm1, %v2348_v30 }
 0x81c   : >> { %v9496_v45 = vpop.f32.mrb[69].mxu0 }
 0x81d   : >> { %v9498_v22 = vpop.f32.mrb[70].mxu0 }
 0x81e   : >> { %v9500_v41 = vpop.f32.mrb[71].mxu0 }
 0x822   : >> { %7049 = vmatmul.mubr.msk.bf16.gmra.mrb[60].mxu1 %vm1975_vm1, %v2349_v4 }
 0x823   : >> { %7052 = vmatprep.mubr.msk.bf16.mxu1 %vm1975_vm1, %v2350_v59  ;;  %v7066_v25 = vpop.f32.mrb[72].mxu0 }
 0x824   : >> { %v3141_v6 = vadd.f32 %v7066_v25, %v11326_v42  ;;  %v3132_v29 = vpop.f32.mrb[73].mxu0 }
 0x825   : >> { %v3133_v48 = vadd.f32 %v3132_v29, %v11326_v42  ;;  %v7067_v30 = vpop.f32.mrb[74].mxu0 }
 0x826   : >> { %3199 = vmax.xlane.f32.xlu0 %v3141_v6  ;;  %v3135_v61 = vpop.f32.mrb[75].mxu0  ;;  %v3144_v60 = vadd.f32 %v7067_v30, %v11326_v42 }
 0x827   : >> { %v9513_v15 = vadd.f32 %v3135_v61, %v11326_v42  ;;  %3195 = vmax.xlane.f32.xlu1 %v3133_v48 }
 0x82a   : >> { %7053 = vmatmul.mubr.msk.bf16.gmra.mrb[48].mxu1 %vm1975_vm1, %v2351_v46  ;;  %3197 = vmax.xlane.f32.xlu0 %v9513_v15 }
 0x82b   : >> { %7056 = vmatprep.mubr.msk.bf16.mxu1 %vm1975_vm1, %v2352_v49  ;;  %3201 = vmax.xlane.f32.xlu1 %v3144_v60  ;;  %v7070_v31 = vpop.f32.mrb[76].mxu0 }
 0x82c   : >> { %v3157_v4 = vadd.f32 %v7070_v31, %v11326_v42  ;;  %v3148_v2 = vpop.f32.mrb[77].mxu0 }
 0x82d   : >> { %v7071_v44 = vpop.f32.mrb[78].mxu0  ;;  %v3149_v36 = vadd.f32 %v3148_v2, %v11326_v42 }
 0x82e   : >> { %v9527_v59 = vadd.f32 %v7071_v44, %v11326_v42  ;;  %3207 = vmax.xlane.f32.xlu0 %v3157_v4  ;;  %v3151_v53 = vpop.f32.mrb[79].mxu0 }
 0x82f   : >> { %v9532_v46 = vadd.f32 %v3151_v53, %v11326_v42 }
 0x830   : >> { %3209 = vmax.xlane.f32.xlu1 %v9527_v59 }
 0x832   : >> { %7057 = vmatmul.mubr.msk.bf16.gmra.mrb[52].mxu1 %vm1975_vm1, %v2353_v1  ;;  %3203 = vmax.xlane.f32.xlu0 %v3149_v36 }
 0x833   : >> { %v7074_v26 = vpop.f32.mrb[80].mxu0 }
 0x834   : >> { %v9539_v62 = vadd.f32 %v7074_v26, %v11326_v42  ;;  %3205 = vmax.xlane.f32.xlu1 %v9532_v46  ;;  %v3164_v49 = vpop.f32.mrb[81].mxu0 }
 0x835   : >> { %v7075_v38 = vpop.f32.mrb[82].mxu0  ;;  %v9547_v58 = vadd.f32 %v3164_v49, %v11326_v42 }
 0x836   : >> { %v9543_v43 = vadd.f32 %v7075_v38, %v11326_v42  ;;  %3215 = vmax.xlane.f32.xlu0 %v9539_v62  ;;  %v3167_v33 = vpop.f32.mrb[83].mxu0 }
 0x837   : >> { %v9551_v47 = vadd.f32 %v3167_v33, %v11326_v42 }
 0x838   : >> { %3217 = vmax.xlane.f32.xlu1 %v9543_v43 }
 0x83a   : >> { %3211 = vmax.xlane.f32.xlu0 %v9547_v58 }
 0x83b   : >> { %v7078_v10 = vpop.f32.mrb[84].mxu0 }
 0x83c   : >> { %v9555_v1 = vadd.f32 %v7078_v10, %v11326_v42  ;;  %3213 = vmax.xlane.f32.xlu1 %v9551_v47  ;;  %v3180_v19 = vpop.f32.mrb[85].mxu0 }
 0x83d   : >> { %v7079_v50 = vpop.f32.mrb[86].mxu0  ;;  %v9560_v27 = vadd.f32 %v3180_v19, %v11326_v42 }
 0x83e   : >> { %3223 = vmax.xlane.f32.xlu0 %v9555_v1  ;;  %v3183_v40 = vpop.f32.mrb[87].mxu0  ;;  %v9572_v35 = vadd.f32 %v7079_v50, %v11326_v42 }
 0x83f   : >> { %v9576_v55 = vadd.f32 %v3183_v40, %v11326_v42 }
 0x842   : >> { %3219 = vmax.xlane.f32.xlu0 %v9560_v27 }
 0x84d   : >> { %3355 = vrot.lane.b32.xlu1 %v11327_v0, %s8235_s30 }
 0x858   : >> { %3351 = vrot.lane.b32.xlu0 %v11328_v8, %s8235_s30 }
 0x85c   : >> { %3353 = vrot.lane.b32.xlu0 %v11329_v28, %s8235_s30 }
 0x860   : >> { %3359 = vrot.lane.b32.xlu0 %v11330_v3, %s8235_s30 }
 0x871   : >> { %3225 = vmax.xlane.f32.xlu1 %v9572_v35 }
 0x875   : >> { %3221 = vmax.xlane.f32.xlu1 %v9576_v55 }
 0x886   : >> { %3357 = vrot.lane.b32.xlu1 %v11331_v16, %s8235_s30 }
 0x8b3   : >> { %v3200_v63 = vpop.xlane.xlu0 %3199 }
 0x8b4   : >> { %v3229_v17 = vsub.f32 %v3141_v6, %v3200_v63  ;;  %v3196_v12 = vpop.xlane.xlu1 %3195 }
 0x8b5   : >> { %v3227_v13 = vsub.f32 %v3133_v48, %v3196_v12 }
 0x8b6   : >> { %v3247_v5 = vmul.f32 1.442695, %v3229_v17 }
 0x8b7   : >> { %v3198_v7 = vpop.xlane.xlu0 %3197  ;;  %v3243_v56 = vmul.f32 1.442695, %v3227_v13 }
 0x8b8   : >> { %7798 = vpow2.f32 %v3247_v5  ;;  %v3202_v21 = vpop.xlane.xlu1 %3201  ;;  %v3228_v29 = vsub.f32 %v9513_v15, %v3198_v7 }
 0x8b9   : >> { %v3230_v25 = vsub.f32 %v3144_v60, %v3202_v21  ;;  %7800 = vpow2.f32 %v3243_v56 }
 0x8ba   : >> { %v3245_v53 = vmul.f32 1.442695, %v3228_v29 }
 0x8bb   : >> { %v3249_v30 = vmul.f32 1.442695, %v3230_v25  ;;  %v3208_v61 = vpop.xlane.xlu0 %3207 }
 0x8bc   : >> { %v3233_v31 = vsub.f32 %v3157_v4, %v3208_v61 }
 0x8bd   : >> { %v3210_v2 = vpop.xlane.xlu1 %3209  ;;  %7802 = vpow2.f32 %v3249_v30 }
 0x8be   : >> { %v3255_v44 = vmul.f32 1.442695, %v3233_v31  ;;  %v3234_v6 = vsub.f32 %v9527_v59, %v3210_v2 }
 0x8bf   : >> { %v3204_v26 = vpop.xlane.xlu0 %3203 }
 0x8c0   : >> { %7804 = vpow2.f32 %v3255_v44  ;;  %v3231_v48 = vsub.f32 %v3149_v36, %v3204_v26  ;;  %v3257_v15 = vmul.f32 1.442695, %v3234_v6 }
 0x8c1   : >> { %v3206_v49 = vpop.xlane.xlu1 %3205  ;;  %7806 = vpow2.f32 %v3245_v53 }
 0x8c2   : >> { %v9583_v38 = vpop.eup %7798  ;;  %v3251_v33 = vmul.f32 1.442695, %v3231_v48  ;;  %v3232_v60 = vsub.f32 %v9532_v46, %v3206_v49 }
 0x8c3   : >> { %v3216_v10 = vpop.xlane.xlu0 %3215  ;;  %3279 = vadd.xlane.f32.xlu1 %v9583_v38  ;;  %v9588_v59 = vpop.eup %7800 }
 0x8c4   : >> { %7808 = vpow2.f32 %v3251_v33  ;;  %v3253_v4 = vmul.f32 1.442695, %v3232_v60  ;;  %v3237_v19 = vsub.f32 %v9539_v62, %v3216_v10  ;;  %v11332_v60 = vld [vmem:[#allocation29_spill] sm:$0xff] }
 0x8c5   : >> { %v3218_v50 = vpop.xlane.xlu1 %3217  ;;  %7810 = vpow2.f32 %v3257_v15 }
 0x8c6   : >> { %7812 = vpow2.f32 %v3253_v4  ;;  %v3263_v40 = vmul.f32 1.442695, %v3237_v19  ;;  %v3238_v62 = vsub.f32 %v9543_v43, %v3218_v50 }
 0x8c7   : >> { %v3212_v36 = vpop.xlane.xlu0 %3211  ;;  %3275 = vadd.xlane.f32.xlu1 %v9588_v59  ;;  %v9592_v63 = vpop.eup %7802 }
 0x8c8   : >> { %v3235_v46 = vsub.f32 %v9547_v58, %v3212_v36  ;;  %7814 = vpow2.f32 %v3263_v40  ;;  %v3265_v43 = vmul.f32 1.442695, %v3238_v62 }
 0x8c9   : >> { %v3214_v17 = vpop.xlane.xlu1 %3213 }
 0x8ca   : >> { %v9594_v12 = vpop.eup %7804  ;;  %v3236_v13 = vsub.f32 %v9551_v47, %v3214_v17  ;;  %v3259_v7 = vmul.f32 1.442695, %v3235_v46 }
 0x8cb   : >> { %v3224_v5 = vpop.xlane.xlu0 %3223  ;;  %3287 = vadd.xlane.f32.xlu0 %v9594_v12  ;;  %3281 = vadd.xlane.f32.xlu1 %v9592_v63  ;;  %v9601_v58 = vpop.eup %7806 }
 0x8cc   : >> { %v3261_v56 = vmul.f32 1.442695, %v3236_v13  ;;  %v3241_v21 = vsub.f32 %v9555_v1, %v3224_v5 }
 0x8cd   : >> { %v3356_v6 = vpop.permute.xlu1 %3355 }
 0x8ce   : >> { %v9603_v25 = vpop.eup %7808  ;;  %7816 = vpow2.f32 %v3261_v56  ;;  %v3271_v29 = vmul.f32 1.442695, %v3241_v21 }
 0x8cf   : >> { %3283 = vadd.xlane.f32.xlu0 %v9603_v25  ;;  %v3220_v47 = vpop.xlane.xlu0 %3219  ;;  %3277 = vadd.xlane.f32.xlu1 %v9601_v58  ;;  %7818 = vpow2.f32 %v3259_v7  ;;  %v9608_v61 = vpop.eup %7810 }
 0x8d0   : >> { %v3239_v30 = vsub.f32 %v9560_v27, %v3220_v47  ;;  %v9610_v31 = vpop.eup %7812  ;;  %7820 = vpow2.f32 %v3271_v29 }
 0x8d1   : >> { %7822 = vpow2.f32 %v3265_v43 }
 0x8d2   : >> { %v3267_v1 = vmul.f32 1.442695, %v3239_v30  ;;  %v9614_v44 = vpop.eup %7814 }
 0x8d3   : >> { %v3352_v2 = vpop.permute.xlu0 %3351  ;;  %3289 = vadd.xlane.f32.xlu0 %v9608_v61  ;;  %3285 = vadd.xlane.f32.xlu1 %v9610_v31 }
 0x8d4   : >> { %7084 = vmatprep.subr.bf16.mxu0 %v3352_v2  ;;  %7824 = vpow2.f32 %v3267_v1 }
 0x8d5   : >> { %7085 = vmatpush3.bf16.msra.mxu0 %v3352_v2 }
 0x8d7   : >> { %v3354_v53 = vpop.permute.xlu0 %3353  ;;  %3295 = vadd.xlane.f32.xlu0 %v9614_v44 }
 0x8d8   : >> { %v9617_v27 = vpop.eup %7816  ;;  %7086 = vmatprep.subr.bf16.mxu0 %v3354_v53 }
 0x8d9   : >> { %7087 = vmatpush3.bf16.msra.mxu0 %v3354_v53  ;;  %3293 = vadd.xlane.f32.xlu1 %v9617_v27  ;;  %v9620_v26 = vpop.eup %7818 }
 0x8da   : >> { %7088 = vmatprep.subr.bf16.mxu0 %v3356_v6  ;;  %v9623_v48 = vpop.eup %7820 }
 0x8db   : >> { %3291 = vadd.xlane.f32.xlu0 %v9620_v26  ;;  %v9626_v49 = vpop.eup %7822 }
 0x8dd   : >> { %3303 = vadd.xlane.f32.xlu1 %v9623_v48  ;;  %7089 = vmatpush3.bf16.msra.mxu0 %v3356_v6 }
 0x8de   : >> { %v9629_v33 = vpop.eup %7824 }
 0x8df   : >> { %3297 = vadd.xlane.f32.xlu0 %v9626_v49 }
 0x8e1   : >> { %3299 = vadd.xlane.f32.xlu1 %v9629_v33 }
 0x8f2   : >> { %3361 = vrot.lane.b32.xlu1 %v11332_v60, %s8235_s30 }
 0x8f6   : >> { %3629 = vrot.lane.b32.xlu1 %v8884_v39, %s8236_s11 }
 0x8fa   : >> { %3631 = vrot.lane.b32.xlu1 %v8904_v57, %s8236_s11  ;;  %v3360_v57 = vpop.permute.xlu0 %3359 }
 0x8fe   : >> { %3635 = vrot.lane.b32.xlu1 %v8944_v18, %s8236_s11  ;;  %v3226_v15 = vpop.xlane.xlu1 %3225 }
 0x8ff   : >> { %v3242_v4 = vsub.f32 %v9572_v35, %v3226_v15  ;;  %v7555_v35 = vld [vmem:[%s9249_s14 + $0x28] sm:$0xff]  }
 0x900   : >> { %v11334_v15 = vld [vmem:[#allocation35_spill] sm:$0xff] }
 0x901   : >> { %v3273_v36 = vmul.f32 1.442695, %v3242_v4 }
 0x902   : >> { %3639 = vrot.lane.b32.xlu1 %v8962_v54, %s8236_s11  ;;  %v3222_v10 = vpop.xlane.xlu1 %3221 }
 0x903   : >> { %v3240_v19 = vsub.f32 %v9576_v55, %v3222_v10 }
 0x905   : >> { %v3269_v50 = vmul.f32 1.442695, %v3240_v19 }
 0x906   : >> { %3918 = vrot.lane.b32.xlu1 %v11321_v23, %s8236_s11  ;;  %v3358_v39 = vpop.permute.xlu1 %3357  ;;  %v7554_v23 = vld [vmem:[%s9249_s14 + $0x20] sm:$0xff]  }
 0x907   : >> { %7826 = vpow2.f32 %v3269_v50  ;;  %7090 = vmatprep.subr.bf16.mxu0 %v3358_v39  ;;  %7112 = vmatprep.subr.bf16.mxu1 %v7554_v23 }
 0x908   : >> { %7091 = vmatpush3.bf16.msra.mxu0 %v3358_v39  ;;  %7828 = vpow2.f32 %v3273_v36  ;;  %7113 = vmatpush3.bf16.msra.mxu1 %v7554_v23  ;;  %v11336_v23 = vld [vmem:[#allocation37_spill] sm:$0xff] }
 0x909   : >> { %7092 = vmatprep.subr.bf16.mxu0 %v3360_v57  ;;  %7114 = vmatprep.subr.bf16.mxu1 %v7555_v35 }
 0x90c   : >> { %7093 = vmatpush3.bf16.msra.mxu0 %v3360_v57  ;;  %7115 = vmatpush3.bf16.msra.mxu1 %v7555_v35  ;;  %v11335_v57 = vld [vmem:[#allocation36_spill] sm:$0xff] }
 0x90d   : >> { %v3626_v35 = vpack.c.bf16 %v11336_v23, %v11335_v57 }
 0x911   : >> { %v9646_v18 = vpop.eup %7826 }
 0x912   : >> { %3301 = vadd.xlane.f32.xlu0 %v9646_v18  ;;  %v9649_v54 = vpop.eup %7828 }
 0x916   : >> { %3305 = vadd.xlane.f32.xlu0 %v9649_v54 }
 0x92c   : >> { %3627 = vrot.lane.b32.xlu0 %v8864_v20, %s8236_s11 }
 0x930   : >> { %3633 = vrot.lane.b32.xlu0 %v8924_v32, %s8236_s11 }
 0x934   : >> { %3637 = vrot.lane.b32.xlu0 %v8954_v37, %s8236_s11 }
 0x938   : >> { %3641 = vrot.lane.b32.xlu0 %v11322_v24, %s8236_s11 }
 0x93c   : >> { %3916 = vrot.lane.b32.xlu0 %v11323_v34, %s8236_s11 }
 0x940   : >> { %3920 = vrot.lane.b32.xlu0 %v11328_v8, %s8236_s11 }
 0x944   : >> { %3922 = vrot.lane.b32.xlu0 %v11329_v28, %s8236_s11 }
 0x950   : >> { %v3280_v20 = vpop.xlane.xlu1 %3279 }
 0x954   : >> { %v3276_v32 = vpop.xlane.xlu1 %3275 }
 0x955   : >> { %7830 = vrcp.f32 %v3276_v32 }
 0x958   : >> { %v3288_v55 = vpop.xlane.xlu0 %3287  ;;  %v3282_v40 = vpop.xlane.xlu1 %3281 }
 0x95c   : >> { %v3284_v37 = vpop.xlane.xlu0 %3283  ;;  %v3278_v46 = vpop.xlane.xlu1 %3277 }
 0x95d   : >> { %7832 = vrcp.f32 %v3278_v46 }
 0x95e   : >> { %7834 = vrcp.f32 %v3282_v40 }
 0x95f   : >> { %v7831_v34 = vpop.eup %7830 }
 0x960   : >> { %v3290_v17 = vpop.xlane.xlu0 %3289  ;;  %v3286_v13 = vpop.xlane.xlu1 %3285  ;;  %v3323_v28 = vmul.f32 %v7831_v34, %v9588_v59 }
 0x961   : >> { %7836 = vrcp.f32 %v3286_v13 }
 0x962   : >> { %7838 = vrcp.f32 %v3280_v20 }
 0x963   : >> { %7840 = vrcp.f32 %v3284_v37 }
 0x964   : >> { %v3296_v24 = vpop.xlane.xlu0 %3295  ;;  %7842 = vrcp.f32 %v3290_v17 }
 0x966   : >> { %v3294_v62 = vpop.xlane.xlu1 %3293 }
 0x967   : >> { %v7833_v8 = vpop.eup %7832 }
 0x968   : >> { %v3324_v5 = vmul.f32 %v7833_v8, %v9601_v58  ;;  %v3292_v7 = vpop.xlane.xlu0 %3291  ;;  %v7835_v29 = vpop.eup %7834  ;;  %v11333_v58 = vld [vmem:[#allocation34_spill] sm:$0xff] }
 0x969   : >> { %7844 = vrcp.f32 %v3292_v7  ;;  %v3326_v2 = vmul.f32 %v7835_v29, %v9592_v63  ;;  %v3625_v10 = vpack.c.bf16 %v11334_v15, %v11333_v58 }
 0x96a   : >> { %v3304_v56 = vpop.xlane.xlu1 %3303  ;;  %v3339_v21 = vpack.c.bf16 %v3324_v5, %v3323_v28  ;;  %7846 = vrcp.f32 %v3288_v55 }
 0x96b   : >> { %v7837_v43 = vpop.eup %7836  ;;  %7848 = vrcp.f32 %v3294_v62 }
 0x96c   : >> { %7096 = vmatprep.mubr.bf16.mxu0 %v3339_v21  ;;  %v7839_v30 = vpop.eup %7838  ;;  %v3298_v53 = vpop.xlane.xlu0 %3297  ;;  %v3328_v59 = vmul.f32 %v7837_v43, %v9610_v31 }
 0x96d   : >> { %v7841_v1 = vpop.eup %7840  ;;  %v3325_v4 = vmul.f32 %v7839_v30, %v9583_v38  ;;  %7850 = vrcp.f32 %v3298_v53 }
 0x96e   : >> { %v3300_v47 = vpop.xlane.xlu1 %3299  ;;  %v3327_v19 = vmul.f32 %v7841_v1, %v9603_v25  ;;  %v7843_v39 = vpop.eup %7842  ;;  %7852 = vrcp.f32 %v3296_v24 }
 0x96f   : >> { %v3340_v50 = vpack.c.bf16 %v3326_v2, %v3325_v4  ;;  %v3330_v38 = vmul.f32 %v7843_v39, %v9608_v61  ;;  %7854 = vrcp.f32 %v3300_v47 }
 0x970   : >> { %v3341_v36 = vpack.c.bf16 %v3328_v59, %v3327_v19 }
 0x972   : >> { %v3362_v6 = vpop.permute.xlu1 %3361 }
 0x973   : >> { %7094 = vmatprep.subr.bf16.mxu0 %v3362_v6  ;;  %v7845_v63 = vpop.eup %7844 }
 0x974   : >> { %7095 = vmatpush3.bf16.msra.mxu0 %v3362_v6  ;;  %v7847_v31 = vpop.eup %7846  ;;  %v3331_v32 = vmul.f32 %v7845_v63, %v9620_v26 }
 0x975   : >> { %7132 = vmatprep.subr.bf16.mxu0 %v3625_v10  ;;  %v7849_v20 = vpop.eup %7848  ;;  %v3329_v25 = vmul.f32 %v7847_v31, %v9594_v12 }
 0x976   : >> { %v3332_v55 = vmul.f32 %v7849_v20, %v9617_v27  ;;  %v3630_v30 = vpop.permute.xlu1 %3629 }
 0x977   : >> { %7097 = vmatmul.mubr.bf16.vlgmr.msra.gmra.mrb[88].mxu0 %v3340_v50  ;;  %v3342_v40 = vpack.c.bf16 %v3330_v38, %v3329_v25  ;;  %v7851_v37 = vpop.eup %7850 }
 0x978   : >> { %7100 = vmatprep.mubr.bf16.mxu0 %v3341_v36  ;;  %7133 = vmatpush3.bf16.msra.mxu0 %v3625_v10  ;;  %v3343_v46 = vpack.c.bf16 %v3332_v55, %v3331_v32  ;;  %v7853_v17 = vpop.eup %7852  ;;  %v3334_v13 = vmul.f32 %v7851_v37, %v9626_v49 }
 0x979   : >> { %7134 = vmatprep.subr.bf16.mxu0 %v3626_v35  ;;  %v3333_v24 = vmul.f32 %v7853_v17, %v9614_v44  ;;  %v7855_v27 = vpop.eup %7854 }
 0x97a   : >> { %v3335_v28 = vmul.f32 %v7855_v27, %v9629_v33  ;;  %v3632_v33 = vpop.permute.xlu1 %3631 }
 0x97b   : >> { %v3344_v34 = vpack.c.bf16 %v3334_v13, %v3333_v24 }
 0x97c   : >> { %7135 = vmatpush3.bf16.msra.mxu0 %v3626_v35 }
 0x97f   : >> { %7101 = vmatmul.mubr.bf16.gmra.mrb[92].mxu0 %v3342_v40 }
 0x980   : >> { %7104 = vmatprep.mubr.bf16.mxu0 %v3343_v46 }
 0x987   : >> { %7105 = vmatmul.mubr.bf16.gmra.mrb[96].mxu0 %v3344_v34 }
 0x99f   : >> { %v3302_v61 = vpop.xlane.xlu0 %3301 }
 0x9a0   : >> { %7856 = vrcp.f32 %v3302_v61 }
 0x9a1   : >> { %7858 = vrcp.f32 %v3304_v56 }
 0x9a3   : >> { %v3306_v12 = vpop.xlane.xlu0 %3305 }
 0x9a4   : >> { %7860 = vrcp.f32 %v3306_v12 }
 0x9a7   : >> { %v3628_v26 = vpop.permute.xlu0 %3627 }
 0x9aa   : >> { %v7857_v62 = vpop.eup %7856 }
 0x9ab   : >> { %v3634_v8 = vpop.permute.xlu0 %3633  ;;  %v3336_v5 = vmul.f32 %v7857_v62, %v9646_v18  ;;  %v7859_v7 = vpop.eup %7858 }
 0x9ac   : >> { %v3337_v29 = vmul.f32 %v7859_v7, %v9623_v48  ;;  %v3636_v18 = vpop.permute.xlu1 %3635 }
 0x9ad   : >> { %v3345_v49 = vpack.c.bf16 %v3336_v5, %v3335_v28 }
 0x9ae   : >> { %v7861_v21 = vpop.eup %7860 }
 0x9af   : >> { %v3638_v44 = vpop.permute.xlu0 %3637  ;;  %7108 = vmatprep.mubr.bf16.mxu0 %v3345_v49  ;;  %v3338_v47 = vmul.f32 %v7861_v21, %v9649_v54  ;;  %v11337_v54 = vmov 0  }
 0x9b0   : >> { %v3640_v48 = vpop.permute.xlu1 %3639 }
 0x9b1   : >> { %v3346_v56 = vpack.c.bf16 %v3338_v47, %v3337_v29 }
 0x9b3   : >> { %v3642_v43 = vpop.permute.xlu0 %3641  ;;  %7109 = vmatmul.mubr.bf16.gmra.mrb[100].mxu0 %v3346_v56 }
 0x9b4   : >> { %7136 = vmatprep.mubr.msk.bf16.mxu0 %vm1975_vm1, %v3628_v26  ;;  %v3919_v10 = vpop.permute.xlu1 %3918 }
 0x9b7   : >> { %v3917_v1 = vpop.permute.xlu0 %3916 }
 0x9b8   : >> { %7152 = vmatprep.subr.bf16.mxu1 %v3917_v1 }
 0x9bb   : >> { %7137 = vmatmul.mubr.msk.bf16.vlgmr.msra.gmra.mrb[104].mxu0 %vm1975_vm1, %v3630_v30  ;;  %v3921_v50 = vpop.permute.xlu0 %3920 }
 0x9bc   : >> { %7140 = vmatprep.mubr.msk.bf16.mxu0 %vm1975_vm1, %v3632_v33 }
 0x9bf   : >> { %v3923_v23 = vpop.permute.xlu0 %3922 }
 0x9c3   : >> { %7141 = vmatmul.mubr.msk.bf16.gmra.mrb[108].mxu0 %vm1975_vm1, %v3634_v8 }
 0x9c4   : >> { %7144 = vmatprep.mubr.msk.bf16.mxu0 %vm1975_vm1, %v3636_v18 }
 0x9cb   : >> { %7145 = vmatmul.mubr.msk.bf16.gmra.mrb[112].mxu0 %vm1975_vm1, %v3638_v44 }
 0x9cc   : >> { %7148 = vmatprep.mubr.msk.bf16.mxu0 %vm1975_vm1, %v3640_v48 }
 0x9d3   : >> { %7149 = vmatmul.mubr.msk.bf16.gmra.mrb[116].mxu0 %vm1975_vm1, %v3642_v43 }
 0x9d4   : >> { %4725 = vmatprep.mubr.bf16.mxu0 %v11337_v54 }
 0xa4a   : >> { %v7098_v2 = vpop.f32.mrb[88].mxu0 }
 0xa4b   : >> { %v3405_v53 = vpop.f32.mrb[89].mxu0 }
 0xa4c   : >> { %v7099_v6 = vpop.f32.mrb[90].mxu0 }
 0xa4d   : >> { %v3469_v59 = vpack.c.bf16 %v7099_v6, %v7098_v2  ;;  %v3408_v58 = vpop.f32.mrb[91].mxu0 }
 0xa4e   : >> { %v3468_v15 = vpack.c.bf16 %v3408_v58, %v3405_v53 }
 0xa50   : >> { %7116 = vmatprep.mubr.msk.bf16.mxu1 %vm1975_vm1, %v3468_v15 }
 0xa51   : >> { %7117 = vmatmul.mubr.msk.bf16.vlgmr.msra.gmra.mrb[56].mxu1 %vm1975_vm1, %v3469_v59 }
 0xa52   : >> { %7153 = vmatpush3.bf16.msra.mxu1 %v3917_v1  ;;  %v7102_v4 = vpop.f32.mrb[92].mxu0 }
 0xa53   : >> { %7154 = vmatprep.subr.bf16.mxu1 %v3919_v10  ;;  %v3421_v19 = vpop.f32.mrb[93].mxu0 }
 0xa54   : >> { %v7103_v39 = vpop.f32.mrb[94].mxu0 }
 0xa55   : >> { %v3471_v36 = vpack.c.bf16 %v7103_v39, %v7102_v4  ;;  %v3424_v63 = vpop.f32.mrb[95].mxu0 }
 0xa56   : >> { %v3470_v57 = vpack.c.bf16 %v3424_v63, %v3421_v19  ;;  %7155 = vmatpush3.bf16.msra.mxu1 %v3919_v10 }
 0xa57   : >> { %7156 = vmatprep.subr.bf16.mxu1 %v3921_v50 }
 0xa58   : >> { %7120 = vmatprep.mubr.msk.bf16.mxu1 %vm1975_vm1, %v3470_v57 }
 0xa59   : >> { %7121 = vmatmul.mubr.msk.bf16.gmra.mrb[60].mxu1 %vm1975_vm1, %v3471_v36 }
 0xa5a   : >> { %7157 = vmatpush3.bf16.msra.mxu1 %v3921_v50  ;;  %v7106_v35 = vpop.f32.mrb[96].mxu0 }
 0xa5b   : >> { %7158 = vmatprep.subr.bf16.mxu1 %v3923_v23  ;;  %v3437_v31 = vpop.f32.mrb[97].mxu0 }
 0xa5c   : >> { %v7107_v20 = vpop.f32.mrb[98].mxu0 }
 0xa5d   : >> { %v3473_v38 = vpack.c.bf16 %v7107_v20, %v7106_v35  ;;  %v3440_v32 = vpop.f32.mrb[99].mxu0 }
 0xa5e   : >> { %v3472_v25 = vpack.c.bf16 %v3440_v32, %v3437_v31  ;;  %7159 = vmatpush3.bf16.msra.mxu1 %v3923_v23 }
 0xa60   : >> { %7124 = vmatprep.mubr.msk.bf16.mxu1 %vm1975_vm1, %v3472_v25 }
 0xa61   : >> { %7125 = vmatmul.mubr.msk.bf16.gmra.mrb[48].mxu1 %vm1975_vm1, %v3473_v38 }
 0xa86   : >> { %v7110_v55 = vpop.f32.mrb[100].mxu0 }
 0xa87   : >> { %v3453_v40 = vpop.f32.mrb[101].mxu0 }
 0xa88   : >> { %v7111_v37 = vpop.f32.mrb[102].mxu0 }
 0xa89   : >> { %v3475_v46 = vpack.c.bf16 %v7111_v37, %v7110_v55  ;;  %v3456_v17 = vpop.f32.mrb[103].mxu0 }
 0xa8a   : >> { %v3474_v13 = vpack.c.bf16 %v3456_v17, %v3453_v40 }
 0xa8c   : >> { %7128 = vmatprep.mubr.msk.bf16.mxu1 %vm1975_vm1, %v3474_v13 }
 0xa8d   : >> { %7129 = vmatmul.mubr.msk.bf16.gmra.mrb[52].mxu1 %vm1975_vm1, %v3475_v46 }
 0xa8e   : >> { %v7138_v24 = vpop.f32.mrb[104].mxu0 }
 0xa8f   : >> { %v3710_v34 = vadd.f32 %v7138_v24, %v11326_v42  ;;  %v3701_v61 = vpop.f32.mrb[105].mxu0 }
 0xa90   : >> { %v3702_v12 = vadd.f32 %v3701_v61, %v11326_v42  ;;  %v7139_v26 = vpop.f32.mrb[106].mxu0 }
 0xa91   : >> { %3768 = vmax.xlane.f32.xlu0 %v3710_v34  ;;  %v3704_v27 = vpop.f32.mrb[107].mxu0  ;;  %v3713_v8 = vadd.f32 %v7139_v26, %v11326_v42 }
 0xa92   : >> { %v3705_v62 = vadd.f32 %v3704_v27, %v11326_v42  ;;  %3764 = vmax.xlane.f32.xlu1 %v3702_v12 }
 0xa95   : >> { %3766 = vmax.xlane.f32.xlu0 %v3705_v62 }
 0xa96   : >> { %3770 = vmax.xlane.f32.xlu1 %v3713_v8  ;;  %v7142_v28 = vpop.f32.mrb[108].mxu0 }
 0xa97   : >> { %v3726_v5 = vadd.f32 %v7142_v28, %v11326_v42  ;;  %v3717_v7 = vpop.f32.mrb[109].mxu0 }
 0xa98   : >> { %v7143_v49 = vpop.f32.mrb[110].mxu0  ;;  %v3718_v29 = vadd.f32 %v3717_v7, %v11326_v42 }
 0xa99   : >> { %v3729_v21 = vadd.f32 %v7143_v49, %v11326_v42  ;;  %3776 = vmax.xlane.f32.xlu0 %v3726_v5  ;;  %v3720_v44 = vpop.f32.mrb[111].mxu0 }
 0xa9a   : >> { %v3721_v47 = vadd.f32 %v3720_v44, %v11326_v42 }
 0xa9b   : >> { %3778 = vmax.xlane.f32.xlu1 %v3729_v21 }
 0xa9d   : >> { %3772 = vmax.xlane.f32.xlu0 %v3718_v29 }
 0xa9e   : >> { %v7146_v56 = vpop.f32.mrb[112].mxu0 }
 0xa9f   : >> { %v9714_v43 = vadd.f32 %v7146_v56, %v11326_v42  ;;  %3774 = vmax.xlane.f32.xlu1 %v3721_v47  ;;  %v3733_v30 = vpop.f32.mrb[113].mxu0 }
 0xaa0   : >> { %v7147_v1 = vpop.f32.mrb[114].mxu0  ;;  %v9721_v48 = vadd.f32 %v3733_v30, %v11326_v42 }
 0xaa1   : >> { %v9717_v33 = vadd.f32 %v7147_v1, %v11326_v42  ;;  %3784 = vmax.xlane.f32.xlu0 %v9714_v43  ;;  %v3736_v18 = vpop.f32.mrb[115].mxu0 }
 0xaa2   : >> { %v9725_v2 = vadd.f32 %v3736_v18, %v11326_v42 }
 0xaa3   : >> { %3786 = vmax.xlane.f32.xlu1 %v9717_v33 }
 0xaa5   : >> { %3780 = vmax.xlane.f32.xlu0 %v9721_v48 }
 0xaa6   : >> { %v7150_v53 = vpop.f32.mrb[116].mxu0 }
 0xaa7   : >> { %v9729_v6 = vadd.f32 %v7150_v53, %v11326_v42  ;;  %3782 = vmax.xlane.f32.xlu1 %v9725_v2  ;;  %v3749_v59 = vpop.f32.mrb[117].mxu0 }
 0xaa8   : >> { %v7151_v58 = vpop.f32.mrb[118].mxu0  ;;  %v9734_v10 = vadd.f32 %v3749_v59, %v11326_v42 }
 0xaa9   : >> { %3792 = vmax.xlane.f32.xlu0 %v9729_v6  ;;  %v3752_v15 = vpop.f32.mrb[119].mxu0  ;;  %v9742_v4 = vadd.f32 %v7151_v58, %v11326_v42 }
 0xaaa   : >> { %v9746_v19 = vadd.f32 %v3752_v15, %v11326_v42 }
 0xaad   : >> { %3788 = vmax.xlane.f32.xlu0 %v9734_v10 }
 0xab8   : >> { %3926 = vrot.lane.b32.xlu1 %v11331_v16, %s8236_s11 }
 0xac3   : >> { %3924 = vrot.lane.b32.xlu0 %v11327_v0, %s8236_s11 }
 0xadc   : >> { %3794 = vmax.xlane.f32.xlu1 %v9742_v4 }
 0xae0   : >> { %3790 = vmax.xlane.f32.xlu1 %v9746_v19 }
 0xb1e   : >> { %v3769_v50 = vpop.xlane.xlu0 %3768 }
 0xb1f   : >> { %v3798_v39 = vsub.f32 %v3710_v34, %v3769_v50  ;;  %v3765_v36 = vpop.xlane.xlu1 %3764 }
 0xb20   : >> { %v3796_v63 = vsub.f32 %v3702_v12, %v3765_v36 }
 0xb21   : >> { %v3816_v57 = vmul.f32 1.442695, %v3798_v39 }
 0xb22   : >> { %v3767_v23 = vpop.xlane.xlu0 %3766  ;;  %v3812_v16 = vmul.f32 1.442695, %v3796_v63 }
 0xb23   : >> { %7862 = vpow2.f32 %v3816_v57  ;;  %v3771_v35 = vpop.xlane.xlu1 %3770  ;;  %v3797_v31 = vsub.f32 %v3705_v62, %v3767_v23 }
 0xb24   : >> { %v3799_v0 = vsub.f32 %v3713_v8, %v3771_v35  ;;  %7864 = vpow2.f32 %v3812_v16 }
 0xb25   : >> { %v3814_v55 = vmul.f32 1.442695, %v3797_v31 }
 0xb26   : >> { %v3818_v20 = vmul.f32 1.442695, %v3799_v0  ;;  %v3777_v38 = vpop.xlane.xlu0 %3776 }
 0xb27   : >> { %v3802_v32 = vsub.f32 %v3726_v5, %v3777_v38 }
 0xb28   : >> { %v3779_v25 = vpop.xlane.xlu1 %3778  ;;  %7866 = vpow2.f32 %v3818_v20 }
 0xb29   : >> { %v3824_v42 = vmul.f32 1.442695, %v3802_v32  ;;  %v3803_v40 = vsub.f32 %v3729_v21, %v3779_v25 }
 0xb2a   : >> { %v3773_v37 = vpop.xlane.xlu0 %3772 }
 0xb2b   : >> { %7868 = vpow2.f32 %v3824_v42  ;;  %v3800_v46 = vsub.f32 %v3718_v29, %v3773_v37  ;;  %v3826_v61 = vmul.f32 1.442695, %v3803_v40 }
 0xb2c   : >> { %v3775_v17 = vpop.xlane.xlu1 %3774  ;;  %7870 = vpow2.f32 %v3814_v55 }
 0xb2d   : >> { %v9749_v13 = vpop.eup %7862  ;;  %v3820_v24 = vmul.f32 1.442695, %v3800_v46  ;;  %v3801_v34 = vsub.f32 %v3721_v47, %v3775_v17 }
 0xb2e   : >> { %v3785_v12 = vpop.xlane.xlu0 %3784  ;;  %3848 = vadd.xlane.f32.xlu1 %v9749_v13  ;;  %v9752_v27 = vpop.eup %7864 }
 0xb2f   : >> { %7872 = vpow2.f32 %v3820_v24  ;;  %v3822_v26 = vmul.f32 1.442695, %v3801_v34  ;;  %v3806_v59 = vsub.f32 %v9714_v43, %v3785_v12 }
 0xb30   : >> { %7874 = vpow2.f32 %v3826_v61  ;;  %v3787_v28 = vpop.xlane.xlu1 %3786 }
 0xb31   : >> { %7876 = vpow2.f32 %v3822_v26  ;;  %v3807_v15 = vsub.f32 %v9717_v33, %v3787_v28  ;;  %v3832_v39 = vmul.f32 1.442695, %v3806_v59  ;;  %v7556_v26 = vld [vmem:[%s9249_s14 + $0x30] sm:$0xff]  }
 0xb32   : >> { %v3781_v62 = vpop.xlane.xlu0 %3780  ;;  %3844 = vadd.xlane.f32.xlu1 %v9752_v27  ;;  %v9755_v8 = vpop.eup %7866 }
 0xb33   : >> { %v3804_v18 = vsub.f32 %v9721_v48, %v3781_v62  ;;  %v3834_v36 = vmul.f32 1.442695, %v3807_v15 }
 0xb34   : >> { %v3783_v44 = vpop.xlane.xlu1 %3782 }
 0xb35   : >> { %v9757_v5 = vpop.eup %7868  ;;  %v3805_v53 = vsub.f32 %v9725_v2, %v3783_v44  ;;  %v3828_v58 = vmul.f32 1.442695, %v3804_v18 }
 0xb36   : >> { %v3793_v7 = vpop.xlane.xlu0 %3792  ;;  %3856 = vadd.xlane.f32.xlu0 %v9757_v5  ;;  %3850 = vadd.xlane.f32.xlu1 %v9755_v8  ;;  %v9761_v49 = vpop.eup %7870 }
 0xb37   : >> { %v3830_v50 = vmul.f32 1.442695, %v3805_v53  ;;  %7878 = vpow2.f32 %v3828_v58 }
 0xb38   : >> { %v3927_v1 = vpop.permute.xlu1 %3926 }
 0xb39   : >> { %v9763_v21 = vpop.eup %7872  ;;  %7880 = vpow2.f32 %v3830_v50 }
 0xb3a   : >> { %3852 = vadd.xlane.f32.xlu0 %v9763_v21  ;;  %v3789_v29 = vpop.xlane.xlu0 %3788  ;;  %3846 = vadd.xlane.f32.xlu1 %v9761_v49  ;;  %v9767_v47 = vpop.eup %7874  ;;  %7882 = vpow2.f32 %v3832_v39 }
 0xb3b   : >> { %v9769_v56 = vpop.eup %7876  ;;  %v3808_v63 = vsub.f32 %v9734_v10, %v3789_v29  ;;  %7884 = vpow2.f32 %v3834_v36 }
 0xb3d   : >> { %v3836_v48 = vmul.f32 1.442695, %v3808_v63 }
 0xb3e   : >> { %v3925_v30 = vpop.permute.xlu0 %3924  ;;  %3858 = vadd.xlane.f32.xlu0 %v9767_v47  ;;  %3854 = vadd.xlane.f32.xlu1 %v9769_v56 }
 0xb3f   : >> { %7160 = vmatprep.subr.bf16.mxu1 %v3925_v30  ;;  %7886 = vpow2.f32 %v3836_v48 }
 0xb40   : >> { %7161 = vmatpush3.bf16.msra.mxu1 %v3925_v30 }
 0xb41   : >> { %7162 = vmatprep.subr.bf16.mxu1 %v3927_v1  ;;  %v9785_v16 = vpop.eup %7878 }
 0xb43   : >> { %v9787_v35 = vpop.eup %7880 }
 0xb44   : >> { %7163 = vmatpush3.bf16.msra.mxu1 %v3927_v1 }
 0xb4f   : >> { %3930 = vrot.lane.b32.xlu1 %v11332_v60, %s8236_s11 }
 0xb54   : >> { %3928 = vrot.lane.b32.xlu0 %v11330_v3, %s8236_s11  ;;  %v3810_v3 = vsub.f32 %v9729_v6, %v3793_v7  ;;  %v9791_v6 = vpop.eup %7882 }
 0xb55   : >> { %v9793_v10 = vpop.eup %7884 }
 0xb56   : >> { %v3840_v23 = vmul.f32 1.442695, %v3810_v3 }
 0xb69   : >> { %v3795_v60 = vpop.xlane.xlu1 %3794 }
 0xb6a   : >> { %v3811_v2 = vsub.f32 %v9742_v4, %v3795_v60  ;;  %v9797_v4 = vpop.eup %7886 }
 0xb6c   : >> { %v3842_v0 = vmul.f32 1.442695, %v3811_v2 }
 0xb6d   : >> { %v3791_v57 = vpop.xlane.xlu1 %3790 }
 0xb6e   : >> { %v3809_v43 = vsub.f32 %v9746_v19, %v3791_v57 }
 0xb70   : >> { %v3838_v33 = vmul.f32 1.442695, %v3809_v43 }
 0xb72   : >> { %7888 = vpow2.f32 %v3838_v33 }
 0xb73   : >> { %3860 = vadd.xlane.f32.xlu1 %v9785_v16  ;;  %3862 = vadd.xlane.f32.xlu0 %v9787_v35  ;;  %7890 = vpow2.f32 %v3840_v23 }
 0xb74   : >> { %7892 = vpow2.f32 %v3842_v0 }
 0xb77   : >> { %3866 = vadd.xlane.f32.xlu1 %v9793_v10  ;;  %3864 = vadd.xlane.f32.xlu0 %v9791_v6 }
 0xb7b   : >> { %3868 = vadd.xlane.f32.xlu0 %v9797_v4 }
 0xb7c   : >> { %v9800_v19 = vpop.eup %7888 }
 0xb7d   : >> { %3870 = vadd.xlane.f32.xlu1 %v9800_v19  ;;  %v9803_v31 = vpop.eup %7890 }
 0xb7e   : >> { %v9806_v20 = vpop.eup %7892 }
 0xb7f   : >> { %3872 = vadd.xlane.f32.xlu0 %v9803_v31 }
 0xb81   : >> { %3874 = vadd.xlane.f32.xlu1 %v9806_v20 }
 0xbbb   : >> { %v3849_v38 = vpop.xlane.xlu1 %3848 }
 0xbbf   : >> { %v3845_v32 = vpop.xlane.xlu1 %3844 }
 0xbc3   : >> { %v3857_v25 = vpop.xlane.xlu0 %3856  ;;  %v3851_v42 = vpop.xlane.xlu1 %3850 }
 0xbc4   : >> { %7894 = vrcp.f32 %v3851_v42 }
 0xbc5   : >> { %7896 = vrcp.f32 %v3845_v32 }
 0xbc6   : >> { %7898 = vrcp.f32 %v3849_v38 }
 0xbc7   : >> { %v3853_v55 = vpop.xlane.xlu0 %3852  ;;  %v3847_v40 = vpop.xlane.xlu1 %3846 }
 0xbc8   : >> { %7900 = vrcp.f32 %v3847_v40 }
 0xbc9   : >> { %7902 = vrcp.f32 %v3853_v55 }
 0xbcb   : >> { %v3859_v37 = vpop.xlane.xlu0 %3858  ;;  %v3855_v46 = vpop.xlane.xlu1 %3854 }
 0xbcc   : >> { %7904 = vrcp.f32 %v3855_v46 }
 0xbcd   : >> { %7906 = vrcp.f32 %v3859_v37 }
 0xbce   : >> { %v7895_v24 = vpop.eup %7894  ;;  %7908 = vrcp.f32 %v3857_v25 }
 0xbcf   : >> { %v3929_v17 = vpop.permute.xlu0 %3928  ;;  %v7897_v34 = vpop.eup %7896  ;;  %v3895_v28 = vmul.f32 %v7895_v24, %v9755_v8  ;;  %v7557_v24 = vld [vmem:[%s9249_s14 + $0x38] sm:$0xff]  }
 0xbd0   : >> { %7164 = vmatprep.subr.bf16.mxu1 %v3929_v17  ;;  %v3931_v61 = vpop.permute.xlu1 %3930  ;;  %v7899_v12 = vpop.eup %7898  ;;  %v3892_v7 = vmul.f32 %v7897_v34, %v9752_v27 }
 0xbd1   : >> { %7165 = vmatpush3.bf16.msra.mxu1 %v3929_v17  ;;  %v3894_v30 = vmul.f32 %v7899_v12, %v9749_v13 }
 0xbd2   : >> { %7166 = vmatprep.subr.bf16.mxu1 %v3931_v61  ;;  %v7901_v62 = vpop.eup %7900 }
 0xbd3   : >> { %v3893_v44 = vmul.f32 %v7901_v62, %v9761_v49  ;;  %v7903_v29 = vpop.eup %7902  ;;  %v3909_v53 = vpack.c.bf16 %v3895_v28, %v3894_v30 }
 0xbd4   : >> { %v3896_v58 = vmul.f32 %v7903_v29, %v9763_v21 }
 0xbd5   : >> { %7167 = vmatpush3.bf16.msra.mxu1 %v3931_v61  ;;  %v3908_v1 = vpack.c.bf16 %v3893_v44, %v3892_v7 }
 0xbd6   : >> { %7184 = vmatprep.subr.bf16.mxu1 %v7556_v26  ;;  %v7905_v18 = vpop.eup %7904 }
 0xbd7   : >> { %v7907_v59 = vpop.eup %7906  ;;  %7168 = vmatprep.mubr.bf16.mxu1 %v3908_v1  ;;  %v3897_v15 = vmul.f32 %v7905_v18, %v9769_v56 }
 0xbd8   : >> { %7169 = vmatmul.mubr.bf16.vlgmr.msra.gmra.mrb[64].mxu1 %v3909_v53  ;;  %v7909_v8 = vpop.eup %7908  ;;  %v3899_v27 = vmul.f32 %v7907_v59, %v9767_v47 }
 0xbd9   : >> { %v3910_v50 = vpack.c.bf16 %v3897_v15, %v3896_v58  ;;  %7185 = vmatpush3.bf16.msra.mxu1 %v7556_v26  ;;  %v3898_v13 = vmul.f32 %v7909_v8, %v9757_v5 }
 0xbda   : >> { %7186 = vmatprep.subr.bf16.mxu1 %v7557_v24 }
 0xbdb   : >> { %7172 = vmatprep.mubr.bf16.mxu1 %v3910_v50  ;;  %v3911_v49 = vpack.c.bf16 %v3899_v27, %v3898_v13  ;;  %v11338_v13 = vld [vmem:[#allocation19_spill] sm:$0xff] }
 0xbdd   : >> { %7187 = vmatpush3.bf16.msra.mxu1 %v7557_v24 }
 0xbe0   : >> { %7173 = vmatmul.mubr.bf16.gmra.mrb[68].mxu1 %v3911_v49  ;;  %v4216_v49 = vsub.s32 3, %v11338_v13 }
 0xc00   : >> { %v3863_v39 = vpop.xlane.xlu0 %3862  ;;  %v3861_v36 = vpop.xlane.xlu1 %3860 }
 0xc01   : >> { %7910 = vrcp.f32 %v3863_v39 }
 0xc02   : >> { %7912 = vrcp.f32 %v3861_v36  ;;  %v9838_v36 = vld [vmem:[%s8774_s19] sm:$0xff] }
 0xc04   : >> { %v3865_v63 = vpop.xlane.xlu0 %3864  ;;  %v3867_v60 = vpop.xlane.xlu1 %3866 }
 0xc05   : >> { %7914 = vrcp.f32 %v3865_v63  ;;  %v11339_v63 = vld [vmem:[#allocation22_spill] sm:$0xff] }
 0xc06   : >> { %7916 = vrcp.f32 %v3867_v60  ;;  %v9842_v60 = vrot.slane %v9838_v36, %v11339_v63 }
 0xc08   : >> { %v3869_v21 = vpop.xlane.xlu0 %3868 }
 0xc09   : >> { %7918 = vrcp.f32 %v3869_v21 }
 0xc0a   : >> { %v3871_v56 = vpop.xlane.xlu1 %3870 }
 0xc0b   : >> { %v7911_v3 = vpop.eup %7910  ;;  %7920 = vrcp.f32 %v3871_v56 }
 0xc0c   : >> { %v7913_v48 = vpop.eup %7912  ;;  %v3873_v47 = vpop.xlane.xlu0 %3872  ;;  %v3901_v57 = vmul.f32 %v7911_v3, %v9787_v35  ;;  %v9848_v3 = vrot.slane %v9838_v36, %v4216_v49 }
 0xc0d   : >> { %7922 = vrcp.f32 %v3873_v47  ;;  %v3900_v5 = vmul.f32 %v7913_v48, %v9785_v16 }
 0xc0e   : >> { %v3875_v2 = vpop.xlane.xlu1 %3874 }
 0xc0f   : >> { %v7915_v43 = vpop.eup %7914  ;;  %7924 = vrcp.f32 %v3875_v2  ;;  %v3912_v23 = vpack.c.bf16 %v3901_v57, %v3900_v5 }
 0xc10   : >> { %v7917_v33 = vpop.eup %7916  ;;  %v3902_v0 = vmul.f32 %v7915_v43, %v9791_v6 }
 0xc11   : >> { %7176 = vmatprep.mubr.bf16.mxu1 %v3912_v23  ;;  %v3903_v38 = vmul.f32 %v7917_v33, %v9793_v10 }
 0xc13   : >> { %v7919_v32 = vpop.eup %7918  ;;  %v3913_v25 = vpack.c.bf16 %v3903_v38, %v3902_v0 }
 0xc14   : >> { %v3904_v35 = vmul.f32 %v7919_v32, %v9797_v4 }
 0xc15   : >> { %v7921_v42 = vpop.eup %7920  ;;  %7177 = vmatmul.mubr.bf16.gmra.mrb[72].mxu1 %v3913_v25  ;;  %v11340_v25 = vld [vmem:[#allocation18_spill] sm:$0xff] }
 0xc16   : >> { %v3905_v55 = vmul.f32 %v7921_v42, %v9800_v19 }
 0xc17   : >> { %v7923_v16 = vpop.eup %7922 }
 0xc18   : >> { %v3914_v40 = vpack.c.bf16 %v3905_v55, %v3904_v35  ;;  %v3906_v46 = vmul.f32 %v7923_v16, %v9803_v31 }
 0xc19   : >> { %v7925_v37 = vpop.eup %7924 }
 0xc1a   : >> { %7180 = vmatprep.mubr.bf16.mxu1 %v3914_v40  ;;  %v3907_v6 = vmul.f32 %v7925_v37, %v9806_v20  ;;  %v11342_v40 = vld [vmem:[#allocation17_spill] sm:$0xff] }
 0xc1c   : >> { %v3915_v17 = vpack.c.bf16 %v3907_v6, %v3906_v46 }
 0xc1e   : >> { %7181 = vmatmul.mubr.bf16.gmra.mrb[76].mxu1 %v3915_v17 }
 0xcab   : >> { %v7170_v10 = vpop.f32.mrb[64].mxu1 }
 0xcac   : >> { %v3974_v34 = vpop.f32.mrb[65].mxu1 }
 0xcad   : >> { %v7171_v61 = vpop.f32.mrb[66].mxu1 }
 0xcae   : >> { %v4038_v12 = vpack.c.bf16 %v7171_v61, %v7170_v10  ;;  %v3977_v4 = vpop.f32.mrb[67].mxu1  ;;  %v11344_v10 = vld [vmem:[#allocation16_spill] sm:$0xff] }
 0xcaf   : >> { %v4037_v26 = vpack.c.bf16 %v3977_v4, %v3974_v34 }
 0xcb1   : >> { %7188 = vmatprep.mubr.msk.bf16.mxu1 %vm1975_vm1, %v4037_v26 }
 0xcb2   : >> { %7189 = vmatmul.mubr.msk.bf16.vlgmr.msra.gmra.mrb[56].mxu1 %vm1975_vm1, %v4038_v12 }
 0xcb3   : >> { %v7174_v19 = vpop.f32.mrb[68].mxu1 }
 0xcb4   : >> { %v3990_v62 = vpop.f32.mrb[69].mxu1 }
 0xcb5   : >> { %v7175_v31 = vpop.f32.mrb[70].mxu1 }
 0xcb6   : >> { %v4040_v28 = vpack.c.bf16 %v7175_v31, %v7174_v19  ;;  %v3993_v20 = vpop.f32.mrb[71].mxu1  ;;  %v11348_v19 = vld [vmem:[#allocation14_spill] sm:$0xff] }
 0xcb7   : >> { %v4039_v7 = vpack.c.bf16 %v3993_v20, %v3990_v62 }
 0xcb9   : >> { %7192 = vmatprep.mubr.msk.bf16.mxu1 %vm1975_vm1, %v4039_v7  ;;  %v11352_v7 = vld [vmem:[#allocation12_spill] sm:$0xff] }
 0xcba   : >> { %7193 = vmatmul.mubr.msk.bf16.gmra.mrb[60].mxu1 %vm1975_vm1, %v4040_v28  ;;  %v11350_v28 = vld [vmem:[#allocation13_spill] sm:$0xff] }
 0xce8   : >> { %v7178_v44 = vpop.f32.mrb[72].mxu1 }
 0xce9   : >> { %v4006_v29 = vpop.f32.mrb[73].mxu1 }
 0xcea   : >> { %v7179_v30 = vpop.f32.mrb[74].mxu1 }
 0xceb   : >> { %v4042_v1 = vpack.c.bf16 %v7179_v30, %v7178_v44  ;;  %v4009_v18 = vpop.f32.mrb[75].mxu1 }
 0xcec   : >> { %v4041_v53 = vpack.c.bf16 %v4009_v18, %v4006_v29  ;;  %v11354_v29 = vld [vmem:[#allocation11_spill] sm:$0xff] }
 0xcee   : >> { %7196 = vmatprep.mubr.msk.bf16.mxu1 %vm1975_vm1, %v4041_v53 }
 0xcef   : >> { %7197 = vmatmul.mubr.msk.bf16.gmra.mrb[48].mxu1 %vm1975_vm1, %v4042_v1 }
 0xcf1   : >> { %v7182_v59 = vpop.f32.mrb[76].mxu1 }
 0xcf2   : >> { %v4022_v58 = vpop.f32.mrb[77].mxu1 }
 0xcf3   : >> { %v7183_v15 = vpop.f32.mrb[78].mxu1 }
 0xcf4   : >> { %v4044_v8 = vpack.c.bf16 %v7183_v15, %v7182_v59  ;;  %v4025_v50 = vpop.f32.mrb[79].mxu1 }
 0xcf5   : >> { %v4043_v27 = vpack.c.bf16 %v4025_v50, %v4022_v58 }
 0xcf7   : >> { %7200 = vmatprep.mubr.msk.bf16.mxu1 %vm1975_vm1, %v4043_v27 }
 0xcf8   : >> { %7201 = vmatmul.mubr.msk.bf16.gmra.mrb[52].mxu1 %vm1975_vm1, %v4044_v8 }
 0xcf9   : >> { %4838 = vmatprep.mubr.bf16.mxu1 %v11337_v54 }
 0xd85   : >> { %v7190_v39 = vpop.f32.mrb[56].mxu1 }
 0xd86   : >> { %v7224_v21 = vadd.f32 %v7190_v39, %v9474_v9  ;;  %v4115_v56 = vpop.f32.mrb[57].mxu1 }
 0xd87   : >> { %v7225_v48 = vadd.f32 %v4115_v56, %v9480_v11  ;;  %v7191_v47 = vpop.f32.mrb[58].mxu1  ;;  %v11356_v56 = vld [vmem:[#allocation10_spill] sm:$0xff] }
 0xd88   : >> { %v7226_v57 = vadd.f32 %v7191_v47, %v9482_v51  ;;  %v4118_v5 = vpop.f32.mrb[59].mxu1  ;;  %v4200_v2 = vadd.f32 %v7224_v21, %v9842_v60 }
 0xd89   : >> { %v4198_v43 = vadd.f32 %v7225_v48, %v9842_v60  ;;  %v7227_v23 = vadd.f32 %v4118_v5, %v9484_v14 }
 0xd8a   : >> { %v4201_v33 = vadd.f32 %v7226_v57, %v9842_v60  ;;  %v4220_v38 = vmul.f32 %v9848_v3, %v4200_v2  ;;  %v11358_v57 = vld [vmem:[#allocation9_spill] sm:$0xff] }
 0xd8b   : >> { %v4218_v9 = vmul.f32 %v9848_v3, %v4198_v43  ;;  %v4199_v0 = vadd.f32 %v7227_v23, %v9842_v60  ;;  %v11360_v23 = vld [vmem:[#allocation8_spill] sm:$0xff] }
 0xd8c   : >> { %v4221_v55 = vmul.f32 %v9848_v3, %v4201_v33  ;;  %v9876_v34 = vadd.f32 %v11344_v10, %v4220_v38  ;;  %v11370_v10 = vld [vmem:[#allocation3_spill] sm:$0xff] }
 0xd8d   : >> { %v4219_v11 = vmul.f32 %v9848_v3, %v4199_v0  ;;  %v7194_v32 = vpop.f32.mrb[60].mxu1  ;;  %v9861_v51 = vadd.f32 %v11340_v25, %v4218_v9 }
 0xd8e   : >> { %v7228_v42 = vadd.f32 %v7194_v32, %v9490_v52  ;;  %v4131_v35 = vpop.f32.mrb[61].mxu1  ;;  %11345 = vst [vmem:[#allocation24_spill] sm:$0xff] %v9876_v34  ;;  %v11362_v32 = vld [vmem:[#allocation7_spill] sm:$0xff] }
 0xd8f   : >> { %11341 = vst [vmem:[#allocation23_spill] sm:$0xff] %v9861_v51  ;;  %v7229_v14 = vadd.f32 %v4131_v35, %v9496_v45  ;;  %4250 = vadd.xlane.f32.xlu0 %v9861_v51  ;;  %v7195_v16 = vpop.f32.mrb[62].mxu1  ;;  %v9868_v37 = vadd.f32 %v11342_v40, %v4219_v11  ;;  %v11364_v40 = vld [vmem:[#allocation6_spill] sm:$0xff] }
 0xd90   : >> { %v7230_v46 = vadd.f32 %v7195_v16, %v9498_v22  ;;  %v4134_v6 = vpop.f32.mrb[63].mxu1  ;;  %v4204_v17 = vadd.f32 %v7228_v42, %v9842_v60  ;;  %v11346_v22 = vld [vmem:[#allocation15_spill] sm:$0xff] }
 0xd91   : >> { %11343 = vst [vmem:[#allocation31_spill] sm:$0xff] %v9868_v37  ;;  %v4202_v24 = vadd.f32 %v7229_v14, %v9842_v60  ;;  %v7231_v52 = vadd.f32 %v4134_v6, %v9500_v41  ;;  %4252 = vadd.xlane.f32.xlu1 %v9868_v37  ;;  %v9883_v4 = vadd.f32 %v11346_v22, %v4221_v55  ;;  %v7563_v22 = vld [vmem:[%s9957_s29 + $0xc] ss:$16 sps:$4 sm:$0xff]  }
 0xd92   : >> { %v4205_v61 = vadd.f32 %v7230_v46, %v9842_v60  ;;  %v4224_v26 = vmul.f32 %v9848_v3, %v4204_v17  ;;  %v11366_v17 = vld [vmem:[#allocation5_spill] sm:$0xff]  ;;  %4806 = vmatprep.subr.bf16.mxu1 %v7563_v22  ;;  %v7576_v22 = vld [vmem:[%s9957_s29 + $0x60] ss:$16 sps:$4 sm:$0xff]  }
 0xd93   : >> { %v4222_v45 = vmul.f32 %v9848_v3, %v4202_v24  ;;  %v4203_v12 = vadd.f32 %v7231_v52, %v9842_v60  ;;  %4254 = vadd.xlane.f32.xlu0 %v9876_v34  ;;  %11347 = vst [vmem:[#allocation32_spill] sm:$0xff] %v9883_v4  ;;  %v11368_v52 = vld [vmem:[#allocation4_spill] sm:$0xff] }
 0xd94   : >> { %v4225_v31 = vmul.f32 %v9848_v3, %v4205_v61  ;;  %v9898_v44 = vadd.f32 %v11352_v7, %v4224_v26  ;;  %v7560_v61 = vld [vmem:[%s9957_s29 + $0x4] ss:$16 sps:$4 sm:$0xff]   ;;  %v7564_v26 = vld [vmem:[%s9957_s29 + $0x20] ss:$16 sps:$4 sm:$0xff]  }
 0xd95   : >> { %v4223_v41 = vmul.f32 %v9848_v3, %v4203_v12  ;;  %4256 = vadd.xlane.f32.xlu1 %v9883_v4  ;;  %v9889_v62 = vadd.f32 %v11348_v19, %v4222_v45  ;;  %v7561_v12 = vld [vmem:[%s9957_s29 + $0x8] ss:$16 sps:$4 sm:$0xff]   ;;  %4693 = vmatprep.subr.bf16.mxu0 %v7560_v61  ;;  %v7578_v61 = vld [vmem:[%s9957_s29 + $0x64] ss:$16 sps:$4 sm:$0xff]  }
 0xd96   : >> { %11353 = vst [vmem:[#allocation26_spill] sm:$0xff] %v9898_v44  ;;  %v9902_v30 = vadd.f32 %v11354_v29, %v4225_v31  ;;  %v7567_v19 = vld [vmem:[%s9957_s29 + $0x28] ss:$16 sps:$4 sm:$0xff]   ;;  %4807 = vmatpush1.bf16.msra.mxu1 %v7561_v12  ;;  %v7569_v31 = vld [vmem:[%s9957_s29 + $0x2c] ss:$16 sps:$4 sm:$0xff]  }
 0xd97   : >> { %11349 = vst [vmem:[#allocation33_spill] sm:$0xff] %v9889_v62  ;;  %4258 = vadd.xlane.f32.xlu0 %v9889_v62  ;;  %v9894_v20 = vadd.f32 %v11350_v28, %v4223_v41  ;;  %v7566_v41 = vld [vmem:[%s9957_s29 + $0x24] ss:$16 sps:$4 sm:$0xff]   ;;  %4808 = vmatprep.subr.bf16.mxu1 %v7569_v31  ;;  %v7581_v12 = vld [vmem:[%s9957_s29 + $0x6c] ss:$16 sps:$4 sm:$0xff]  }
 0xd98   : >> { %11355 = vst [vmem:[#allocation25_spill] sm:$0xff] %v9902_v30  ;;  %v7582_v31 = vld [vmem:[%s9957_s29 + $0x80] ss:$16 sps:$4 sm:$0xff]  }
 0xd99   : >> { %11351 = vst [vmem:[#allocation28_spill] sm:$0xff] %v9894_v20  ;;  %4260 = vadd.xlane.f32.xlu1 %v9894_v20 }
 0xd9a   : >> { %4809 = vmatpush1.bf16.msra.mxu1 %v7567_v19  ;;  %v7587_v19 = vld [vmem:[%s9957_s29 + $0x8c] ss:$16 sps:$4 sm:$0xff]  }
 0xd9b   : >> { %4262 = vadd.xlane.f32.xlu0 %v9898_v44 }
 0xd9d   : >> { %4264 = vadd.xlane.f32.xlu1 %v9902_v30 }
 0xdc2   : >> { %v7198_v1 = vpop.f32.mrb[48].mxu1 }
 0xdc3   : >> { %v4147_v18 = vpop.f32.mrb[49].mxu1  ;;  %v4208_v53 = vadd.f32 %v7198_v1, %v9842_v60 }
 0xdc4   : >> { %v4206_v59 = vadd.f32 %v9842_v60, %v4147_v18  ;;  %v7199_v58 = vpop.f32.mrb[50].mxu1 }
 0xdc5   : >> { %v4150_v15 = vpop.f32.mrb[51].mxu1  ;;  %v4209_v50 = vadd.f32 %v7199_v58, %v9842_v60  ;;  %v4228_v39 = vmul.f32 %v9848_v3, %v4208_v53 }
 0xdc6   : >> { %v4226_v8 = vmul.f32 %v9848_v3, %v4206_v59  ;;  %v4207_v27 = vadd.f32 %v9842_v60, %v4150_v15 }
 0xdc7   : >> { %v4229_v47 = vmul.f32 %v9848_v3, %v4209_v50  ;;  %v9922_v9 = vadd.f32 %v11360_v23, %v4228_v39 }
 0xdc8   : >> { %v4227_v21 = vmul.f32 %v9848_v3, %v4207_v27  ;;  %v9913_v48 = vadd.f32 %v11356_v56, %v4226_v8 }
 0xdc9   : >> { %11361 = vst [vmem:[#allocation29_spill] sm:$0xff] %v9922_v9  ;;  %v9928_v25 = vadd.f32 %v11362_v32, %v4229_v47 }
 0xdca   : >> { %11357 = vst [vmem:[#allocation30_spill] sm:$0xff] %v9913_v48  ;;  %4266 = vadd.xlane.f32.xlu0 %v9913_v48  ;;  %v9918_v5 = vadd.f32 %v11358_v57, %v4227_v21 }
 0xdcb   : >> { %v7202_v2 = vpop.f32.mrb[52].mxu1  ;;  %11363 = vst [vmem:[#allocation34_spill] sm:$0xff] %v9928_v25 }
 0xdcc   : >> { %11359 = vst [vmem:[#allocation27_spill] sm:$0xff] %v9918_v5  ;;  %4268 = vadd.xlane.f32.xlu1 %v9918_v5  ;;  %v4163_v43 = vpop.f32.mrb[53].mxu1  ;;  %v4212_v33 = vadd.f32 %v7202_v2, %v9842_v60 }
 0xdcd   : >> { %v4210_v0 = vadd.f32 %v9842_v60, %v4163_v43  ;;  %v7203_v38 = vpop.f32.mrb[54].mxu1 }
 0xdce   : >> { %4270 = vadd.xlane.f32.xlu0 %v9922_v9  ;;  %v4166_v11 = vpop.f32.mrb[55].mxu1  ;;  %v4213_v35 = vadd.f32 %v7203_v38, %v9842_v60  ;;  %v4232_v14 = vmul.f32 %v9848_v3, %v4212_v33 }
 0xdcf   : >> { %v4230_v42 = vmul.f32 %v9848_v3, %v4210_v0  ;;  %v4211_v55 = vadd.f32 %v9842_v60, %v4166_v11 }
 0xdd0   : >> { %4272 = vadd.xlane.f32.xlu1 %v9928_v25  ;;  %v4233_v6 = vmul.f32 %v9848_v3, %v4213_v35  ;;  %v9946_v60 = vadd.f32 %v11368_v52, %v4232_v14  ;;  %v7575_v52 = vld [vmem:[%s9957_s29 + $0x4c] ss:$16 sps:$4 sm:$0xff]  }
 0xdd1   : >> { %v4231_v16 = vmul.f32 %v9848_v3, %v4211_v55  ;;  %v9937_v46 = vadd.f32 %v11364_v40, %v4230_v42  ;;  %v7558_v3 = vld [vmem:[%s9957_s29] ss:$16 sps:$4 sm:$0xff]   ;;  %4810 = vmatprep.subr.bf16.mxu1 %v7575_v52 }
 0xdd2   : >> { %11369 = vst [vmem:[#allocation37_spill] sm:$0xff] %v9946_v60  ;;  %v9950_v45 = vadd.f32 %v11370_v10, %v4233_v6  ;;  %4694 = vmatpush1.bf16.msra.mxu0 %v7558_v3  ;;  %v7570_v10 = vld [vmem:[%s9957_s29 + $0x40] ss:$16 sps:$4 sm:$0xff]   ;;  %v7573_v3 = vld [vmem:[%s9957_s29 + $0x48] ss:$16 sps:$4 sm:$0xff]  }
 0xdd3   : >> { %11365 = vst [vmem:[#allocation35_spill] sm:$0xff] %v9937_v46  ;;  %4274 = vadd.xlane.f32.xlu0 %v9937_v46  ;;  %v9942_v24 = vadd.f32 %v11366_v17, %v4231_v16  ;;  %4695 = vmatprep.subr.bf16.mxu0 %v7566_v41  ;;  %v7572_v17 = vld [vmem:[%s9957_s29 + $0x44] ss:$16 sps:$4 sm:$0xff]  }
 0xdd4   : >> { %11371 = vst [vmem:[#allocation22_spill] sm:$0xff] %v9950_v45  ;;  %4811 = vmatpush1.bf16.msra.mxu1 %v7573_v3  ;;  %v7584_v41 = vld [vmem:[%s9957_s29 + $0x84] ss:$16 sps:$4 sm:$0xff]  }
 0xdd5   : >> { %11367 = vst [vmem:[#allocation36_spill] sm:$0xff] %v9942_v24  ;;  %4276 = vadd.xlane.f32.xlu1 %v9942_v24  ;;  %4812 = vmatprep.subr.bf16.mxu1 %v7581_v12 }
 0xdd6   : >> { %4696 = vmatpush1.bf16.msra.mxu0 %v7564_v26  ;;  %v7579_v26 = vld [vmem:[%s9957_s29 + $0x68] ss:$16 sps:$4 sm:$0xff]  }
 0xdd7   : >> { %4278 = vadd.xlane.f32.xlu0 %v9946_v60  ;;  %4697 = vmatprep.subr.bf16.mxu0 %v7572_v17 }
 0xdd8   : >> { %4813 = vmatpush1.bf16.msra.mxu1 %v7579_v26 }
 0xdd9   : >> { %4280 = vadd.xlane.f32.xlu1 %v9950_v45  ;;  %4814 = vmatprep.subr.bf16.mxu1 %v7587_v19 }
 0xdda   : >> { %4698 = vmatpush1.bf16.msra.mxu0 %v7570_v10 }
 0xddb   : >> { %4699 = vmatprep.subr.bf16.mxu0 %v7578_v61 }
 0xdde   : >> { %4700 = vmatpush1.bf16.msra.mxu0 %v7576_v22 }
 0xddf   : >> { %4701 = vmatprep.subr.bf16.mxu0 %v7584_v41 }
 0xde2   : >> { %4702 = vmatpush1.bf16.msra.mxu0 %v7582_v31 }
 0xe1c   : >> { %v4251_v28 = vpop.xlane.xlu0 %4250 }
 0xe1d   : >> { %v4282_v7 = vmul.f32 0.0078125, %v4251_v28  ;;  %v7585_v28 = vld [vmem:[%s9957_s29 + $0x88] ss:$16 sps:$4 sm:$0xff]  }
 0xe1e   : >> { %v4253_v29 = vpop.xlane.xlu1 %4252  ;;  %4815 = vmatpush1.bf16.msra.mxu1 %v7585_v28 }
 0xe1f   : >> { %v9973_v1 = vsub.f32 %v9861_v51, %v4282_v7  ;;  %v4283_v18 = vmul.f32 0.0078125, %v4253_v29  ;;  %v7590_v7 = vld [vmem:[%s9957_s29 + $0xa4] ss:$16 sps:$4 sm:$0xff]   ;;  %v7593_v29 = vld [vmem:[%s9957_s29 + $0xac] ss:$16 sps:$4 sm:$0xff]  }
 0xe20   : >> { %v4255_v53 = vpop.xlane.xlu0 %4254  ;;  %4703 = vmatprep.subr.bf16.mxu0 %v7590_v7  ;;  %4816 = vmatprep.subr.bf16.mxu1 %v7593_v29 }
 0xe21   : >> { %v9976_v59 = vsub.f32 %v9868_v37, %v4283_v18  ;;  %v4284_v58 = vmul.f32 0.0078125, %v4255_v53  ;;  %v4314_v15 = vmul.f32 %v9973_v1, %v9973_v1  ;;  %v7588_v18 = vld [vmem:[%s9957_s29 + $0xa0] ss:$16 sps:$4 sm:$0xff]   ;;  %v7591_v53 = vld [vmem:[%s9957_s29 + $0xa8] ss:$16 sps:$4 sm:$0xff]  }
 0xe22   : >> { %v4257_v8 = vpop.xlane.xlu1 %4256  ;;  %4704 = vmatpush1.bf16.msra.mxu0 %v7588_v18  ;;  %4817 = vmatpush1.bf16.msra.mxu1 %v7591_v53 }
 0xe23   : >> { %v9981_v50 = vsub.f32 %v9876_v34, %v4284_v58  ;;  %v4285_v27 = vmul.f32 0.0078125, %v4257_v8  ;;  %4330 = vadd.xlane.f32.xlu0 %v4314_v15  ;;  %v4315_v39 = vmul.f32 %v9976_v59, %v9976_v59  ;;  %v7596_v58 = vld [vmem:[%s9957_s29 + $0xc4] ss:$16 sps:$4 sm:$0xff]   ;;  %v7599_v15 = vld [vmem:[%s9957_s29 + $0xcc] ss:$16 sps:$4 sm:$0xff]  }
 0xe24   : >> { %v4259_v21 = vpop.xlane.xlu0 %4258  ;;  %v7594_v8 = vld [vmem:[%s9957_s29 + $0xc0] ss:$16 sps:$4 sm:$0xff]   ;;  %4705 = vmatprep.subr.bf16.mxu0 %v7596_v58  ;;  %4818 = vmatprep.subr.bf16.mxu1 %v7599_v15 }
 0xe25   : >> { %v9986_v56 = vsub.f32 %v9883_v4, %v4285_v27  ;;  %v4286_v47 = vmul.f32 0.0078125, %v4259_v21  ;;  %4332 = vadd.xlane.f32.xlu1 %v4315_v39  ;;  %v4316_v57 = vmul.f32 %v9981_v50, %v9981_v50  ;;  %v7597_v27 = vld [vmem:[%s9957_s29 + $0xc8] ss:$16 sps:$4 sm:$0xff]   ;;  %v7600_v39 = vld [vmem:[%s9957_s29 + $0xe0] ss:$16 sps:$4 sm:$0xff]  }
 0xe26   : >> { %v4261_v2 = vpop.xlane.xlu1 %4260  ;;  %4706 = vmatpush1.bf16.msra.mxu0 %v7594_v8  ;;  %4819 = vmatpush1.bf16.msra.mxu1 %v7597_v27  ;;  %v7602_v21 = vld [vmem:[%s9957_s29 + $0xe4] ss:$16 sps:$4 sm:$0xff]  }
 0xe27   : >> { %v9991_v43 = vsub.f32 %v9889_v62, %v4286_v47  ;;  %v4287_v23 = vmul.f32 0.0078125, %v4261_v2  ;;  %4334 = vadd.xlane.f32.xlu0 %v4316_v57  ;;  %v4317_v33 = vmul.f32 %v9986_v56, %v9986_v56  ;;  %v7603_v47 = vld [vmem:[%s9957_s29 + $0xe8] ss:$16 sps:$4 sm:$0xff]   ;;  %v7605_v57 = vld [vmem:[%s9957_s29 + $0xec] ss:$16 sps:$4 sm:$0xff]   ;;  %4707 = vmatprep.subr.bf16.mxu0 %v7602_v21 }
 0xe28   : >> { %v4263_v0 = vpop.xlane.xlu0 %4262  ;;  %4820 = vmatprep.subr.bf16.mxu1 %v7605_v57 }
 0xe29   : >> { %v9996_v38 = vsub.f32 %v9894_v20, %v4287_v23  ;;  %v4288_v11 = vmul.f32 0.0078125, %v4263_v0  ;;  %4336 = vadd.xlane.f32.xlu1 %v4317_v33  ;;  %v4318_v32 = vmul.f32 %v9991_v43, %v9991_v43 }
 0xe2a   : >> { %v4265_v42 = vpop.xlane.xlu1 %4264  ;;  %4708 = vmatpush1.bf16.msra.mxu0 %v7600_v39  ;;  %4821 = vmatpush1.bf16.msra.mxu1 %v7603_v47 }
 0xe2b   : >> { %v10001_v35 = vsub.f32 %v9898_v44, %v4288_v11  ;;  %v4289_v55 = vmul.f32 0.0078125, %v4265_v42  ;;  %4338 = vadd.xlane.f32.xlu0 %v4318_v32  ;;  %v4319_v14 = vmul.f32 %v9996_v38, %v9996_v38 }
 0xe2d   : >> { %v10006_v16 = vsub.f32 %v9902_v30, %v4289_v55  ;;  %4340 = vadd.xlane.f32.xlu1 %v4319_v14  ;;  %v4320_v40 = vmul.f32 %v10001_v35, %v10001_v35 }
 0xe2f   : >> { %4342 = vadd.xlane.f32.xlu0 %v4320_v40  ;;  %v4321_v6 = vmul.f32 %v10006_v16, %v10006_v16 }
 0xe31   : >> { %4344 = vadd.xlane.f32.xlu1 %v4321_v6 }
 0xe57   : >> { %v4267_v2 = vpop.xlane.xlu0 %4266 }
 0xe58   : >> { %v4290_v23 = vmul.f32 0.0078125, %v4267_v2 }
 0xe59   : >> { %v4269_v33 = vpop.xlane.xlu1 %4268 }
 0xe5a   : >> { %v10037_v0 = vsub.f32 %v9913_v48, %v4290_v23  ;;  %v4291_v11 = vmul.f32 0.0078125, %v4269_v33 }
 0xe5b   : >> { %v4271_v32 = vpop.xlane.xlu0 %4270 }
 0xe5c   : >> { %v10040_v42 = vsub.f32 %v9918_v5, %v4291_v11  ;;  %v4292_v55 = vmul.f32 0.0078125, %v4271_v32  ;;  %v4322_v14 = vmul.f32 %v10037_v0, %v10037_v0 }
 0xe5d   : >> { %v4273_v40 = vpop.xlane.xlu1 %4272 }
 0xe5e   : >> { %v10045_v6 = vsub.f32 %v9922_v9, %v4292_v55  ;;  %v4293_v17 = vmul.f32 0.0078125, %v4273_v40  ;;  %4346 = vadd.xlane.f32.xlu0 %v4322_v14  ;;  %v4323_v52 = vmul.f32 %v10040_v42, %v10040_v42 }
 0xe60   : >> { %v10050_v10 = vsub.f32 %v9928_v25, %v4293_v17  ;;  %4348 = vadd.xlane.f32.xlu1 %v4323_v52  ;;  %v4275_v3 = vpop.xlane.xlu0 %4274  ;;  %v4324_v61 = vmul.f32 %v10045_v6, %v10045_v6 }
 0xe61   : >> { %v4294_v12 = vmul.f32 0.0078125, %v4275_v3 }
 0xe62   : >> { %4350 = vadd.xlane.f32.xlu0 %v4324_v61  ;;  %v4277_v22 = vpop.xlane.xlu1 %4276  ;;  %v4325_v26 = vmul.f32 %v10050_v10, %v10050_v10  ;;  %v4428_v61 = vsub.s32 4, %v11338_v13 }
 0xe63   : >> { %v10057_v41 = vsub.f32 %v9937_v46, %v4294_v12  ;;  %v4295_v19 = vmul.f32 0.0078125, %v4277_v22 }
 0xe64   : >> { %4352 = vadd.xlane.f32.xlu1 %v4325_v26  ;;  %v4279_v31 = vpop.xlane.xlu0 %4278 }
 0xe65   : >> { %v10060_v28 = vsub.f32 %v9942_v24, %v4295_v19  ;;  %v4296_v7 = vmul.f32 0.0078125, %v4279_v31  ;;  %v4326_v29 = vmul.f32 %v10057_v41, %v10057_v41  ;;  %v10078_v31 = vrot.slane %v9838_v36, %v4428_v61 }
 0xe66   : >> { %v4281_v18 = vpop.xlane.xlu1 %4280 }
 0xe67   : >> { %v10065_v53 = vsub.f32 %v9946_v60, %v4296_v7  ;;  %v4297_v58 = vmul.f32 0.0078125, %v4281_v18  ;;  %4354 = vadd.xlane.f32.xlu0 %v4326_v29  ;;  %v4327_v15 = vmul.f32 %v10060_v28, %v10060_v28  ;;  %v4448_v18 = vsub.s32 5, %v11338_v13 }
 0xe69   : >> { %v10070_v8 = vsub.f32 %v9950_v45, %v4297_v58  ;;  %4356 = vadd.xlane.f32.xlu1 %v4327_v15  ;;  %v4328_v27 = vmul.f32 %v10065_v53, %v10065_v53 }
 0xe6b   : >> { %4358 = vadd.xlane.f32.xlu0 %v4328_v27  ;;  %v4329_v39 = vmul.f32 %v10070_v8, %v10070_v8 }
 0xe6d   : >> { %4360 = vadd.xlane.f32.xlu1 %v4329_v39 }
 0xeb0   : >> { %v4331_v21 = vpop.xlane.xlu0 %4330 }
 0xeb1   : >> { %v4362_v47 = vmul.f32 0.0078125, %v4331_v21 }
 0xeb2   : >> { %v4333_v57 = vpop.xlane.xlu1 %4332 }
 0xeb3   : >> { %v4378_v2 = vadd.f32 1e-06, %v4362_v47  ;;  %v4363_v23 = vmul.f32 0.0078125, %v4333_v57 }
 0xeb4   : >> { %v4335_v33 = vpop.xlane.xlu0 %4334 }
 0xeb5   : >> { %7926 = vrsqrt.f32 %v4378_v2  ;;  %v4379_v11 = vadd.f32 1e-06, %v4363_v23  ;;  %v4364_v32 = vmul.f32 0.0078125, %v4335_v33  ;;  %v10085_v2 = vrot.slane %v9838_v36, %v4448_v18 }
 0xeb6   : >> { %v4337_v55 = vpop.xlane.xlu1 %4336 }
 0xeb7   : >> { %7928 = vrsqrt.f32 %v4379_v11  ;;  %v4380_v14 = vadd.f32 1e-06, %v4364_v32  ;;  %v4365_v40 = vmul.f32 0.0078125, %v4337_v55 }
 0xeb8   : >> { %v4339_v17 = vpop.xlane.xlu0 %4338 }
 0xeb9   : >> { %7930 = vrsqrt.f32 %v4380_v14  ;;  %v4381_v52 = vadd.f32 1e-06, %v4365_v40  ;;  %v4366_v3 = vmul.f32 0.0078125, %v4339_v17 }
 0xeba   : >> { %v4341_v12 = vpop.xlane.xlu1 %4340 }
 0xebb   : >> { %7932 = vrsqrt.f32 %v4381_v52  ;;  %v4367_v22 = vmul.f32 0.0078125, %v4341_v12  ;;  %v4382_v26 = vadd.f32 1e-06, %v4366_v3 }
 0xebc   : >> { %v4343_v7 = vpop.xlane.xlu0 %4342 }
 0xebd   : >> { %v4383_v19 = vadd.f32 1e-06, %v4367_v22  ;;  %v4368_v21 = vmul.f32 0.0078125, %v4343_v7 }
 0xebe   : >> { %v4345_v29 = vpop.xlane.xlu1 %4344 }
 0xebf   : >> { %v7927_v58 = vpop.eup %7926  ;;  %7934 = vrsqrt.f32 %v4383_v19  ;;  %v4369_v15 = vmul.f32 0.0078125, %v4345_v29  ;;  %v4384_v55 = vadd.f32 1e-06, %v4368_v21 }
 0xec0   : >> { %v4410_v27 = vmul.f32 %v7927_v58, %v9973_v1  ;;  %7936 = vrsqrt.f32 %v4382_v26 }
 0xec1   : >> { %v7929_v39 = vpop.eup %7928  ;;  %v4385_v33 = vadd.f32 1e-06, %v4369_v15 }
 0xec2   : >> { %v4430_v47 = vmul.f32 %v10078_v31, %v4410_v27  ;;  %v4411_v57 = vmul.f32 %v7929_v39, %v9976_v59 }
 0xec3   : >> { %v7931_v23 = vpop.eup %7930  ;;  %7938 = vrsqrt.f32 %v4385_v33 }
 0xec4   : >> { %v4431_v11 = vmul.f32 %v10078_v31, %v4411_v57  ;;  %v4450_v14 = vadd.f32 %v10085_v2, %v4430_v47  ;;  %v4412_v40 = vmul.f32 %v7931_v23, %v9981_v50  ;;  %7940 = vrsqrt.f32 %v4384_v55 }
 0xec5   : >> { %v7933_v32 = vpop.eup %7932 }
 0xec6   : >> { %v4451_v1 = vadd.f32 %v10085_v2, %v4431_v11  ;;  %v4413_v17 = vmul.f32 %v7933_v32, %v9986_v56  ;;  %v4432_v3 = vmul.f32 %v10078_v31, %v4412_v40 }
 0xec8   : >> { %v4466_v52 = vpack.c.bf16 %v4451_v1, %v4450_v14  ;;  %v4433_v59 = vmul.f32 %v10078_v31, %v4413_v17  ;;  %v4452_v56 = vadd.f32 %v10085_v2, %v4432_v3 }
 0xec9   : >> { %v7935_v36 = vpop.eup %7934 }
 0xeca   : >> { %4726 = vmatmul.mubr.bf16.vlgmr.msra.gmra.mrb[120].mxu0 %v4466_v52  ;;  %4839 = vmatmul.mubr.bf16.vlgmr.msra.gmra.mrb[80].mxu1 %v4466_v52  ;;  %v7937_v61 = vpop.eup %7936  ;;  %v4453_v12 = vadd.f32 %v10085_v2, %v4433_v59  ;;  %v4415_v50 = vmul.f32 %v7935_v36, %v9996_v38 }
 0xecb   : >> { %4735 = vmatprep.mubr.bf16.mxu0 %v11337_v54  ;;  %4848 = vmatprep.mubr.bf16.mxu1 %v11337_v54  ;;  %v4414_v22 = vmul.f32 %v7937_v61, %v9991_v43 }
 0xecc   : >> { %v4467_v26 = vpack.c.bf16 %v4453_v12, %v4452_v56  ;;  %v4435_v19 = vmul.f32 %v10078_v31, %v4415_v50 }
 0xecd   : >> { %v7939_v7 = vpop.eup %7938  ;;  %v4434_v29 = vmul.f32 %v10078_v31, %v4414_v22 }
 0xece   : >> { %v7941_v18 = vpop.eup %7940  ;;  %v4455_v58 = vadd.f32 %v10085_v2, %v4435_v19  ;;  %v4417_v38 = vmul.f32 %v7939_v7, %v10006_v16 }
 0xecf   : >> { %v4454_v15 = vadd.f32 %v10085_v2, %v4434_v29  ;;  %v4416_v43 = vmul.f32 %v7941_v18, %v10001_v35 }
 0xed0   : >> { %v4437_v39 = vmul.f32 %v10078_v31, %v4417_v38 }
 0xed1   : >> { %v4468_v27 = vpack.c.bf16 %v4455_v58, %v4454_v15  ;;  %v4436_v21 = vmul.f32 %v10078_v31, %v4416_v43 }
 0xed2   : >> { %4736 = vmatmul.mubr.bf16.gmra.mrb[124].mxu0 %v4467_v26  ;;  %4849 = vmatmul.mubr.bf16.gmra.mrb[84].mxu1 %v4467_v26  ;;  %v4457_v47 = vadd.f32 %v10085_v2, %v4437_v39 }
 0xed3   : >> { %4745 = vmatprep.mubr.bf16.mxu0 %v11337_v54  ;;  %4858 = vmatprep.mubr.bf16.mxu1 %v11337_v54  ;;  %v4456_v57 = vadd.f32 %v10085_v2, %v4436_v21 }
 0xed5   : >> { %v4469_v16 = vpack.c.bf16 %v4457_v47, %v4456_v57 }
 0xeda   : >> { %4746 = vmatmul.mubr.bf16.gmra.mrb[128].mxu0 %v4468_v27  ;;  %4859 = vmatmul.mubr.bf16.gmra.mrb[88].mxu1 %v4468_v27 }
 0xedb   : >> { %4755 = vmatprep.mubr.bf16.mxu0 %v11337_v54  ;;  %4868 = vmatprep.mubr.bf16.mxu1 %v11337_v54 }
 0xee2   : >> { %4756 = vmatmul.mubr.bf16.gmra.mrb[132].mxu0 %v4469_v16  ;;  %4869 = vmatmul.mubr.bf16.gmra.mrb[92].mxu1 %v4469_v16 }
 0xee3   : >> { %4765 = vmatprep.mubr.bf16.mxu0 %v11337_v54  ;;  %4878 = vmatprep.mubr.bf16.mxu1 %v11337_v54 }
 0xeeb   : >> { %v4347_v35 = vpop.xlane.xlu0 %4346 }
 0xeec   : >> { %v4370_v23 = vmul.f32 0.0078125, %v4347_v35 }
 0xeed   : >> { %v4349_v33 = vpop.xlane.xlu1 %4348 }
 0xeee   : >> { %v4386_v11 = vadd.f32 1e-06, %v4370_v23  ;;  %v4371_v32 = vmul.f32 0.0078125, %v4349_v33 }
 0xeef   : >> { %v4351_v55 = vpop.xlane.xlu0 %4350 }
 0xef0   : >> { %7942 = vrsqrt.f32 %v4386_v11  ;;  %v4387_v14 = vadd.f32 1e-06, %v4371_v32  ;;  %v4372_v1 = vmul.f32 0.0078125, %v4351_v55 }
 0xef1   : >> { %v4353_v40 = vpop.xlane.xlu1 %4352 }
 0xef2   : >> { %7944 = vrsqrt.f32 %v4387_v14  ;;  %v4388_v17 = vadd.f32 1e-06, %v4372_v1  ;;  %v4373_v52 = vmul.f32 0.0078125, %v4353_v40 }
 0xef4   : >> { %7946 = vrsqrt.f32 %v4388_v17  ;;  %v4389_v59 = vadd.f32 1e-06, %v4373_v52  ;;  %v4355_v36 = vpop.xlane.xlu0 %4354 }
 0xef5   : >> { %v4374_v3 = vmul.f32 0.0078125, %v4355_v36 }
 0xef6   : >> { %7948 = vrsqrt.f32 %v4389_v59  ;;  %v4357_v61 = vpop.xlane.xlu1 %4356 }
 0xef7   : >> { %v4375_v12 = vmul.f32 0.0078125, %v4357_v61  ;;  %v4390_v50 = vadd.f32 1e-06, %v4374_v3 }
 0xef8   : >> { %v4359_v22 = vpop.xlane.xlu0 %4358 }
 0xef9   : >> { %v4391_v56 = vadd.f32 1e-06, %v4375_v12  ;;  %v4376_v58 = vmul.f32 0.0078125, %v4359_v22  ;;  %v7606_v22 = vld [vmem:[%s9970_s21 + $0x40] sm:$0xff]  }
 0xefa   : >> { %v7943_v26 = vpop.eup %7942  ;;  %v4361_v19 = vpop.xlane.xlu1 %4360  ;;  %6724 = vmatprep.subr.bf16.mxu0 %v7606_v22 }
 0xefb   : >> { %7950 = vrsqrt.f32 %v4391_v56  ;;  %v4377_v7 = vmul.f32 0.0078125, %v4361_v19  ;;  %v4418_v29 = vmul.f32 %v7943_v26, %v10037_v0  ;;  %v4392_v47 = vadd.f32 1e-06, %v4376_v58  ;;  %v7607_v26 = vld [vmem:[%s9970_s21 + $0xc0] sm:$0xff]   ;;  %v7615_v58 = vld [vmem:[%s9970_s21 + $0xd0] sm:$0xff]  }
 0xefc   : >> { %v7945_v18 = vpop.eup %7944  ;;  %7952 = vrsqrt.f32 %v4390_v50  ;;  %v7609_v19 = vld [vmem:[%s9970_s21 + $0x80] sm:$0xff]   ;;  %6788 = vmatprep.subr.bf16.mxu1 %v7607_v26 }
 0xefd   : >> { %v4419_v38 = vmul.f32 %v7945_v18, %v10040_v42  ;;  %v4438_v15 = vmul.f32 %v10078_v31, %v4418_v29  ;;  %v4393_v27 = vadd.f32 1e-06, %v4377_v7  ;;  %6789 = vmatpush3.bf16.msra.mxu1 %v7609_v19  ;;  %v7612_v7 = vld [vmem:[%s9970_s21 + $0x8] sm:$0xff]   ;;  %v7614_v18 = vld [vmem:[%s9970_s21 + $0x50] sm:$0xff]  }
 0xefe   : >> { %v7947_v43 = vpop.eup %7946  ;;  %v7613_v29 = vld [vmem:[%s9970_s21 + $0x88] sm:$0xff]  }
 0xeff   : >> { %v4439_v39 = vmul.f32 %v10078_v31, %v4419_v38  ;;  %v4458_v57 = vadd.f32 %v10085_v2, %v4438_v15  ;;  %v4420_v35 = vmul.f32 %v7947_v43, %v10045_v6  ;;  %7954 = vrsqrt.f32 %v4393_v27  ;;  %v7616_v38 = vld [vmem:[%s9970_s21 + $0x10] sm:$0xff]   ;;  %v7618_v43 = vld [vmem:[%s9970_s21 + $0x58] sm:$0xff]  }
 0xf00   : >> { %v7949_v21 = vpop.eup %7948  ;;  %7956 = vrsqrt.f32 %v4392_v47  ;;  %v7617_v15 = vld [vmem:[%s9970_s21 + $0x90] sm:$0xff]   ;;  %v7619_v27 = vld [vmem:[%s9970_s21 + $0xd8] sm:$0xff]   ;;  %v7622_v47 = vld [vmem:[%s9970_s21 + $0x60] sm:$0xff]  }
 0xf01   : >> { %v4459_v16 = vadd.f32 %v10085_v2, %v4439_v39  ;;  %v4421_v0 = vmul.f32 %v7949_v21, %v10050_v10  ;;  %v4440_v11 = vmul.f32 %v10078_v31, %v4420_v35  ;;  %v7620_v39 = vld [vmem:[%s9970_s21 + $0x18] sm:$0xff]   ;;  %v7625_v35 = vld [vmem:[%s9970_s21 + $0xa0] sm:$0xff]  }
 0xf02   : >> { %v7621_v21 = vld [vmem:[%s9970_s21 + $0x98] sm:$0xff]  }
 0xf03   : >> { %v4470_v23 = vpack.c.bf16 %v4459_v16, %v4458_v57  ;;  %v4441_v42 = vmul.f32 %v10078_v31, %v4421_v0  ;;  %v4460_v10 = vadd.f32 %v10085_v2, %v4440_v11  ;;  %v7623_v57 = vld [vmem:[%s9970_s21 + $0xe0] sm:$0xff]   ;;  %v7626_v0 = vld [vmem:[%s9970_s21 + $0x68] sm:$0xff]   ;;  %v7630_v11 = vld [vmem:[%s9970_s21 + $0x70] sm:$0xff]  }
 0xf04   : >> { %v7624_v16 = vld [vmem:[%s9970_s21 + $0x20] sm:$0xff]  }
 0xf05   : >> { %v7951_v33 = vpop.eup %7950  ;;  %4766 = vmatmul.mubr.bf16.gmra.mrb[136].mxu0 %v4470_v23  ;;  %4879 = vmatmul.mubr.bf16.gmra.mrb[96].mxu1 %v4470_v23  ;;  %v4461_v55 = vadd.f32 %v10085_v2, %v4441_v42  ;;  %v7627_v23 = vld [vmem:[%s9970_s21 + $0xe8] sm:$0xff]  }
 0xf06   : >> { %v7953_v32 = vpop.eup %7952  ;;  %4775 = vmatprep.mubr.bf16.mxu0 %v11337_v54  ;;  %4888 = vmatprep.mubr.bf16.mxu1 %v11337_v54  ;;  %v4423_v6 = vmul.f32 %v7951_v33, %v10060_v28  ;;  %v7628_v42 = vld [vmem:[%s9970_s21 + $0x28] sm:$0xff]  }
 0xf07   : >> { %v4422_v14 = vmul.f32 %v7953_v32, %v10057_v41  ;;  %v4471_v1 = vpack.c.bf16 %v4461_v55, %v4460_v10  ;;  %v7629_v33 = vld [vmem:[%s9970_s21 + $0xa8] sm:$0xff]   ;;  %v7631_v32 = vld [vmem:[%s9970_s21 + $0xf0] sm:$0xff]   ;;  %v7634_v10 = vld [vmem:[%s9970_s21 + $0x78] sm:$0xff]  }
 0xf08   : >> { %v4443_v40 = vmul.f32 %v10078_v31, %v4423_v6  ;;  %v7632_v55 = vld [vmem:[%s9970_s21 + $0x30] sm:$0xff]  }
 0xf09   : >> { %v7955_v17 = vpop.eup %7954  ;;  %v4442_v52 = vmul.f32 %v10078_v31, %v4422_v14  ;;  %v7633_v6 = vld [vmem:[%s9970_s21 + $0xb0] sm:$0xff]   ;;  %v7635_v14 = vld [vmem:[%s9970_s21 + $0xf8] sm:$0xff]  }
 0xf0a   : >> { %v7957_v59 = vpop.eup %7956  ;;  %v4463_v36 = vadd.f32 %v10085_v2, %v4443_v40  ;;  %v4425_v28 = vmul.f32 %v7955_v17, %v10070_v8  ;;  %v7637_v40 = vld [vmem:[%s9970_s21 + $0xb8] sm:$0xff]   ;;  %v4511_v17 = vld [vmem:[%s4510_s25] sm:$0xf] }
 0xf0b   : >> { %v4462_v41 = vadd.f32 %v10085_v2, %v4442_v52  ;;  %v4424_v3 = vmul.f32 %v7957_v59, %v10065_v53  ;;  %v11372_v52 = vld [vmem:[#allocation20_spill] sm:$0xff] }
 0xf0c   : >> { %v4445_v12 = vmul.f32 %v10078_v31, %v4425_v28  ;;  %v10183_v59 = vrot.slane %v4511_v17, %v11372_v52  ;;  %v11373_v28 = vld [vmem:[#allocation21_spill] sm:$0xff] }
 0xf0d   : >> { %4776 = vmatmul.mubr.bf16.gmra.mrb[140].mxu0 %v4471_v1  ;;  %4889 = vmatmul.mubr.bf16.gmra.mrb[100].mxu1 %v4471_v1  ;;  %v4472_v61 = vpack.c.bf16 %v4463_v36, %v4462_v41  ;;  %v4444_v50 = vmul.f32 %v10078_v31, %v4424_v3  ;;  %v7608_v31 = vld [vmem:[%s9970_s21] sm:$0xff]   ;;  %v7636_v1 = vld [vmem:[%s9970_s21 + $0x38] sm:$0xff]   ;;  %v10186_v36 = vrot.slane %v4511_v17, %v11339_v63 }
 0xf0e   : >> { %4785 = vmatprep.mubr.bf16.mxu0 %v11337_v54  ;;  %4898 = vmatprep.mubr.bf16.mxu1 %v11337_v54  ;;  %v4465_v8 = vadd.f32 %v10085_v2, %v4445_v12  ;;  %v10189_v41 = vrot.slane %v4511_v17, %v11373_v28  ;;  %v10193_v3 = vrot.slane %v4511_v17, %v4216_v49 }
 0xf0f   : >> { %v4464_v56 = vadd.f32 %v10085_v2, %v4444_v50  ;;  %6725 = vmatpush3.bf16.msra.mxu0 %v7608_v31  ;;  %v7611_v2 = vld [vmem:[%s9970_s21 + $0xc8] sm:$0xff]  }
 0xf10   : >> { %6790 = vmatprep.subr.bf16.mxu1 %v7611_v2  ;;  %11374 = vst [vmem:[#allocation18_spill] sm:$0xff] %v10189_v41  ;;  %11375 = vst [vmem:[#allocation17_spill] sm:$0xff] %v10193_v3 }
 0xf11   : >> { %v4473_v53 = vpack.c.bf16 %v4465_v8, %v4464_v56  ;;  %6791 = vmatpush3.bf16.msra.mxu1 %v7613_v29 }
 0xf12   : >> { %6792 = vmatprep.subr.bf16.mxu1 %v7615_v58 }
 0xf15   : >> { %4786 = vmatmul.mubr.bf16.gmra.mrb[144].mxu0 %v4472_v61  ;;  %4899 = vmatmul.mubr.bf16.gmra.mrb[104].mxu1 %v4472_v61 }
 0xf16   : >> { %4795 = vmatprep.mubr.bf16.mxu0 %v11337_v54  ;;  %4908 = vmatprep.mubr.bf16.mxu1 %v11337_v54  ;;  %v7610_v54 = vld [vmem:[%s9970_s21 + $0x48] sm:$0xff]  }
 0xf17   : >> { %6726 = vmatprep.subr.bf16.mxu0 %v7610_v54  ;;  %6793 = vmatpush3.bf16.msra.mxu1 %v7617_v15 }
 0xf18   : >> { %6727 = vmatpush3.bf16.msra.mxu0 %v7612_v7  ;;  %6794 = vmatprep.subr.bf16.mxu1 %v7619_v27 }
 0xf19   : >> { %6728 = vmatprep.subr.bf16.mxu0 %v7614_v18 }
 0xf1b   : >> { %6795 = vmatpush3.bf16.msra.mxu1 %v7621_v21 }
 0xf1c   : >> { %6729 = vmatpush3.bf16.msra.mxu0 %v7616_v38  ;;  %6796 = vmatprep.subr.bf16.mxu1 %v7623_v57 }
 0xf1d   : >> { %4796 = vmatmul.mubr.bf16.gmra.mrb[148].mxu0 %v4473_v53  ;;  %4909 = vmatmul.mubr.bf16.gmra.mrb[108].mxu1 %v4473_v53 }
 0xf1e   : >> { %6730 = vmatprep.subr.bf16.mxu0 %v7618_v43 }
 0xf1f   : >> { %6797 = vmatpush3.bf16.msra.mxu1 %v7625_v35 }
 0xf20   : >> { %6731 = vmatpush3.bf16.msra.mxu0 %v7620_v39  ;;  %6798 = vmatprep.subr.bf16.mxu1 %v7627_v23 }
 0xf21   : >> { %6732 = vmatprep.subr.bf16.mxu0 %v7622_v47 }
 0xf23   : >> { %6799 = vmatpush3.bf16.msra.mxu1 %v7629_v33 }
 0xf24   : >> { %6733 = vmatpush3.bf16.msra.mxu0 %v7624_v16  ;;  %6800 = vmatprep.subr.bf16.mxu1 %v7631_v32 }
 0xf25   : >> { %6734 = vmatprep.subr.bf16.mxu0 %v7626_v0 }
 0xf27   : >> { %6801 = vmatpush3.bf16.msra.mxu1 %v7633_v6 }
 0xf28   : >> { %6735 = vmatpush3.bf16.msra.mxu0 %v7628_v42  ;;  %6802 = vmatprep.subr.bf16.mxu1 %v7635_v14 }
 0xf29   : >> { %6736 = vmatprep.subr.bf16.mxu0 %v7630_v11 }
 0xf2b   : >> { %6803 = vmatpush3.bf16.msra.mxu1 %v7637_v40 }
 0xf2c   : >> { %6737 = vmatpush3.bf16.msra.mxu0 %v7632_v55 }
 0xf2d   : >> { %6738 = vmatprep.subr.bf16.mxu0 %v7634_v10 }
 0xf30   : >> { %6739 = vmatpush3.bf16.msra.mxu0 %v7636_v1 }
 0xf9d   : >> { %v4727_v61 = vpop.f32.mrb[120].mxu0  ;;  %v4840_v12 = vpop.f32.mrb[80].mxu1 }
 0xf9e   : >> { %v10196_v50 = vadd.f32 %v4727_v61, %v10183_v59  ;;  %v10199_v8 = vadd.f32 %v4840_v12, %v10186_v36  ;;  %v4729_v56 = vpop.f32.mrb[121].mxu0  ;;  %v4842_v53 = vpop.f32.mrb[81].mxu1 }
 0xf9f   : >> { %v10202_v63 = vadd.f32 %v4729_v56, %v10189_v41  ;;  %v10205_v22 = vadd.f32 %v4842_v53, %v10193_v3  ;;  %v4731_v26 = vpop.f32.mrb[122].mxu0  ;;  %v4844_v31 = vpop.f32.mrb[82].mxu1 }
 0xfa0   : >> { %v4919_v49 = vmul.f32 %v10196_v50, %v10196_v50  ;;  %v4921_v19 = vmul.f32 %v10199_v8, %v10199_v8  ;;  %v10212_v54 = vadd.f32 %v4731_v26, %v10183_v59  ;;  %v10215_v2 = vadd.f32 %v4844_v31, %v10186_v36  ;;  %v4733_v7 = vpop.f32.mrb[123].mxu0  ;;  %v4846_v29 = vpop.f32.mrb[83].mxu1 }
 0xfa1   : >> { %v4920_v18 = vmul.f32 %v10202_v63, %v10202_v63  ;;  %v4922_v58 = vmul.f32 %v10205_v22, %v10205_v22  ;;  %v10222_v38 = vadd.f32 %v4733_v7, %v10189_v41  ;;  %v10225_v15 = vadd.f32 %v4846_v29, %v10193_v3 }
 0xfa2   : >> { %v4983_v43 = vmul.f32 %v4919_v49, %v10196_v50  ;;  %v4985_v27 = vmul.f32 %v4921_v19, %v10199_v8  ;;  %v4923_v39 = vmul.f32 %v10212_v54, %v10212_v54  ;;  %v4925_v21 = vmul.f32 %v10215_v2, %v10215_v2 }
 0xfa3   : >> { %v4984_v47 = vmul.f32 %v4920_v18, %v10202_v63  ;;  %v4986_v57 = vmul.f32 %v4922_v58, %v10205_v22  ;;  %v4924_v16 = vmul.f32 %v10222_v38, %v10222_v38  ;;  %v4926_v35 = vmul.f32 %v10225_v15, %v10225_v15 }
 0xfa4   : >> { %v5047_v0 = vmul.f32 0.044715, %v4983_v43  ;;  %v5049_v23 = vmul.f32 0.044715, %v4985_v27  ;;  %v4987_v42 = vmul.f32 %v4923_v39, %v10212_v54  ;;  %v4989_v33 = vmul.f32 %v4925_v21, %v10215_v2 }
 0xfa5   : >> { %v5048_v11 = vmul.f32 0.044715, %v4984_v47  ;;  %v5050_v32 = vmul.f32 0.044715, %v4986_v57  ;;  %v4988_v55 = vmul.f32 %v4924_v16, %v10222_v38  ;;  %v4990_v6 = vmul.f32 %v4926_v35, %v10225_v15  ;;  %v4737_v10 = vpop.f32.mrb[124].mxu0  ;;  %v4850_v14 = vpop.f32.mrb[84].mxu1 }
 0xfa6   : >> { %v5111_v1 = vadd.f32 %v5047_v0, %v10196_v50  ;;  %v5113_v40 = vadd.f32 %v5049_v23, %v10199_v8  ;;  %v5051_v17 = vmul.f32 0.044715, %v4987_v42  ;;  %v5053_v52 = vmul.f32 0.044715, %v4989_v33  ;;  %v4739_v28 = vpop.f32.mrb[125].mxu0  ;;  %v4852_v61 = vpop.f32.mrb[85].mxu1 }
 0xfa7   : >> { %v5112_v12 = vadd.f32 %v5048_v11, %v10202_v63  ;;  %v5114_v56 = vadd.f32 %v5050_v32, %v10205_v22  ;;  %v5052_v53 = vmul.f32 0.044715, %v4988_v55  ;;  %v5054_v26 = vmul.f32 0.044715, %v4990_v6  ;;  %v4741_v31 = vpop.f32.mrb[126].mxu0  ;;  %v4854_v49 = vpop.f32.mrb[86].mxu1 }
 0xfa8   : >> { %v5175_v19 = vmul.f32 0.7978846, %v5111_v1  ;;  %v5177_v7 = vmul.f32 0.7978846, %v5113_v40  ;;  %v5115_v29 = vadd.f32 %v5051_v17, %v10212_v54  ;;  %v5117_v18 = vadd.f32 %v5053_v52, %v10215_v2  ;;  %v4743_v58 = vpop.f32.mrb[127].mxu0  ;;  %v4856_v43 = vpop.f32.mrb[87].mxu1 }
 0xfa9   : >> { %v5176_v27 = vmul.f32 0.7978846, %v5112_v12  ;;  %v5178_v39 = vmul.f32 0.7978846, %v5114_v56  ;;  %v5116_v21 = vadd.f32 %v5052_v53, %v10222_v38  ;;  %v5118_v47 = vadd.f32 %v5054_v26, %v10225_v15 }
 0xfaa   : >> { %7958 = vtanh.f32 %v5175_v19  ;;  %v5179_v57 = vmul.f32 0.7978846, %v5115_v29  ;;  %v5181_v16 = vmul.f32 0.7978846, %v5117_v18  ;;  %v10252_v35 = vadd.f32 %v4737_v10, %v10183_v59 }
 0xfab   : >> { %7960 = vtanh.f32 %v5177_v7  ;;  %v5180_v0 = vmul.f32 0.7978846, %v5116_v21  ;;  %v5182_v23 = vmul.f32 0.7978846, %v5118_v47  ;;  %v10255_v42 = vadd.f32 %v4850_v14, %v10186_v36 }
 0xfac   : >> { %7962 = vtanh.f32 %v5176_v27  ;;  %v4927_v33 = vmul.f32 %v10252_v35, %v10252_v35  ;;  %v10260_v11 = vadd.f32 %v4739_v28, %v10189_v41  ;;  %v10263_v32 = vadd.f32 %v4852_v61, %v10193_v3 }
 0xfad   : >> { %7964 = vtanh.f32 %v5178_v39  ;;  %v4929_v55 = vmul.f32 %v10255_v42, %v10255_v42  ;;  %v10268_v6 = vadd.f32 %v4741_v31, %v10183_v59  ;;  %v10271_v10 = vadd.f32 %v4854_v49, %v10186_v36  ;;  %v10273_v14 = vpop.f32.mrb[128].mxu0  ;;  %v10275_v1 = vpop.f32.mrb[88].mxu1 }
 0xfae   : >> { %7966 = vtanh.f32 %v5179_v57  ;;  %v4991_v40 = vmul.f32 %v4927_v33, %v10252_v35  ;;  %v4928_v17 = vmul.f32 %v10260_v11, %v10260_v11  ;;  %v4930_v52 = vmul.f32 %v10263_v32, %v10263_v32  ;;  %v10282_v28 = vpop.f32.mrb[129].mxu0  ;;  %v10284_v61 = vpop.f32.mrb[89].mxu1 }
 0xfaf   : >> { %7968 = vtanh.f32 %v5181_v16  ;;  %v4993_v12 = vmul.f32 %v4929_v55, %v10255_v42  ;;  %v4931_v56 = vmul.f32 %v10268_v6, %v10268_v6  ;;  %v4933_v53 = vmul.f32 %v10271_v10, %v10271_v10  ;;  %v10291_v26 = vpop.f32.mrb[130].mxu0  ;;  %v10293_v31 = vpop.f32.mrb[90].mxu1 }
 0xfb0   : >> { %7970 = vtanh.f32 %v5180_v0  ;;  %v5055_v49 = vmul.f32 0.044715, %v4991_v40  ;;  %v4992_v19 = vmul.f32 %v4928_v17, %v10260_v11  ;;  %v4994_v7 = vmul.f32 %v4930_v52, %v10263_v32  ;;  %v10297_v29 = vpop.f32.mrb[131].mxu0  ;;  %v10299_v18 = vpop.f32.mrb[91].mxu1 }
 0xfb1   : >> { %7972 = vtanh.f32 %v5182_v23  ;;  %v5057_v27 = vmul.f32 0.044715, %v4993_v12  ;;  %v4995_v39 = vmul.f32 %v4931_v56, %v10268_v6  ;;  %v4997_v21 = vmul.f32 %v4933_v53, %v10271_v10 }
 0xfb2   : >> { %v5119_v47 = vadd.f32 %v5055_v49, %v10252_v35  ;;  %v5056_v57 = vmul.f32 0.044715, %v4992_v19  ;;  %v5058_v16 = vmul.f32 0.044715, %v4994_v7  ;;  %v10305_v0 = vadd.f32 %v4743_v58, %v10189_v41 }
 0xfb3   : >> { %v5121_v33 = vadd.f32 %v5057_v27, %v10255_v42  ;;  %v5059_v55 = vmul.f32 0.044715, %v4995_v39  ;;  %v5061_v40 = vmul.f32 0.044715, %v4997_v21  ;;  %v10309_v17 = vadd.f32 %v4856_v43, %v10193_v3 }
 0xfb4   : >> { %v7959_v23 = vpop.eup %7958  ;;  %v5183_v52 = vmul.f32 0.7978846, %v5119_v47  ;;  %v5120_v12 = vadd.f32 %v5056_v57, %v10260_v11  ;;  %v5122_v56 = vadd.f32 %v5058_v16, %v10263_v32  ;;  %v4932_v53 = vmul.f32 %v10305_v0, %v10305_v0 }
 0xfb5   : >> { %v7961_v49 = vpop.eup %7960  ;;  %v5303_v19 = vadd.f32 1.0, %v7959_v23  ;;  %v5185_v58 = vmul.f32 0.7978846, %v5121_v33  ;;  %v5123_v7 = vadd.f32 %v5059_v55, %v10268_v6  ;;  %v5125_v27 = vadd.f32 %v5061_v40, %v10271_v10  ;;  %v10317_v39 = vpop.f32.mrb[132].mxu0 }
 0xfb6   : >> { %v10319_v43 = vpop.f32.mrb[92].mxu1  ;;  %v10321_v21 = vpop.eup %7962  ;;  %v5305_v47 = vadd.f32 1.0, %v7961_v49  ;;  %7974 = vtanh.f32 %v5183_v52  ;;  %v5184_v57 = vmul.f32 0.7978846, %v5120_v12  ;;  %v5186_v16 = vmul.f32 0.7978846, %v5122_v56 }
 0xfb7   : >> { %v10323_v45 = vpop.f32.mrb[133].mxu0  ;;  %v10325_v60 = vpop.eup %7964  ;;  %v5367_v23 = vmul.f32 0.5, %v5303_v19  ;;  %7976 = vtanh.f32 %v5185_v58  ;;  %v5187_v33 = vmul.f32 0.7978846, %v5123_v7  ;;  %v5189_v55 = vmul.f32 0.7978846, %v5125_v27 }
 0xfb8   : >> { %v10327_v24 = vpop.f32.mrb[93].mxu1  ;;  %v7967_v40 = vpop.eup %7966  ;;  %v5369_v46 = vmul.f32 0.5, %v5305_v47  ;;  %7978 = vtanh.f32 %v5184_v57  ;;  %v4996_v25 = vmul.f32 %v4932_v53, %v10305_v0  ;;  %v4934_v52 = vmul.f32 %v10309_v17, %v10309_v17 }
 0xfb9   : >> { %v10332_v12 = vpop.f32.mrb[134].mxu0  ;;  %v10334_v56 = vpop.f32.mrb[94].mxu1  ;;  %v10337_v19 = vmul.f32 %v5367_v23, %v10196_v50  ;;  %v5307_v58 = vadd.f32 1.0, %v7967_v40  ;;  %7980 = vtanh.f32 %v5186_v16  ;;  %v10341_v7 = vadd.f32 %v10273_v14, %v10183_v59 }
 0xfba   : >> { %v7969_v49 = vpop.eup %7968  ;;  %v10343_v27 = vpop.f32.mrb[135].mxu0  ;;  %v10350_v57 = vmul.f32 %v5369_v46, %v10199_v8  ;;  %7982 = vtanh.f32 %v5187_v33  ;;  %v5060_v5 = vmul.f32 0.044715, %v4996_v25  ;;  %v4998_v16 = vmul.f32 %v4934_v52, %v10309_v17 }
 0xfbb   : >> { %v10345_v53 = vpop.f32.mrb[95].mxu1  ;;  %v10347_v47 = vpop.eup %7970  ;;  %v5309_v9 = vadd.f32 1.0, %v7969_v49  ;;  %v5371_v23 = vmul.f32 0.5, %v5307_v58  ;;  %7984 = vtanh.f32 %v5189_v55  ;;  %v4935_v14 = vmul.f32 %v10341_v7, %v10341_v7 }
 0xfbc   : >> { %v10352_v50 = vpop.eup %7972  ;;  %v5124_v48 = vadd.f32 %v5060_v5, %v10305_v0  ;;  %v10360_v30 = vadd.f32 %v10275_v1, %v10186_v36  ;;  %v10364_v46 = vadd.f32 %v10282_v28, %v10189_v41  ;;  %v5062_v8 = vmul.f32 0.044715, %v4998_v16 }
 0xfbd   : >> { %v5373_v40 = vmul.f32 0.5, %v5309_v9  ;;  %v10367_v25 = vmul.f32 %v5371_v23, %v10212_v54  ;;  %v4999_v33 = vmul.f32 %v4935_v14, %v10341_v7  ;;  %v10372_v55 = vadd.f32 %v10284_v61, %v10193_v3 }
 0xfbe   : >> { %v5188_v9 = vmul.f32 0.7978846, %v5124_v48  ;;  %v4937_v1 = vmul.f32 %v10360_v30, %v10360_v30  ;;  %v4936_v28 = vmul.f32 %v10364_v46, %v10364_v46  ;;  %v5126_v52 = vadd.f32 %v5062_v8, %v10309_v17 }
 0xfbf   : >> { %v10375_v5 = vmul.f32 %v5373_v40, %v10215_v2  ;;  %v5063_v49 = vmul.f32 0.044715, %v4999_v33  ;;  %v4938_v61 = vmul.f32 %v10372_v55, %v10372_v55  ;;  %v10398_v33 = vadd.f32 %v10291_v26, %v10183_v59 }
 0xfc0   : >> { %v10386_v58 = vpop.eup %7974  ;;  %7986 = vtanh.f32 %v5188_v9  ;;  %v5001_v2 = vmul.f32 %v4937_v1, %v10360_v30  ;;  %v5000_v23 = vmul.f32 %v4936_v28, %v10364_v46  ;;  %v5190_v14 = vmul.f32 0.7978846, %v5126_v52 }
 0xfc1   : >> { %v10392_v16 = vpop.eup %7976  ;;  %v5127_v40 = vadd.f32 %v5063_v49, %v10341_v7  ;;  %v5002_v8 = vmul.f32 %v4938_v61, %v10372_v55  ;;  %v10404_v9 = vadd.f32 %v10293_v31, %v10186_v36  ;;  %v10408_v1 = vadd.f32 %v10297_v29, %v10189_v41 }
 0xfc2   : >> { %v10400_v54 = vpop.eup %7978  ;;  %v5065_v44 = vmul.f32 0.044715, %v5001_v2  ;;  %v5064_v48 = vmul.f32 0.044715, %v5000_v23  ;;  %7988 = vtanh.f32 %v5190_v14  ;;  %v4939_v26 = vmul.f32 %v10398_v33, %v10398_v33 }
 0xfc3   : >> { %11376 = vst [vmem:[#allocation16_spill] sm:$0xff] %v10404_v9  ;;  %v10410_v28 = vpop.eup %7980  ;;  %v5191_v52 = vmul.f32 0.7978846, %v5127_v40  ;;  %v5066_v49 = vmul.f32 0.044715, %v5002_v8  ;;  %v4941_v31 = vmul.f32 %v10404_v9, %v10404_v9  ;;  %v4940_v29 = vmul.f32 %v10408_v1, %v10408_v1 }
 0xfc4   : >> { %v10414_v61 = vpop.eup %7982  ;;  %v5129_v2 = vadd.f32 %v5065_v44, %v10360_v30  ;;  %v5128_v23 = vadd.f32 %v5064_v48, %v10364_v46  ;;  %v5003_v40 = vmul.f32 %v4939_v26, %v10398_v33  ;;  %v10428_v8 = vadd.f32 %v10299_v18, %v10193_v3 }
 0xfc5   : >> { %v10422_v20 = vpop.eup %7984  ;;  %7990 = vtanh.f32 %v5191_v52  ;;  %v5130_v14 = vadd.f32 %v5066_v49, %v10372_v55  ;;  %v5005_v48 = vmul.f32 %v4941_v31, %v10404_v9  ;;  %v5004_v4 = vmul.f32 %v4940_v29, %v10408_v1 }
 0xfc6   : >> { %v5193_v44 = vmul.f32 0.7978846, %v5129_v2  ;;  %v5192_v62 = vmul.f32 0.7978846, %v5128_v23  ;;  %v5067_v37 = vmul.f32 0.044715, %v5003_v40  ;;  %v4942_v51 = vmul.f32 %v10428_v8, %v10428_v8 }
 0xfc7   : >> { %v5194_v34 = vmul.f32 0.7978846, %v5130_v14  ;;  %v10436_v52 = vadd.f32 %v10317_v39, %v10183_v59  ;;  %v5069_v49 = vmul.f32 0.044715, %v5005_v48  ;;  %v5068_v26 = vmul.f32 0.044715, %v5004_v4 }
 0xfc8   : >> { %7992 = vtanh.f32 %v5193_v44  ;;  %v10440_v18 = vadd.f32 %v10319_v43, %v10186_v36  ;;  %v5131_v2 = vadd.f32 %v5067_v37, %v10398_v33  ;;  %v5006_v23 = vmul.f32 %v4942_v51, %v10428_v8 }
 0xfc9   : >> { %11377 = vst [vmem:[#allocation15_spill] sm:$0xff] %v10436_v52  ;;  %7994 = vtanh.f32 %v5192_v62  ;;  %v4943_v31 = vmul.f32 %v10436_v52, %v10436_v52  ;;  %v5133_v39 = vadd.f32 %v5069_v49, %v10404_v9  ;;  %v5132_v14 = vadd.f32 %v5068_v26, %v10408_v1 }
 0xfca   : >> { %11378 = vst [vmem:[#allocation14_spill] sm:$0xff] %v10440_v18  ;;  %v10446_v29 = vpop.eup %7986  ;;  %7996 = vtanh.f32 %v5194_v34  ;;  %v4945_v4 = vmul.f32 %v10440_v18, %v10440_v18  ;;  %v5195_v43 = vmul.f32 0.7978846, %v5131_v2  ;;  %v5070_v40 = vmul.f32 0.044715, %v5006_v23 }
 0xfcb   : >> { %v5007_v62 = vmul.f32 %v4943_v31, %v10436_v52  ;;  %v10455_v51 = vadd.f32 %v10323_v45, %v10189_v41  ;;  %v5197_v37 = vmul.f32 0.7978846, %v5133_v39  ;;  %v5196_v44 = vmul.f32 0.7978846, %v5132_v14 }
 0xfcc   : >> { %v5009_v48 = vmul.f32 %v4945_v4, %v10440_v18  ;;  %v10460_v34 = vadd.f32 %v10327_v24, %v10193_v3  ;;  %v10462_v49 = vpop.eup %7988  ;;  %7998 = vtanh.f32 %v5195_v43  ;;  %v5134_v26 = vadd.f32 %v5070_v40, %v10428_v8 }
 0xfcd   : >> { %11379 = vst [vmem:[#allocation13_spill] sm:$0xff] %v10455_v51  ;;  %v5071_v2 = vmul.f32 0.044715, %v5007_v62  ;;  %v4944_v23 = vmul.f32 %v10455_v51, %v10455_v51  ;;  %8000 = vtanh.f32 %v5197_v37  ;;  %v10471_v39 = vadd.f32 %v10332_v12, %v10183_v59 }
 0xfce   : >> { %11380 = vst [vmem:[#allocation12_spill] sm:$0xff] %v10460_v34  ;;  %v5073_v45 = vmul.f32 0.044715, %v5009_v48  ;;  %v4946_v31 = vmul.f32 %v10460_v34, %v10460_v34  ;;  %8002 = vtanh.f32 %v5196_v44  ;;  %v5198_v14 = vmul.f32 0.7978846, %v5134_v26 }
 0xfcf   : >> { %11381 = vst [vmem:[#allocation11_spill] sm:$0xff] %v10471_v39  ;;  %v10473_v24 = vpop.eup %7990  ;;  %v5135_v4 = vadd.f32 %v5071_v2, %v10436_v52  ;;  %v5008_v43 = vmul.f32 %v4944_v23, %v10455_v51  ;;  %v4947_v37 = vmul.f32 %v10471_v39, %v10471_v39  ;;  %v10483_v48 = vadd.f32 %v10334_v56, %v10186_v36 }
 0xfd0   : >> { %v5137_v40 = vadd.f32 %v5073_v45, %v10440_v18  ;;  %v5010_v62 = vmul.f32 %v4946_v31, %v10460_v34  ;;  %8004 = vtanh.f32 %v5198_v14  ;;  %v10487_v44 = vadd.f32 %v10343_v27, %v10189_v41 }
 0xfd1   : >> { %11382 = vst [vmem:[#allocation10_spill] sm:$0xff] %v10483_v48  ;;  %v5199_v12 = vmul.f32 0.7978846, %v5135_v4  ;;  %v5072_v13 = vmul.f32 0.044715, %v5008_v43  ;;  %v5011_v45 = vmul.f32 %v4947_v37, %v10471_v39  ;;  %v4949_v31 = vmul.f32 %v10483_v48, %v10483_v48 }
 0xfd2   : >> { %v10489_v26 = vpop.eup %7992  ;;  %v5201_v2 = vmul.f32 0.7978846, %v5137_v40  ;;  %v5074_v23 = vmul.f32 0.044715, %v5010_v62  ;;  %v4948_v14 = vmul.f32 %v10487_v44, %v10487_v44  ;;  %v10501_v27 = vadd.f32 %v10345_v53, %v10193_v3 }
 0xfd3   : >> { %v10494_v18 = vpop.eup %7994  ;;  %8006 = vtanh.f32 %v5199_v12  ;;  %v5136_v56 = vadd.f32 %v5072_v13, %v10455_v51  ;;  %v5075_v40 = vmul.f32 0.044715, %v5011_v45  ;;  %v5013_v62 = vmul.f32 %v4949_v31, %v10483_v48 }
 0xfd4   : >> { %v10503_v4 = vpop.eup %7996  ;;  %8008 = vtanh.f32 %v5201_v2  ;;  %v5138_v43 = vadd.f32 %v5074_v23, %v10460_v34  ;;  %v5012_v12 = vmul.f32 %v4948_v14, %v10487_v44  ;;  %v4950_v13 = vmul.f32 %v10501_v27, %v10501_v27 }
 0xfd5   : >> { %v5200_v37 = vmul.f32 0.7978846, %v5136_v56  ;;  %v5304_v52 = vadd.f32 1.0, %v10321_v21  ;;  %v5139_v53 = vadd.f32 %v5075_v40, %v10471_v39  ;;  %v5077_v3 = vmul.f32 0.044715, %v5013_v62 }
 0xfd6   : >> { %v5202_v51 = vmul.f32 0.7978846, %v5138_v43  ;;  %v5308_v41 = vadd.f32 1.0, %v10347_v47  ;;  %v10513_v2 = vpop.eup %7998  ;;  %v5076_v23 = vmul.f32 0.044715, %v5012_v12  ;;  %v5014_v45 = vmul.f32 %v4950_v13, %v10501_v27 }
 0xfd7   : >> { %8010 = vtanh.f32 %v5200_v37  ;;  %v5368_v31 = vmul.f32 0.5, %v5304_v52  ;;  %v10520_v34 = vpop.eup %8000  ;;  %v5203_v21 = vmul.f32 0.7978846, %v5139_v53  ;;  %v5141_v43 = vadd.f32 %v5077_v3, %v10483_v48 }
 0xfd8   : >> { %v10516_v56 = vpop.f32.mrb[136].mxu0  ;;  %v10518_v14 = vpop.f32.mrb[96].mxu1  ;;  %8012 = vtanh.f32 %v5202_v51  ;;  %v5372_v40 = vmul.f32 0.5, %v5308_v41  ;;  %v5140_v12 = vadd.f32 %v5076_v23, %v10487_v44  ;;  %v5078_v52 = vmul.f32 0.044715, %v5014_v45 }
 0xfd9   : >> { %v10523_v62 = vpop.f32.mrb[137].mxu0  ;;  %v10525_v47 = vpop.f32.mrb[97].mxu1  ;;  %v5432_v13 = vmul.f32 %v5368_v31, %v10202_v63  ;;  %v5306_v39 = vadd.f32 1.0, %v10325_v60  ;;  %8014 = vtanh.f32 %v5203_v21  ;;  %v5205_v3 = vmul.f32 0.7978846, %v5141_v43 }
 0xfda   : >> { %11383 = vst [vmem:[#allocation9_spill] sm:$0xff] %v10525_v47  ;;  %v10527_v37 = vpop.eup %8002  ;;  %v10532_v9 = vpop.f32.mrb[138].mxu0  ;;  %v5436_v41 = vmul.f32 %v5372_v40, %v10222_v38  ;;  %v5310_v53 = vadd.f32 1.0, %v10352_v50  ;;  %v5204_v45 = vmul.f32 0.7978846, %v5140_v12  ;;  %v5142_v63 = vadd.f32 %v5078_v52, %v10501_v27 }
 0xfdb   : >> { %11384 = vst [vmem:[#allocation8_spill] sm:$0xff] %v10532_v9  ;;  %v10534_v51 = vpop.f32.mrb[98].mxu1  ;;  %v10538_v48 = vpop.f32.mrb[139].mxu0  ;;  %v5370_v31 = vmul.f32 0.5, %v5306_v39  ;;  %v5312_v60 = vadd.f32 1.0, %v10400_v54  ;;  %8016 = vtanh.f32 %v5205_v3  ;;  %v5316_v21 = vadd.f32 1.0, %v10446_v29 }
 0xfdc   : >> { %11385 = vst [vmem:[#allocation7_spill] sm:$0xff] %v10534_v51  ;;  %v10540_v47 = vpop.f32.mrb[99].mxu1  ;;  %v8005_v23 = vpop.eup %8004  ;;  %v5496_v9 = vpack.c.bf16 %v5436_v41, %v5432_v13  ;;  %v5374_v51 = vmul.f32 0.5, %v5310_v53  ;;  %8018 = vtanh.f32 %v5204_v45  ;;  %v5206_v38 = vmul.f32 0.7978846, %v5142_v63 }
 0xfdd   : >> { %11386 = vst [vmem:[#allocation6_spill] sm:$0xff] %v10540_v47  ;;  %v10545_v43 = vpop.eup %8006  ;;  %v5434_v50 = vmul.f32 %v5370_v31, %v10205_v22  ;;  %v5376_v40 = vmul.f32 0.5, %v5312_v60  ;;  %v5380_v39 = vmul.f32 0.5, %v5316_v21  ;;  %v5314_v54 = vadd.f32 1.0, %v10410_v28 }
 0xfde   : >> { %v10548_v47 = vpop.eup %8008  ;;  %5821 = vmatprep.mubr.bf16.mxu0 %v5496_v9  ;;  %v5438_v12 = vmul.f32 %v5374_v51, %v10225_v15  ;;  %v5318_v52 = vadd.f32 1.0, %v10462_v49  ;;  %8020 = vtanh.f32 %v5206_v38  ;;  %v11387_v29 = vpack.c.bf16 %v10367_v25, %v10337_v19 }
 0xfdf   : >> { %v5440_v13 = vmul.f32 %v5376_v40, %v10260_v11  ;;  %v5311_v22 = vadd.f32 1.0, %v10386_v58  ;;  %v5315_v3 = vadd.f32 1.0, %v10414_v61  ;;  %v5444_v28 = vmul.f32 %v5380_v39, %v10305_v0 }
 0xfe0   : >> { %5822 = vmatmul.mubr.bf16.vlgmr.msra.gmra.mrb[152].mxu0 %v11387_v29  ;;  %v10559_v41 = vpop.f32.mrb[140].mxu0  ;;  %v10561_v9 = vpop.f32.mrb[100].mxu1  ;;  %v5498_v15 = vpack.c.bf16 %v5438_v12, %v5434_v50  ;;  %v5378_v51 = vmul.f32 0.5, %v5314_v54  ;;  %v5382_v49 = vmul.f32 0.5, %v5318_v52  ;;  %v5313_v58 = vadd.f32 1.0, %v10392_v16 }
 0xfe1   : >> { %v10564_v53 = vpop.f32.mrb[141].mxu0  ;;  %v10566_v45 = vpop.f32.mrb[101].mxu1  ;;  %v5375_v11 = vmul.f32 0.5, %v5311_v22  ;;  %v5379_v25 = vmul.f32 0.5, %v5315_v3  ;;  %v5317_v61 = vadd.f32 1.0, %v10422_v20  ;;  %v5500_v0 = vpack.c.bf16 %v5444_v28, %v5440_v13 }
 0xfe2   : >> { %v10568_v19 = vpop.eup %8010  ;;  %v10572_v63 = vpop.f32.mrb[142].mxu0  ;;  %5918 = vmatprep.mubr.bf16.mxu1 %v5498_v15  ;;  %v5442_v21 = vmul.f32 %v5378_v51, %v10263_v32  ;;  %v5446_v38 = vmul.f32 %v5382_v49, %v10309_v17  ;;  %v5320_v50 = vadd.f32 1.0, %v10494_v18  ;;  %v11388_v20 = vpack.c.bf16 %v10375_v5, %v10350_v57 }
 0xfe3   : >> { %v10574_v31 = vpop.f32.mrb[102].mxu1  ;;  %v10576_v60 = vpop.eup %8012  ;;  %v5439_v16 = vmul.f32 %v5375_v11, %v10252_v35  ;;  %v5443_v39 = vmul.f32 %v5379_v25, %v10268_v6  ;;  %v5377_v54 = vmul.f32 0.5, %v5313_v58  ;;  %v5381_v52 = vmul.f32 0.5, %v5317_v61  ;;  %5829 = vmatprep.mubr.bf16.mxu0 %v5500_v0 }
 0xfe4   : >> { %v10581_v40 = vpop.f32.mrb[143].mxu0  ;;  %v10583_v12 = vpop.f32.mrb[103].mxu1  ;;  %5919 = vmatmul.mubr.bf16.vlgmr.msra.gmra.mrb[112].mxu1 %v11388_v20  ;;  %v5502_v32 = vpack.c.bf16 %v5446_v38, %v5442_v21  ;;  %v5324_v17 = vadd.f32 1.0, %v10527_v37  ;;  %v5384_v18 = vmul.f32 0.5, %v5320_v50  ;;  %v5322_v13 = vadd.f32 1.0, %v10503_v4 }
 0xfe5   : >> { %v10590_v29 = vpop.eup %8014  ;;  %v5499_v22 = vpack.c.bf16 %v5443_v39, %v5439_v16  ;;  %v5441_v3 = vmul.f32 %v5377_v54, %v10255_v42  ;;  %v5445_v57 = vmul.f32 %v5381_v52, %v10271_v10  ;;  %v5326_v5 = vadd.f32 1.0, %v8005_v23 }
 0xfe6   : >> { %v10596_v35 = vpop.eup %8016  ;;  %5926 = vmatprep.mubr.bf16.mxu1 %v5502_v32  ;;  %v5388_v6 = vmul.f32 0.5, %v5324_v17  ;;  %v5448_v15 = vmul.f32 %v5384_v18, %v10364_v46  ;;  %v5386_v28 = vmul.f32 0.5, %v5322_v13  ;;  %v5319_v51 = vadd.f32 1.0, %v10473_v24  ;;  %v11390_v13 = vld [vmem:[#allocation18_spill] sm:$0xff] }
 0xfe7   : >> { %v8019_v49 = vpop.eup %8018  ;;  %v5501_v37 = vpack.c.bf16 %v5445_v57, %v5441_v3  ;;  %v5390_v11 = vmul.f32 0.5, %v5326_v5  ;;  %v5323_v4 = vadd.f32 1.0, %v10513_v2  ;;  %v5321_v42 = vadd.f32 1.0, %v10489_v26  ;;  %v11391_v3 = vld [vmem:[#allocation17_spill] sm:$0xff] }
 0xfe8   : >> { %5830 = vmatmul.mubr.bf16.gmra.mrb[156].mxu0 %v5499_v22  ;;  %v10602_v25 = vpop.f32.mrb[144].mxu0  ;;  %v10604_v10 = vpop.f32.mrb[104].mxu1  ;;  %v5452_v23 = vmul.f32 %v5388_v6, %v10408_v1  ;;  %v5450_v58 = vmul.f32 %v5386_v28, %v10372_v55  ;;  %v5383_v46 = vmul.f32 0.5, %v5319_v51  ;;  %v5325_v61 = vadd.f32 1.0, %v10520_v34  ;;  %v11392_v57 = vld [vmem:[#allocation9_spill] sm:$0xff] }
 0xfe9   : >> { %v10609_v24 = vpop.f32.mrb[145].mxu0  ;;  %v10611_v0 = vpop.f32.mrb[105].mxu1  ;;  %v5454_v2 = vmul.f32 %v5390_v11, %v10428_v8  ;;  %v5387_v38 = vmul.f32 0.5, %v5323_v4  ;;  %v5385_v26 = vmul.f32 0.5, %v5321_v42  ;;  %v10616_v50 = vadd.f32 %v10516_v56, %v10183_v59 }
 0xfea   : >> { %v8021_v21 = vpop.eup %8020  ;;  %v10618_v20 = vpop.f32.mrb[146].mxu0  ;;  %v5504_v55 = vpack.c.bf16 %v5452_v23, %v5448_v15  ;;  %v5447_v34 = vmul.f32 %v5383_v46, %v10341_v7  ;;  %v5389_v16 = vmul.f32 0.5, %v5325_v61  ;;  %v10625_v39 = vadd.f32 %v10518_v14, %v10186_v36  ;;  %v11389_v7 = vld [vmem:[#allocation16_spill] sm:$0xff] }
 0xfeb   : >> { %v10620_v1 = vpop.f32.mrb[106].mxu1  ;;  %v10627_v54 = vpop.f32.mrb[147].mxu0  ;;  %v5506_v52 = vpack.c.bf16 %v5454_v2, %v5450_v58  ;;  %v5451_v56 = vmul.f32 %v5387_v38, %v10398_v33  ;;  %v5449_v32 = vmul.f32 %v5385_v26, %v10360_v30  ;;  %v4951_v17 = vmul.f32 %v10616_v50, %v10616_v50 }
 0xfec   : >> { %v10629_v8 = vpop.f32.mrb[107].mxu1  ;;  %5927 = vmatmul.mubr.bf16.gmra.mrb[116].mxu1 %v5501_v37  ;;  %5837 = vmatprep.mubr.bf16.mxu0 %v5504_v55  ;;  %v5453_v18 = vmul.f32 %v5389_v16, %v11389_v7  ;;  %v4953_v14 = vmul.f32 %v10625_v39, %v10625_v39  ;;  %v10640_v22 = vadd.f32 %v10523_v62, %v11390_v13  ;;  %v5328_v6 = vadd.f32 1.0, %v10568_v19  ;;  %v11393_v55 = vld [vmem:[#allocation13_spill] sm:$0xff] }
 0xfed   : >> { %v10644_v5 = vadd.f32 %v11392_v57, %v11391_v3  ;;  %5934 = vmatprep.mubr.bf16.mxu1 %v5506_v52  ;;  %v5503_v33 = vpack.c.bf16 %v5451_v56, %v5447_v34  ;;  %v5015_v30 = vmul.f32 %v4951_v17, %v10616_v50  ;;  %v5332_v15 = vadd.f32 1.0, %v8019_v49 }
 0xfee   : >> { %v5505_v28 = vpack.c.bf16 %v5453_v18, %v5449_v32  ;;  %v5017_v51 = vmul.f32 %v4953_v14, %v10625_v39  ;;  %v4952_v37 = vmul.f32 %v10640_v22, %v10640_v22  ;;  %v5392_v4 = vmul.f32 0.5, %v5328_v6  ;;  %v11395_v6 = vld [vmem:[#allocation8_spill] sm:$0xff] }
 0xfef   : >> { %v4954_v62 = vmul.f32 %v10644_v5, %v10644_v5  ;;  %v5079_v11 = vmul.f32 0.044715, %v5015_v30  ;;  %v5396_v42 = vmul.f32 0.5, %v5332_v15  ;;  %v5330_v23 = vadd.f32 1.0, %v10576_v60 }
 0xff0   : >> { %5838 = vmatmul.mubr.bf16.gmra.mrb[160].mxu0 %v5503_v33  ;;  %v10654_v58 = vpop.f32.mrb[148].mxu0  ;;  %v5081_v46 = vmul.f32 0.044715, %v5017_v51  ;;  %v5016_v19 = vmul.f32 %v4952_v37, %v10640_v22  ;;  %v5334_v61 = vadd.f32 1.0, %v8021_v21  ;;  %v10658_v2 = vpop.f32.mrb[108].mxu1  ;;  %v5456_v34 = vmul.f32 %v5392_v4, %v11393_v55  ;;  %v11394_v33 = vld [vmem:[#allocation12_spill] sm:$0xff] }
 0xff1   : >> { %v5018_v49 = vmul.f32 %v4954_v62, %v10644_v5  ;;  %v10660_v38 = vpop.f32.mrb[149].mxu0  ;;  %v5143_v26 = vadd.f32 %v5079_v11, %v10616_v50  ;;  %v5460_v16 = vmul.f32 %v5396_v42, %v10487_v44  ;;  %v5394_v52 = vmul.f32 0.5, %v5330_v23  ;;  %v10665_v60 = vpop.f32.mrb[109].mxu1  ;;  %v11396_v42 = vld [vmem:[#allocation7_spill] sm:$0xff] }
 0xff2   : >> { %v10667_v56 = vpop.f32.mrb[150].mxu0  ;;  %v5145_v32 = vadd.f32 %v5081_v46, %v10625_v39  ;;  %v5080_v17 = vmul.f32 0.044715, %v5016_v19  ;;  %v5398_v21 = vmul.f32 0.5, %v5334_v61  ;;  %v10670_v18 = vpop.f32.mrb[110].mxu1  ;;  %v10675_v44 = vadd.f32 %v11395_v6, %v10183_v59 }
 0xff3   : >> { %v5082_v7 = vmul.f32 0.044715, %v5018_v49  ;;  %v5207_v14 = vmul.f32 0.7978846, %v5143_v26  ;;  %v5508_v57 = vpack.c.bf16 %v5460_v16, %v5456_v34  ;;  %v5458_v30 = vmul.f32 %v5394_v52, %v11394_v33  ;;  %v10677_v15 = vpop.f32.mrb[151].mxu0  ;;  %v10679_v51 = vpop.f32.mrb[111].mxu1 }
 0xff4   : >> { %5935 = vmatmul.mubr.bf16.gmra.mrb[120].mxu1 %v5505_v28  ;;  %v5209_v37 = vmul.f32 0.7978846, %v5145_v32  ;;  %v5144_v62 = vadd.f32 %v5080_v17, %v10640_v22  ;;  %v5462_v4 = vmul.f32 %v5398_v21, %v10501_v27  ;;  %v4955_v28 = vmul.f32 %v10675_v44, %v10675_v44  ;;  %v11397_v21 = vld [vmem:[#allocation15_spill] sm:$0xff] }
 0xff5   : >> { %v5146_v11 = vadd.f32 %v5082_v7, %v10644_v5  ;;  %8022 = vtanh.f32 %v5207_v14  ;;  %5845 = vmatprep.mubr.bf16.mxu0 %v5508_v57  ;;  %v10688_v23 = vadd.f32 %v11396_v42, %v10186_v36  ;;  %v5327_v46 = vadd.f32 1.0, %v10545_v43 }
 0xff6   : >> { %8024 = vtanh.f32 %v5209_v37  ;;  %v5208_v19 = vmul.f32 0.7978846, %v5144_v62  ;;  %v5510_v61 = vpack.c.bf16 %v5462_v4, %v5458_v30  ;;  %v5019_v26 = vmul.f32 %v4955_v28, %v10675_v44  ;;  %v11400_v62 = vld [vmem:[#allocation14_spill] sm:$0xff] }
 0xff7   : >> { %v5210_v49 = vmul.f32 0.7978846, %v5146_v11  ;;  %v4957_v27 = vmul.f32 %v10688_v23, %v10688_v23  ;;  %v5331_v55 = vadd.f32 1.0, %v10590_v29  ;;  %v5391_v34 = vmul.f32 0.5, %v5327_v46  ;;  %v11401_v4 = vld [vmem:[#allocation10_spill] sm:$0xff] }
 0xff8   : >> { %8026 = vtanh.f32 %v5208_v19  ;;  %5942 = vmatprep.mubr.bf16.mxu1 %v5510_v61  ;;  %v5329_v16 = vadd.f32 1.0, %v10548_v47  ;;  %v5333_v52 = vadd.f32 1.0, %v10596_v35  ;;  %v10699_v43 = vadd.f32 %v10538_v48, %v11390_v13  ;;  %v11398_v35 = vld [vmem:[#allocation11_spill] sm:$0xff]  ;;  %v11399_v48 = vld [vmem:[#allocation6_spill] sm:$0xff] }
 0xff9   : >> { %8028 = vtanh.f32 %v5210_v49  ;;  %v5083_v32 = vmul.f32 0.044715, %v5019_v26  ;;  %v5021_v17 = vmul.f32 %v4957_v27, %v10688_v23  ;;  %v5395_v7 = vmul.f32 0.5, %v5331_v55 }
 0xffa   : >> { %v5455_v14 = vmul.f32 %v5391_v34, %v11397_v21  ;;  %v5393_v57 = vmul.f32 0.5, %v5329_v16  ;;  %v5397_v29 = vmul.f32 0.5, %v5333_v52  ;;  %v4956_v33 = vmul.f32 %v10699_v43, %v10699_v43 }
 0xffb   : >> { %v5147_v47 = vadd.f32 %v5083_v32, %v10675_v44  ;;  %v5085_v30 = vmul.f32 0.044715, %v5021_v17  ;;  %v5459_v6 = vmul.f32 %v5395_v7, %v11398_v35  ;;  %v10709_v37 = vadd.f32 %v11399_v48, %v11391_v3 }
 0xffc   : >> { %v5457_v11 = vmul.f32 %v5393_v57, %v11400_v62  ;;  %v5461_v28 = vmul.f32 %v5397_v29, %v11401_v4  ;;  %v5020_v42 = vmul.f32 %v4956_v33, %v10699_v43  ;;  %v10716_v46 = vadd.f32 %v10559_v41, %v10183_v59 }
 0xffd   : >> { %v5211_v19 = vmul.f32 0.7978846, %v5147_v47  ;;  %v5149_v49 = vadd.f32 %v5085_v30, %v10688_v23  ;;  %v5507_v61 = vpack.c.bf16 %v5459_v6, %v5455_v14  ;;  %v4958_v26 = vmul.f32 %v10709_v37, %v10709_v37 }
 0xffe   : >> { %v5509_v27 = vpack.c.bf16 %v5461_v28, %v5457_v11  ;;  %v5084_v55 = vmul.f32 0.044715, %v5020_v42  ;;  %v4959_v34 = vmul.f32 %v10716_v46, %v10716_v46  ;;  %v10725_v16 = vadd.f32 %v10561_v9, %v10186_v36 }
 0xfff   : >> { %v10727_v52 = vpop.eup %8022  ;;  %8030 = vtanh.f32 %v5211_v19  ;;  %v5213_v41 = vmul.f32 0.7978846, %v5149_v49  ;;  %5846 = vmatmul.mubr.bf16.gmra.mrb[164].mxu0 %v5507_v61  ;;  %v5022_v32 = vmul.f32 %v4958_v26, %v10709_v37  ;;  %v10732_v17 = vadd.f32 %v10564_v53, %v11390_v13 }
0x1000   : >> { %v10734_v7 = vpop.eup %8024  ;;  %5943 = vmatmul.mubr.bf16.gmra.mrb[124].mxu1 %v5509_v27  ;;  %v5148_v21 = vadd.f32 %v5084_v55, %v10699_v43  ;;  %v5023_v14 = vmul.f32 %v4959_v34, %v10716_v46  ;;  %v4961_v9 = vmul.f32 %v10725_v16, %v10725_v16  ;;  %v10742_v57 = vadd.f32 %v10566_v45, %v11391_v3 }
0x1001   : >> { %8032 = vtanh.f32 %v5213_v41  ;;  %v5086_v29 = vmul.f32 0.044715, %v5022_v32  ;;  %v4960_v53 = vmul.f32 %v10732_v17, %v10732_v17  ;;  %v10748_v33 = vadd.f32 %v10572_v63, %v10183_v59 }
0x1002   : >> { %v10750_v47 = vpop.eup %8026  ;;  %v5212_v30 = vmul.f32 0.7978846, %v5148_v21  ;;  %v5087_v35 = vmul.f32 0.044715, %v5023_v14  ;;  %v5025_v6 = vmul.f32 %v4961_v9, %v10725_v16  ;;  %v4962_v48 = vmul.f32 %v10742_v57, %v10742_v57 }
0x1003   : >> { %v10755_v45 = vpop.eup %8028  ;;  %v5150_v62 = vadd.f32 %v5086_v29, %v10709_v37  ;;  %v5024_v11 = vmul.f32 %v4960_v53, %v10732_v17  ;;  %v4963_v4 = vmul.f32 %v10748_v33, %v10748_v33  ;;  %v10763_v63 = vadd.f32 %v10574_v31, %v10186_v36 }
0x1004   : >> { %8034 = vtanh.f32 %v5212_v30  ;;  %v5151_v28 = vadd.f32 %v5087_v35, %v10716_v46  ;;  %v5089_v42 = vmul.f32 0.044715, %v5025_v6  ;;  %v5026_v19 = vmul.f32 %v4962_v48, %v10742_v57 }
0x1005   : >> { %v5214_v49 = vmul.f32 0.7978846, %v5150_v62  ;;  %v5088_v61 = vmul.f32 0.044715, %v5024_v11  ;;  %v5027_v26 = vmul.f32 %v4963_v4, %v10748_v33  ;;  %v4965_v27 = vmul.f32 %v10763_v63, %v10763_v63 }
0x1006   : >> { %v5215_v55 = vmul.f32 0.7978846, %v5151_v28  ;;  %v5153_v34 = vadd.f32 %v5089_v42, %v10725_v16  ;;  %v5090_v41 = vmul.f32 0.044715, %v5026_v19  ;;  %v10773_v31 = vadd.f32 %v10581_v40, %v11390_v13 }
0x1007   : >> { %8036 = vtanh.f32 %v5214_v49  ;;  %v5152_v32 = vadd.f32 %v5088_v61, %v10732_v17  ;;  %v5091_v21 = vmul.f32 0.044715, %v5027_v26  ;;  %v5029_v14 = vmul.f32 %v4965_v27, %v10763_v63 }
0x1008   : >> { %8038 = vtanh.f32 %v5215_v55  ;;  %v5217_v9 = vmul.f32 0.7978846, %v5153_v34  ;;  %v5154_v29 = vadd.f32 %v5090_v41, %v10742_v57  ;;  %v4964_v53 = vmul.f32 %v10773_v31, %v10773_v31 }
0x1009   : >> { %v10780_v30 = vpop.eup %8030  ;;  %v5216_v35 = vmul.f32 0.7978846, %v5152_v32  ;;  %v5155_v6 = vadd.f32 %v5091_v21, %v10748_v33  ;;  %v5093_v40 = vmul.f32 0.044715, %v5029_v14  ;;  %v10785_v48 = vadd.f32 %v10583_v12, %v11391_v3 }
0x100a   : >> { %8040 = vtanh.f32 %v5217_v9  ;;  %v5218_v62 = vmul.f32 0.7978846, %v5154_v29  ;;  %v5028_v11 = vmul.f32 %v4964_v53, %v10773_v31  ;;  %v10790_v4 = vadd.f32 %v10602_v25, %v10183_v59 }
0x100b   : >> { %v10792_v28 = vpop.eup %8032  ;;  %8042 = vtanh.f32 %v5216_v35  ;;  %v5219_v42 = vmul.f32 0.7978846, %v5155_v6  ;;  %v5157_v19 = vadd.f32 %v5093_v40, %v10763_v63  ;;  %v4966_v49 = vmul.f32 %v10785_v48, %v10785_v48 }
0x100c   : >> { %11402 = vst [vmem:[#allocation5_spill] sm:$0xff] %v10790_v4  ;;  %8044 = vtanh.f32 %v5218_v62  ;;  %v5092_v12 = vmul.f32 0.044715, %v5028_v11  ;;  %v4967_v61 = vmul.f32 %v10790_v4, %v10790_v4  ;;  %v10801_v26 = vadd.f32 %v10604_v10, %v10186_v36 }
0x100d   : >> { %8046 = vtanh.f32 %v5219_v42  ;;  %v5221_v25 = vmul.f32 0.7978846, %v5157_v19  ;;  %v5030_v27 = vmul.f32 %v4966_v49, %v10785_v48  ;;  %v10806_v55 = vadd.f32 %v10609_v24, %v11390_v13 }
0x100e   : >> { %11403 = vst [vmem:[#allocation4_spill] sm:$0xff] %v10801_v26  ;;  %v10808_v34 = vpop.eup %8034  ;;  %v5156_v41 = vadd.f32 %v5092_v12, %v10773_v31  ;;  %v5031_v32 = vmul.f32 %v4967_v61, %v10790_v4  ;;  %v4969_v21 = vmul.f32 %v10801_v26, %v10801_v26  ;;  %v10816_v10 = vadd.f32 %v10611_v0, %v11391_v3 }
0x100f   : >> { %8048 = vtanh.f32 %v5221_v25  ;;  %v5094_v14 = vmul.f32 0.044715, %v5030_v27  ;;  %v4968_v9 = vmul.f32 %v10806_v55, %v10806_v55  ;;  %v10822_v24 = vadd.f32 %v10618_v20, %v10183_v59 }
0x1010   : >> { %v5220_v29 = vmul.f32 0.7978846, %v5156_v41  ;;  %v5095_v53 = vmul.f32 0.044715, %v5031_v32  ;;  %v5033_v35 = vmul.f32 %v4969_v21, %v10801_v26  ;;  %v4970_v6 = vmul.f32 %v10816_v10, %v10816_v10 }
0x1011   : >> { %11404 = vst [vmem:[#allocation3_spill] sm:$0xff] %v10822_v24  ;;  %v10827_v40 = vpop.eup %8036  ;;  %v5158_v0 = vadd.f32 %v5094_v14, %v10785_v48  ;;  %v5032_v62 = vmul.f32 %v4968_v9, %v10806_v55  ;;  %v4971_v11 = vmul.f32 %v10822_v24, %v10822_v24  ;;  %v10835_v20 = vadd.f32 %v10620_v1, %v10186_v36 }
0x1012   : >> { %v10837_v42 = vpop.eup %8038  ;;  %8050 = vtanh.f32 %v5220_v29  ;;  %v5159_v19 = vadd.f32 %v5095_v53, %v10790_v4  ;;  %v5097_v49 = vmul.f32 0.044715, %v5033_v35  ;;  %v5034_v12 = vmul.f32 %v4970_v6, %v10816_v10 }
0x1013   : >> { %11405 = vst [vmem:[#allocation20_spill] sm:$0xff] %v10835_v20  ;;  %v5222_v61 = vmul.f32 0.7978846, %v5158_v0  ;;  %v5096_v25 = vmul.f32 0.044715, %v5032_v62  ;;  %v5035_v27 = vmul.f32 %v4971_v11, %v10822_v24  ;;  %v4973_v41 = vmul.f32 %v10835_v20, %v10835_v20 }
0x1014   : >> { %v10844_v32 = vpop.eup %8040  ;;  %v5223_v21 = vmul.f32 0.7978846, %v5159_v19  ;;  %v5161_v1 = vadd.f32 %v5097_v49, %v10801_v26  ;;  %v5098_v14 = vmul.f32 0.044715, %v5034_v12  ;;  %v10849_v9 = vadd.f32 %v10627_v54, %v11390_v13 }
0x1015   : >> { %v10851_v29 = vpop.eup %8042  ;;  %8052 = vtanh.f32 %v5222_v61  ;;  %v5160_v53 = vadd.f32 %v5096_v25, %v10806_v55  ;;  %v5099_v35 = vmul.f32 0.044715, %v5035_v27  ;;  %v5037_v6 = vmul.f32 %v4973_v41, %v10835_v20 }
0x1016   : >> { %v10855_v0 = vpop.eup %8044  ;;  %8054 = vtanh.f32 %v5223_v21  ;;  %v5225_v62 = vmul.f32 0.7978846, %v5161_v1  ;;  %v5162_v11 = vadd.f32 %v5098_v14, %v10816_v10  ;;  %v4972_v19 = vmul.f32 %v10849_v9, %v10849_v9 }
0x1017   : >> { %v10860_v49 = vpop.eup %8046  ;;  %v5224_v54 = vmul.f32 0.7978846, %v5160_v53  ;;  %v5163_v12 = vadd.f32 %v5099_v35, %v10822_v24  ;;  %v5101_v61 = vmul.f32 0.044715, %v5037_v6  ;;  %v10865_v25 = vadd.f32 %v10629_v8, %v11391_v3 }
0x1018   : >> { %8056 = vtanh.f32 %v5225_v62  ;;  %v5226_v27 = vmul.f32 0.7978846, %v5162_v11  ;;  %v5036_v41 = vmul.f32 %v4972_v19, %v10849_v9  ;;  %v10870_v21 = vadd.f32 %v10654_v58, %v10183_v59 }
0x1019   : >> { %11406 = vst [vmem:[#allocation21_spill] sm:$0xff] %v10865_v25  ;;  %v10872_v1 = vpop.eup %8048  ;;  %8058 = vtanh.f32 %v5224_v54  ;;  %v5227_v14 = vmul.f32 0.7978846, %v5163_v12  ;;  %v5165_v53 = vadd.f32 %v5101_v61, %v10835_v20  ;;  %v4974_v35 = vmul.f32 %v10865_v25, %v10865_v25 }
0x101a   : >> { %8060 = vtanh.f32 %v5226_v27  ;;  %v5100_v8 = vmul.f32 0.044715, %v5036_v41  ;;  %v4975_v6 = vmul.f32 %v10870_v21, %v10870_v21  ;;  %v10881_v62 = vadd.f32 %v10658_v2, %v10186_v36 }
0x101b   : >> { %8062 = vtanh.f32 %v5227_v14  ;;  %v5229_v58 = vmul.f32 0.7978846, %v5165_v53  ;;  %v5038_v11 = vmul.f32 %v4974_v35, %v10865_v25  ;;  %v10886_v19 = vadd.f32 %v10660_v38, %v11390_v13 }
0x101c   : >> { %11407 = vst [vmem:[#allocation16_spill] sm:$0xff] %v10881_v62  ;;  %v10888_v54 = vpop.eup %8050  ;;  %v5164_v12 = vadd.f32 %v5100_v8, %v10849_v9  ;;  %v5039_v61 = vmul.f32 %v4975_v6, %v10870_v21  ;;  %v4977_v27 = vmul.f32 %v10881_v62, %v10881_v62  ;;  %v10896_v2 = vadd.f32 %v10665_v60, %v11391_v3 }
0x101d   : >> { %8064 = vtanh.f32 %v5229_v58  ;;  %v5102_v41 = vmul.f32 0.044715, %v5038_v11  ;;  %v4976_v14 = vmul.f32 %v10886_v19, %v10886_v19  ;;  %v10902_v38 = vadd.f32 %v10667_v56, %v10183_v59 }
0x101e   : >> { %v5228_v53 = vmul.f32 0.7978846, %v5164_v12  ;;  %v5103_v35 = vmul.f32 0.044715, %v5039_v61  ;;  %v5041_v8 = vmul.f32 %v4977_v27, %v10881_v62  ;;  %v4978_v6 = vmul.f32 %v10896_v2, %v10896_v2 }
0x101f   : >> { %v10907_v20 = vpop.eup %8052  ;;  %v5166_v60 = vadd.f32 %v5102_v41, %v10865_v25  ;;  %v5040_v58 = vmul.f32 %v4976_v14, %v10886_v19  ;;  %v4979_v11 = vmul.f32 %v10902_v38, %v10902_v38  ;;  %v10915_v59 = vadd.f32 %v10670_v18, %v10186_v36 }
0x1020   : >> { %v10917_v56 = vpop.eup %8054  ;;  %8066 = vtanh.f32 %v5228_v53  ;;  %v5167_v12 = vadd.f32 %v5103_v35, %v10870_v21  ;;  %v5105_v61 = vmul.f32 0.044715, %v5041_v8  ;;  %v5042_v27 = vmul.f32 %v4978_v6, %v10896_v2 }
0x1021   : >> { %v5230_v26 = vmul.f32 0.7978846, %v5166_v60  ;;  %v5104_v24 = vmul.f32 0.044715, %v5040_v58  ;;  %v5043_v41 = vmul.f32 %v4979_v11, %v10902_v38  ;;  %v4981_v14 = vmul.f32 %v10915_v59, %v10915_v59 }
0x1022   : >> { %v10924_v4 = vpop.eup %8056  ;;  %v5231_v25 = vmul.f32 0.7978846, %v5167_v12  ;;  %v5169_v36 = vadd.f32 %v5105_v61, %v10881_v62  ;;  %v5106_v18 = vmul.f32 0.044715, %v5042_v27  ;;  %v10929_v53 = vadd.f32 %v10677_v15, %v11390_v13 }
0x1023   : >> { %v10931_v35 = vpop.eup %8058  ;;  %8068 = vtanh.f32 %v5230_v26  ;;  %v5168_v8 = vadd.f32 %v5104_v24, %v10886_v19  ;;  %v5107_v6 = vmul.f32 0.044715, %v5043_v41  ;;  %v5045_v60 = vmul.f32 %v4981_v14, %v10915_v59 }
0x1024   : >> { %v10935_v58 = vpop.eup %8060  ;;  %8070 = vtanh.f32 %v5231_v25  ;;  %v5233_v11 = vmul.f32 0.7978846, %v5169_v36  ;;  %v5170_v12 = vadd.f32 %v5106_v18, %v10896_v2  ;;  %v4980_v61 = vmul.f32 %v10929_v53, %v10929_v53 }
0x1025   : >> { %v10940_v27 = vpop.eup %8062  ;;  %v5232_v13 = vmul.f32 0.7978846, %v5168_v8  ;;  %v5171_v15 = vadd.f32 %v5107_v6, %v10902_v38  ;;  %v5109_v26 = vmul.f32 0.044715, %v5045_v60  ;;  %v10945_v24 = vadd.f32 %v10679_v51, %v11391_v3 }
0x1026   : >> { %8072 = vtanh.f32 %v5233_v11  ;;  %v5234_v41 = vmul.f32 0.7978846, %v5170_v12  ;;  %v5044_v25 = vmul.f32 %v4980_v61, %v10929_v53  ;;  %v5336_v14 = vadd.f32 1.0, %v10750_v47 }
0x1027   : >> { %v10949_v36 = vpop.eup %8064  ;;  %8074 = vtanh.f32 %v5232_v13  ;;  %v5235_v18 = vmul.f32 0.7978846, %v5171_v15  ;;  %v5173_v62 = vadd.f32 %v5109_v26, %v10915_v59  ;;  %v4982_v8 = vmul.f32 %v10945_v24, %v10945_v24 }
0x1028   : >> { %8076 = vtanh.f32 %v5234_v41  ;;  %v5108_v6 = vmul.f32 0.044715, %v5044_v25  ;;  %v5340_v3 = vadd.f32 1.0, %v10808_v34  ;;  %v5400_v51 = vmul.f32 0.5, %v5336_v14 }
0x1029   : >> { %8078 = vtanh.f32 %v5235_v18  ;;  %v5237_v60 = vmul.f32 0.7978846, %v5173_v62  ;;  %v5046_v11 = vmul.f32 %v4982_v8, %v10945_v24  ;;  %v5338_v47 = vadd.f32 1.0, %v10755_v45 }
0x102a   : >> { %v10957_v12 = vpop.eup %8066  ;;  %v5172_v61 = vadd.f32 %v5108_v6, %v10929_v53  ;;  %v5404_v13 = vmul.f32 0.5, %v5340_v3  ;;  %v5464_v15 = vmul.f32 %v5400_v51, %v10640_v22  ;;  %v5342_v26 = vadd.f32 1.0, %v10827_v40 }
0x102b   : >> { %8080 = vtanh.f32 %v5237_v60  ;;  %v5110_v41 = vmul.f32 0.044715, %v5046_v11  ;;  %v5402_v25 = vmul.f32 0.5, %v5338_v47  ;;  %v5335_v34 = vadd.f32 1.0, %v10727_v52 }
0x102c   : >> { %v5236_v14 = vmul.f32 0.7978846, %v5172_v61  ;;  %v5468_v62 = vmul.f32 %v5404_v13, %v10699_v43  ;;  %v5406_v18 = vmul.f32 0.5, %v5342_v26  ;;  %v5339_v45 = vadd.f32 1.0, %v10780_v30 }
0x102d   : >> { %v10965_v8 = vpop.eup %8068  ;;  %v5174_v6 = vadd.f32 %v5110_v41, %v10945_v24  ;;  %v5466_v3 = vmul.f32 %v5402_v25, %v10644_v5  ;;  %v5399_v22 = vmul.f32 0.5, %v5335_v34  ;;  %v5337_v40 = vadd.f32 1.0, %v10734_v7 }
0x102e   : >> { %v10970_v51 = vpop.eup %8070  ;;  %8082 = vtanh.f32 %v5236_v14  ;;  %v5512_v60 = vpack.c.bf16 %v5468_v62, %v5464_v15  ;;  %v5470_v52 = vmul.f32 %v5406_v18, %v10709_v37  ;;  %v5403_v11 = vmul.f32 0.5, %v5339_v45 }
0x102f   : >> { %v5238_v43 = vmul.f32 0.7978846, %v5174_v6  ;;  %v5463_v47 = vmul.f32 %v5399_v22, %v10616_v50  ;;  %v5341_v30 = vadd.f32 1.0, %v10792_v28  ;;  %v5401_v61 = vmul.f32 0.5, %v5337_v40 }
0x1030   : >> { %v10975_v13 = vpop.eup %8072  ;;  %5853 = vmatprep.mubr.bf16.mxu0 %v5512_v60  ;;  %v5514_v5 = vpack.c.bf16 %v5470_v52, %v5466_v3  ;;  %v5467_v26 = vmul.f32 %v5403_v11, %v10675_v44  ;;  %v5344_v7 = vadd.f32 1.0, %v10851_v29  ;;  %v5348_v41 = vadd.f32 1.0, %v10888_v54 }
0x1031   : >> { %v10980_v15 = vpop.eup %8074  ;;  %8084 = vtanh.f32 %v5238_v43  ;;  %v5405_v37 = vmul.f32 0.5, %v5341_v30  ;;  %v5465_v25 = vmul.f32 %v5401_v61, %v10625_v39  ;;  %v5346_v50 = vadd.f32 1.0, %v10855_v0 }
0x1032   : >> { %v10984_v28 = vpop.eup %8076  ;;  %5950 = vmatprep.mubr.bf16.mxu1 %v5514_v5  ;;  %v5511_v34 = vpack.c.bf16 %v5467_v26, %v5463_v47  ;;  %v5408_v14 = vmul.f32 0.5, %v5344_v7  ;;  %v5412_v62 = vmul.f32 0.5, %v5348_v41  ;;  %v5350_v44 = vadd.f32 1.0, %v10907_v20 }
0x1033   : >> { %v10987_v18 = vpop.eup %8078  ;;  %v5469_v29 = vmul.f32 %v5405_v37, %v10688_v23  ;;  %v5410_v54 = vmul.f32 0.5, %v5346_v50  ;;  %v5343_v45 = vadd.f32 1.0, %v10837_v42  ;;  %v5347_v6 = vadd.f32 1.0, %v10860_v49 }
0x1034   : >> { %5854 = vmatmul.mubr.bf16.gmra.mrb[168].mxu0 %v5511_v34  ;;  %v5472_v39 = vmul.f32 %v5408_v14, %v10732_v17  ;;  %v5476_v0 = vmul.f32 %v5412_v62, %v10773_v31  ;;  %v5414_v3 = vmul.f32 0.5, %v5350_v44  ;;  %v5345_v22 = vadd.f32 1.0, %v10844_v32  ;;  %v11408_v44 = vld [vmem:[#allocation21_spill] sm:$0xff] }
0x1035   : >> { %v10995_v40 = vpop.eup %8080  ;;  %v5513_v20 = vpack.c.bf16 %v5469_v29, %v5465_v25  ;;  %v5474_v60 = vmul.f32 %v5410_v54, %v10742_v57  ;;  %v5407_v52 = vmul.f32 0.5, %v5343_v45  ;;  %v5411_v23 = vmul.f32 0.5, %v5347_v6  ;;  %v11409_v54 = vld [vmem:[#allocation5_spill] sm:$0xff] }
0x1036   : >> { %v5516_v11 = vpack.c.bf16 %v5476_v0, %v5472_v39  ;;  %v5478_v42 = vmul.f32 %v5414_v3, %v10785_v48  ;;  %v5349_v49 = vadd.f32 1.0, %v10872_v1  ;;  %v5409_v43 = vmul.f32 0.5, %v5345_v22 }
0x1037   : >> { %5951 = vmatmul.mubr.bf16.gmra.mrb[128].mxu1 %v5513_v20  ;;  %v5471_v17 = vmul.f32 %v5407_v52, %v10716_v46  ;;  %v5475_v31 = vmul.f32 %v5411_v23, %v10748_v33  ;;  %v5352_v32 = vadd.f32 1.0, %v10931_v35  ;;  %v5356_v47 = vadd.f32 1.0, %v10957_v12  ;;  %v11412_v23 = vld [vmem:[#allocation20_spill] sm:$0xff] }
0x1038   : >> { %v8083_v30 = vpop.eup %8082  ;;  %5861 = vmatprep.mubr.bf16.mxu0 %v5516_v11  ;;  %v5518_v57 = vpack.c.bf16 %v5478_v42, %v5474_v60  ;;  %v5413_v61 = vmul.f32 0.5, %v5349_v49  ;;  %v5473_v5 = vmul.f32 %v5409_v43, %v10725_v16  ;;  %v5354_v48 = vadd.f32 1.0, %v10935_v58 }
0x1039   : >> { %v5515_v26 = vpack.c.bf16 %v5475_v31, %v5471_v17  ;;  %v5416_v1 = vmul.f32 0.5, %v5352_v32  ;;  %v5420_v7 = vmul.f32 0.5, %v5356_v47  ;;  %v5358_v41 = vadd.f32 1.0, %v10965_v8 }
0x103a   : >> { %5958 = vmatprep.mubr.bf16.mxu1 %v5518_v57  ;;  %v5477_v46 = vmul.f32 %v5413_v61, %v10763_v63  ;;  %v5418_v33 = vmul.f32 0.5, %v5354_v48  ;;  %v5351_v35 = vadd.f32 1.0, %v10917_v56  ;;  %v5355_v12 = vadd.f32 1.0, %v10940_v27 }
0x103b   : >> { %v8085_v37 = vpop.eup %8084  ;;  %v5480_v25 = vmul.f32 %v5416_v1, %v10806_v55  ;;  %v5484_v16 = vmul.f32 %v5420_v7, %v10849_v9  ;;  %v5422_v50 = vmul.f32 0.5, %v5358_v41  ;;  %v5353_v58 = vadd.f32 1.0, %v10924_v4  ;;  %v11410_v55 = vld [vmem:[#allocation3_spill] sm:$0xff] }
0x103c   : >> { %5862 = vmatmul.mubr.bf16.gmra.mrb[172].mxu0 %v5515_v26  ;;  %v5517_v34 = vpack.c.bf16 %v5477_v46, %v5473_v5  ;;  %v5482_v8 = vmul.f32 %v5418_v33, %v10816_v10  ;;  %v5415_v14 = vmul.f32 0.5, %v5351_v35  ;;  %v5419_v62 = vmul.f32 0.5, %v5355_v12  ;;  %v11411_v10 = vld [vmem:[#allocation4_spill] sm:$0xff]  ;;  %v8087_v33 = vld [vmem:[%s8774_s19] sm:$0xff] }
0x103d   : >> { %v5520_v63 = vpack.c.bf16 %v5484_v16, %v5480_v25  ;;  %v5486_v29 = vmul.f32 %v5422_v50, %v11408_v44  ;;  %v5357_v56 = vadd.f32 1.0, %v10949_v36  ;;  %v5417_v27 = vmul.f32 0.5, %v5353_v58 }
0x103e   : >> { %v5479_v45 = vmul.f32 %v5415_v14, %v11409_v54  ;;  %v5483_v6 = vmul.f32 %v5419_v62, %v11410_v55  ;;  %v5360_v9 = vadd.f32 1.0, %v10980_v15  ;;  %v5364_v39 = vadd.f32 1.0, %v8083_v30 }
0x103f   : >> { %5959 = vmatmul.mubr.bf16.gmra.mrb[132].mxu1 %v5517_v34  ;;  %5869 = vmatprep.mubr.bf16.mxu0 %v5520_v63  ;;  %v5522_v4 = vpack.c.bf16 %v5486_v29, %v5482_v8  ;;  %v5421_v0 = vmul.f32 0.5, %v5357_v56  ;;  %v5481_v3 = vmul.f32 %v5417_v27, %v11411_v10  ;;  %v5362_v22 = vadd.f32 1.0, %v10984_v28 }
0x1040   : >> { %v5519_v20 = vpack.c.bf16 %v5483_v6, %v5479_v45  ;;  %v5424_v60 = vmul.f32 0.5, %v5360_v9  ;;  %v5428_v52 = vmul.f32 0.5, %v5364_v39  ;;  %v5366_v36 = vadd.f32 1.0, %v8085_v37  ;;  %v11415_v39 = vld [vmem:[#allocation23_spill] sm:$0xff] }
0x1041   : >> { %5966 = vmatprep.mubr.bf16.mxu1 %v5522_v4  ;;  %v5485_v11 = vmul.f32 %v5421_v0, %v11412_v23  ;;  %v5426_v42 = vmul.f32 0.5, %v5362_v22  ;;  %v5359_v49 = vadd.f32 1.0, %v10970_v51  ;;  %v5363_v15 = vadd.f32 1.0, %v10987_v18 }
0x1042   : >> { %v5488_v43 = vmul.f32 %v5424_v60, %v10886_v19  ;;  %v5492_v17 = vmul.f32 %v5428_v52, %v10929_v53  ;;  %v5430_v31 = vmul.f32 0.5, %v5366_v36  ;;  %v5361_v32 = vadd.f32 1.0, %v10975_v13  ;;  %v11417_v60 = vld [vmem:[#allocation31_spill] sm:$0xff] }
0x1043   : >> { %v5521_v28 = vpack.c.bf16 %v5485_v11, %v5481_v3  ;;  %v5490_v47 = vmul.f32 %v5426_v42, %v10896_v2  ;;  %v5423_v30 = vmul.f32 0.5, %v5359_v49  ;;  %v5427_v57 = vmul.f32 0.5, %v5363_v15  ;;  %v11413_v2 = vld [vmem:[#allocation16_spill] sm:$0xff] }
0x1044   : >> { %5870 = vmatmul.mubr.bf16.gmra.mrb[176].mxu0 %v5519_v20  ;;  %v5524_v61 = vpack.c.bf16 %v5492_v17, %v5488_v43  ;;  %v5494_v5 = vmul.f32 %v5430_v31, %v10945_v24  ;;  %v5365_v51 = vadd.f32 1.0, %v10995_v40  ;;  %v5425_v48 = vmul.f32 0.5, %v5361_v32  ;;  %v11414_v24 = vld [vmem:[#allocation19_spill] sm:$0xff] }
0x1045   : >> { %v5487_v19 = vmul.f32 %v5423_v30, %v10870_v21  ;;  %v5491_v53 = vmul.f32 %v5427_v57, %v10902_v38  ;;  %v5595_v40 = vsub.s32 6, %v11414_v24  ;;  %v5985_v12 = vsub.s32 7, %v11414_v24  ;;  %v11418_v57 = vld [vmem:[#allocation24_spill] sm:$0xff] }
0x1046   : >> { %5877 = vmatprep.mubr.bf16.mxu0 %v5524_v61  ;;  %v5526_v18 = vpack.c.bf16 %v5494_v5, %v5490_v47  ;;  %v5429_v13 = vmul.f32 0.5, %v5365_v51  ;;  %v5489_v1 = vmul.f32 %v5425_v48, %v11413_v2 }
0x1047   : >> { %5967 = vmatmul.mubr.bf16.gmra.mrb[136].mxu1 %v5521_v28  ;;  %v5523_v26 = vpack.c.bf16 %v5491_v53, %v5487_v19  ;;  %v11036_v21 = vrot.slane %v8087_v33, %v5595_v40  ;;  %v11040_v8 = vrot.slane %v8087_v33, %v5985_v12  ;;  %v11422_v33 = vld [vmem:[#allocation33_spill] sm:$0xff] }
0x1048   : >> { %5974 = vmatprep.mubr.bf16.mxu1 %v5526_v18  ;;  %v5493_v7 = vmul.f32 %v5429_v13, %v10915_v59  ;;  %v11420_v13 = vld [vmem:[#allocation32_spill] sm:$0xff] }
0x104a   : >> { %v5525_v41 = vpack.c.bf16 %v5493_v7, %v5489_v1 }
0x104c   : >> { %5878 = vmatmul.mubr.bf16.gmra.mrb[180].mxu0 %v5523_v26 }
0x104f   : >> { %5975 = vmatmul.mubr.bf16.gmra.mrb[140].mxu1 %v5525_v41 }
0x10b3   : >> { %v6740_v46 = vpop.f32.mrb[152].mxu0 }
0x10b4   : >> { %v6741_v38 = vpop.f32.mrb[153].mxu0 }
0x10b5   : >> { %v6742_v35 = vadd.f32 %v6741_v38, %v6740_v46  ;;  %v6743_v37 = vpop.f32.mrb[154].mxu0 }
0x10b6   : >> { %v6744_v25 = vpop.f32.mrb[155].mxu0 }
0x10b7   : >> { %v6804_v16 = vpop.f32.mrb[112].mxu1  ;;  %v5824_v50 = vadd.f32 %v6742_v35, %v11036_v21  ;;  %v6745_v58 = vadd.f32 %v6744_v25, %v6743_v37  ;;  %v11424_v37 = vld [vmem:[#allocation28_spill] sm:$0xff] }
0x10b8   : >> { %v6805_v59 = vpop.f32.mrb[113].mxu1 }
0x10b9   : >> { %v6806_v34 = vadd.f32 %v6805_v59, %v6804_v16  ;;  %v6807_v14 = vpop.f32.mrb[114].mxu1  ;;  %v5827_v62 = vadd.f32 %v6745_v58, %v11036_v21 }
0x10ba   : >> { %v6808_v63 = vpop.f32.mrb[115].mxu1 }
0x10bb   : >> { %v5921_v44 = vadd.f32 %v6806_v34, %v5824_v50  ;;  %v6809_v29 = vadd.f32 %v6808_v63, %v6807_v14  ;;  %v6746_v56 = vpop.f32.mrb[156].mxu0 }
0x10bc   : >> { %v6747_v27 = vpop.f32.mrb[157].mxu0 }
0x10bd   : >> { %v5987_v54 = vmul.f32 %v11040_v8, %v5921_v44  ;;  %v5924_v45 = vadd.f32 %v6809_v29, %v5827_v62  ;;  %v6748_v55 = vadd.f32 %v6747_v27, %v6746_v56  ;;  %v6749_v6 = vpop.f32.mrb[158].mxu0 }
0x10be   : >> { %v6750_v9 = vpop.f32.mrb[159].mxu0 }
0x10bf   : >> { %v11045_v59 = vadd.f32 %v5987_v54, %v11415_v39   ;;  %v5988_v0 = vmul.f32 %v11040_v8, %v5924_v45  ;;  %v6810_v10 = vpop.f32.mrb[116].mxu1  ;;  %v5832_v3 = vadd.f32 %v6748_v55, %v11036_v21  ;;  %v6751_v22 = vadd.f32 %v6750_v9, %v6749_v6  ;;  %v11426_v9 = vld [vmem:[#allocation26_spill] sm:$0xff] }
0x10c0   : >> { %v6811_v20 = vpop.f32.mrb[117].mxu1 }
0x10c1   : >> { %v11416_v4 = vmov %v11045_v59  ;;  %v11050_v52 = vadd.f32 %v5988_v0, %v11417_v60   ;;  %v6812_v36 = vadd.f32 %v6811_v20, %v6810_v10  ;;  %v6813_v23 = vpop.f32.mrb[118].mxu1  ;;  %v5835_v11 = vadd.f32 %v6751_v22, %v11036_v21  ;;  %v11428_v10 = vld [vmem:[#allocation25_spill] sm:$0xff] }
0x10c2   : >> { %v6814_v42 = vpop.f32.mrb[119].mxu1  ;;  %6019 = vst [vmem:[%s8327_s12] sm:$0xff] (%p11112_p4), %v11416_v4 }
0x10c3   : >> { %v5929_v49 = vadd.f32 %v6812_v36, %v5832_v3  ;;  %v6815_v15 = vadd.f32 %v6814_v42, %v6813_v23  ;;  %v6752_v43 = vpop.f32.mrb[160].mxu0  ;;  %6020 = vst [vmem:[%s8327_s12 + $0x8] sm:$0xff] (%p11112_p4), %v11050_v52 }
0x10c4   : >> { %v6753_v17 = vpop.f32.mrb[161].mxu0 }
0x10c5   : >> { %v5989_v31 = vmul.f32 %v11040_v8, %v5929_v49  ;;  %v5932_v32 = vadd.f32 %v6815_v15, %v5835_v11  ;;  %v6754_v28 = vadd.f32 %v6753_v17, %v6752_v43  ;;  %v6755_v47 = vpop.f32.mrb[162].mxu0 }
0x10c6   : >> { %v6756_v30 = vpop.f32.mrb[163].mxu0 }
0x10c7   : >> { %v11055_v53 = vadd.f32 %v5989_v31, %v11418_v57   ;;  %v5990_v5 = vmul.f32 %v11040_v8, %v5932_v32  ;;  %v6816_v51 = vpop.f32.mrb[120].mxu1  ;;  %v5840_v48 = vadd.f32 %v6754_v28, %v11036_v21  ;;  %v6757_v19 = vadd.f32 %v6756_v30, %v6755_v47 }
0x10c8   : >> { %v6817_v18 = vpop.f32.mrb[121].mxu1 }
0x10c9   : >> { %v11419_v61 = vmov %v11055_v53  ;;  %v11060_v63 = vadd.f32 %v5990_v5, %v11420_v13   ;;  %v6818_v2 = vadd.f32 %v6817_v18, %v6816_v51  ;;  %v6819_v1 = vpop.f32.mrb[122].mxu1  ;;  %v5843_v7 = vadd.f32 %v6757_v19, %v11036_v21  ;;  %v11430_v18 = vld [vmem:[#allocation30_spill] sm:$0xff] }
0x10ca   : >> { %v6820_v41 = vpop.f32.mrb[123].mxu1  ;;  %6021 = vst [vmem:[%s8327_s12 + $0x10] sm:$0xff] (%p11112_p4), %v11419_v61 }
0x10cb   : >> { %v11421_v26 = vmov %v11060_v63  ;;  %v5937_v24 = vadd.f32 %v6818_v2, %v5840_v48  ;;  %v6821_v40 = vadd.f32 %v6820_v41, %v6819_v1 }
0x10cc   : > { %6022 = vst [vmem:[%s8327_s12 + $0x18] sm:$0xff] (%p11112_p4), %v11421_v26 }
0x10cd   : >> { %v5991_v46 = vmul.f32 %v11040_v8, %v5937_v24  ;;  %v5940_v53 = vadd.f32 %v6821_v40, %v5843_v7 }
0x10cf   : >> { %v11065_v12 = vadd.f32 %v5991_v46, %v11422_v33   ;;  %v5992_v38 = vmul.f32 %v11040_v8, %v5940_v53  ;;  %v11432_v46 = vld [vmem:[#allocation27_spill] sm:$0xff] }
0x10d1   : >> { %v11423_v35 = vmov %v11065_v12  ;;  %v11069_v38 = vadd.f32 %v5992_v38, %v11424_v37  }
0x10d2   : >> { %v6758_v16 = vpop.f32.mrb[164].mxu0  ;;  %6023 = vst [vmem:[%s8327_s12 + $0x20] sm:$0xff] (%p11112_p4), %v11423_v35 }
0x10d3   : >> { %v11425_v25 = vmov %v11069_v38  ;;  %v6822_v50 = vpop.f32.mrb[124].mxu1  ;;  %v6759_v58 = vpop.f32.mrb[165].mxu0 }
0x10d4   : >> { %v6760_v59 = vadd.f32 %v6759_v58, %v6758_v16  ;;  %v6823_v34 = vpop.f32.mrb[125].mxu1  ;;  %v6761_v14 = vpop.f32.mrb[166].mxu0  ;;  %6024 = vst [vmem:[%s8327_s12 + $0x28] sm:$0xff] (%p11112_p4), %v11425_v25 }
0x10d5   : >> { %v6824_v62 = vadd.f32 %v6823_v34, %v6822_v50  ;;  %v6825_v63 = vpop.f32.mrb[126].mxu1  ;;  %v6762_v44 = vpop.f32.mrb[167].mxu0 }
0x10d6   : >> { %v5848_v29 = vadd.f32 %v6760_v59, %v11036_v21  ;;  %v6763_v56 = vadd.f32 %v6762_v44, %v6761_v14  ;;  %v6826_v27 = vpop.f32.mrb[127].mxu1 }
0x10d7   : >> { %v6827_v54 = vadd.f32 %v6826_v27, %v6825_v63 }
0x10d8   : >> { %v5945_v12 = vadd.f32 %v6824_v62, %v5848_v29  ;;  %v5851_v45 = vadd.f32 %v6763_v56, %v11036_v21  ;;  %v11434_v29 = vld [vmem:[#allocation29_spill] sm:$0xff] }
0x10da   : >> { %v5993_v55 = vmul.f32 %v11040_v8, %v5945_v12  ;;  %v5948_v6 = vadd.f32 %v6827_v54, %v5851_v45 }
0x10dc   : >> { %v11075_v9 = vadd.f32 %v5993_v55, %v11426_v9   ;;  %v5994_v0 = vmul.f32 %v11040_v8, %v5948_v6 }
0x10de   : >> { %v11427_v39 = vmov %v11075_v9  ;;  %v11079_v56 = vadd.f32 %v5994_v0, %v11428_v10   ;;  %v11436_v9 = vld [vmem:[#allocation34_spill] sm:$0xff] }
0x10df   : > { %6025 = vst [vmem:[%s8327_s12 + $0x30] sm:$0xff] (%p11112_p4), %v11427_v39 }
0x10e0   : >> { %v11429_v22 = vmov %v11079_v56 }
0x10e1   : > { %6026 = vst [vmem:[%s8327_s12 + $0x38] sm:$0xff] (%p11112_p4), %v11429_v22 }
0x1107   : >> { %v6764_v3 = vpop.f32.mrb[168].mxu0 }
0x1108   : >> { %v6765_v20 = vpop.f32.mrb[169].mxu0 }
0x1109   : >> { %v6766_v60 = vadd.f32 %v6765_v20, %v6764_v3  ;;  %v6767_v36 = vpop.f32.mrb[170].mxu0 }
0x110a   : >> { %v6828_v23 = vpop.f32.mrb[128].mxu1  ;;  %v6768_v11 = vpop.f32.mrb[171].mxu0 }
0x110b   : >> { %v5856_v42 = vadd.f32 %v6766_v60, %v11036_v21  ;;  %v6829_v49 = vpop.f32.mrb[129].mxu1  ;;  %v6769_v15 = vadd.f32 %v6768_v11, %v6767_v36 }
0x110c   : >> { %v6830_v43 = vadd.f32 %v6829_v49, %v6828_v23  ;;  %v6831_v17 = vpop.f32.mrb[130].mxu1 }
0x110d   : >> { %v5859_v31 = vadd.f32 %v6769_v15, %v11036_v21  ;;  %v6832_v32 = vpop.f32.mrb[131].mxu1 }
0x110e   : >> { %v5953_v28 = vadd.f32 %v6830_v43, %v5856_v42  ;;  %v6833_v47 = vadd.f32 %v6832_v32, %v6831_v17 }
0x110f   : >> { %v6770_v30 = vpop.f32.mrb[172].mxu0 }
0x1110   : >> { %v5995_v57 = vmul.f32 %v11040_v8, %v5953_v28  ;;  %v5956_v5 = vadd.f32 %v6833_v47, %v5859_v31  ;;  %v6771_v51 = vpop.f32.mrb[173].mxu0  ;;  %v11437_v31 = vld [vmem:[#allocation35_spill] sm:$0xff] }
0x1111   : >> { %v6772_v48 = vadd.f32 %v6771_v51, %v6770_v30  ;;  %v6773_v19 = vpop.f32.mrb[174].mxu0 }
0x1112   : >> { %v11085_v62 = vadd.f32 %v5995_v57, %v11430_v18   ;;  %v5996_v2 = vmul.f32 %v11040_v8, %v5956_v5  ;;  %v6834_v1 = vpop.f32.mrb[132].mxu1  ;;  %v6774_v7 = vpop.f32.mrb[175].mxu0 }
0x1113   : >> { %v5864_v41 = vadd.f32 %v6772_v48, %v11036_v21  ;;  %v6835_v24 = vpop.f32.mrb[133].mxu1  ;;  %v6775_v40 = vadd.f32 %v6774_v7, %v6773_v19  ;;  %v11438_v48 = vld [vmem:[#allocation36_spill] sm:$0xff] }
0x1114   : >> { %v11431_v13 = vmov %v11085_v62  ;;  %v11090_v7 = vadd.f32 %v5996_v2, %v11432_v46   ;;  %v6836_v53 = vadd.f32 %v6835_v24, %v6834_v1  ;;  %v6837_v38 = vpop.f32.mrb[134].mxu1 }
0x1115   : >> { %v5867_v37 = vadd.f32 %v6775_v40, %v11036_v21  ;;  %v6838_v16 = vpop.f32.mrb[135].mxu1  ;;  %6027 = vst [vmem:[%s8327_s12 + $0x40] sm:$0xff] (%p11112_p4), %v11431_v13 }
0x1116   : >> { %v11433_v33 = vmov %v11090_v7  ;;  %v5961_v50 = vadd.f32 %v6836_v53, %v5864_v41  ;;  %v6839_v58 = vadd.f32 %v6838_v16, %v6837_v38  ;;  %v11439_v53 = vld [vmem:[#allocation37_spill] sm:$0xff]  ;;  %v11440_v16 = vld [vmem:[#allocation22_spill] sm:$0xff] }
0x1117   : >> { %v6776_v59 = vpop.f32.mrb[176].mxu0  ;;  %6028 = vst [vmem:[%s8327_s12 + $0x48] sm:$0xff] (%p11112_p4), %v11433_v33 }
0x1118   : >> { %v5997_v34 = vmul.f32 %v11040_v8, %v5961_v50  ;;  %v5964_v14 = vadd.f32 %v6839_v58, %v5867_v37  ;;  %v6777_v62 = vpop.f32.mrb[177].mxu0 }
0x1119   : >> { %v6778_v63 = vadd.f32 %v6777_v62, %v6776_v59  ;;  %v6779_v44 = vpop.f32.mrb[178].mxu0  ;;  %v11449_v62 = vmov %v11431_v13  ;;  %v11457_v59 = vmov %v11416_v4 }
0x111a   : >> { %v11095_v58 = vadd.f32 %v5997_v34, %v11434_v29   ;;  %v5998_v56 = vmul.f32 %v11040_v8, %v5964_v14  ;;  %v6840_v54 = vpop.f32.mrb[136].mxu1  ;;  %v6780_v12 = vpop.f32.mrb[179].mxu0 }
0x111b   : >> { %v5872_v45 = vadd.f32 %v6778_v63, %v11036_v21  ;;  %v6841_v55 = vpop.f32.mrb[137].mxu1  ;;  %v6781_v6 = vadd.f32 %v6780_v12, %v6779_v44  ;;  %v11453_v12 = vmov %v11423_v35  ;;  %v11454_v63 = vmov %v11421_v26 }
0x111c   : >> { %v11435_v27 = vmov %v11095_v58  ;;  %v6014_v0 = vadd.f32 %v5998_v56, %v11436_v9   ;;  %v6842_v10 = vadd.f32 %v6841_v55, %v6840_v54  ;;  %v6843_v3 = vpop.f32.mrb[138].mxu1  ;;  %v11450_v56 = vmov %v11429_v22 }
0x111d   : >> { %v5875_v20 = vadd.f32 %v6781_v6, %v11036_v21  ;;  %v6844_v60 = vpop.f32.mrb[139].mxu1  ;;  %v11447_v58 = vmov %v11435_v27  ;;  %v11451_v9 = vmov %v11427_v39  ;;  %6029 = vst [vmem:[%s8327_s12 + $0x50] sm:$0xff] (%p11112_p4), %v11435_v27 }
0x111e   : >> { %v5969_v36 = vadd.f32 %v6842_v10, %v5872_v45  ;;  %v6845_v23 = vadd.f32 %v6844_v60, %v6843_v3  ;;  %v11456_v3 = vmov %v11050_v52  ;;  %6030 = vst [vmem:[%s8327_s12 + $0x58] sm:$0xff] (%p11112_p4), %v6014_v0 }
0x111f   : >> { %v6782_v11 = vpop.f32.mrb[180].mxu0 }
0x1120   : >> { %v5999_v42 = vmul.f32 %v11040_v8, %v5969_v36  ;;  %v5972_v49 = vadd.f32 %v6845_v23, %v5875_v20  ;;  %v6783_v15 = vpop.f32.mrb[181].mxu0 }
0x1121   : >> { %v6784_v43 = vadd.f32 %v6783_v15, %v6782_v11  ;;  %v6785_v17 = vpop.f32.mrb[182].mxu0 }
0x1122   : >> { %v6015_v32 = vadd.f32 %v5999_v42, %v11437_v31   ;;  %v6000_v28 = vmul.f32 %v11040_v8, %v5972_v49  ;;  %v6846_v47 = vpop.f32.mrb[140].mxu1  ;;  %v6786_v30 = vpop.f32.mrb[183].mxu0 }
0x1123   : >> { %v5880_v57 = vadd.f32 %v6784_v43, %v11036_v21  ;;  %v6847_v5 = vpop.f32.mrb[141].mxu1  ;;  %v6787_v51 = vadd.f32 %v6786_v30, %v6785_v17 }
0x1124   : >> { %v6016_v19 = vadd.f32 %v6000_v28, %v11438_v48   ;;  %v6848_v18 = vadd.f32 %v6847_v5, %v6846_v47  ;;  %v6849_v2 = vpop.f32.mrb[142].mxu1  ;;  %v11445_v14 = vmov %v6015_v32  ;;  %6031 = vst [vmem:[%s8327_s12 + $0x60] sm:$0xff] (%p11112_p4), %v6015_v32 }
0x1125   : >> { %v5883_v1 = vadd.f32 %v6787_v51, %v11036_v21  ;;  %v6850_v7 = vpop.f32.mrb[143].mxu1 }
0x1126   : >> { %v5977_v41 = vadd.f32 %v6848_v18, %v5880_v57  ;;  %v6851_v24 = vadd.f32 %v6850_v7, %v6849_v2  ;;  %v11444_v50 = vmov %v6016_v19  ;;  %v11446_v2 = vmov %v6014_v0  ;;  %6032 = vst [vmem:[%s8327_s12 + $0x68] sm:$0xff] (%p11112_p4), %v6016_v19 }
0x1127   : >> { %v11448_v7 = vmov %v11433_v33 }
0x1128   : >> { %v6001_v40 = vmul.f32 %v11040_v8, %v5977_v41  ;;  %v5980_v46 = vadd.f32 %v6851_v24, %v5883_v1  ;;  %1252 = sbr.rel (!%p11112_p4) target bundleno = 336 (0x150), region = 104 }
0x112a   : >> { %v6017_v37 = vadd.f32 %v6001_v40, %v11439_v53   ;;  %v6002_v38 = vmul.f32 %v11040_v8, %v5980_v46  ;;  %v11455_v53 = vmov %v11419_v61 }
0x112c   : >> { %v6018_v34 = vadd.f32 %v6002_v38, %v11440_v16   ;;  %v11443_v36 = vmov %v6017_v37  ;;  %v11452_v38 = vmov %v11425_v25  ;;  %6033 = vst [vmem:[%s8327_s12 + $0x70] sm:$0xff] (%p11112_p4), %v6017_v37 }
0x112e   : >> { %v11442_v17 = vmov %v6018_v34  ;;  %6034 = vst [vmem:[%s8327_s12 + $0x78] sm:$0xff] (%p11112_p4), %v6018_v34 }
0x112f PF: > { %s20_s13 = sadd.s32 1, %s8162_s13  }
0x1130   : > { %p17_p5 = scmp.ge.s32.totalorder %s20_s13, 4  }
0x1132   :  { %19 = sbr.rel (!%p17_p5) target bundleno = 1 (0x1), region = 115 }

</bundles_post_ra>
